<compile_context>
chip_gen: v7x
topology: tpu7x:2x2x1
jax: 0.10.0
libtpu: 0.0.40
codegen_flags: <defaults>
</compile_context>

<pallas_src>
from functools import partial

import numpy as np
import jax
import jax.numpy as jnp
from jax import lax
from jax.experimental import pallas as pl
from jax.experimental.pallas import tpu as pltpu

_VMEM = pl.BlockSpec(memory_space=pltpu.MemorySpace.VMEM)

# spatial zero-padding used for the 3x3 "same" conv, expressed on the flattened
# plane: rows of length Wp = W + 2, with one extra bottom row so all 9 shifted
# flat slices stay in bounds.
_PAD_ROWS_TOP, _PAD_ROWS_BOT, _PAD_COLS = 1, 2, 1


def _shift_offsets(wp):
    """Flat offsets of the 9 conv taps on a padded plane with row length wp."""
    return [di * wp + dj for di in range(3) for dj in range(3)]


def _conv_w_to_taps(w_oihw):
    """(Cout, Cin, 3, 3) -> (Cout, 9*Cin), columns ordered (tap = di*3+dj, ci)."""
    co, ci, kh, kw = w_oihw.shape
    return jnp.transpose(w_oihw, (0, 2, 3, 1)).reshape(co, kh * kw * ci)


def _pool_maps(H, W):
    """Per-pool-window metadata (computed once at init, tiny constant inputs)."""
    Wp = W + 2
    Ho, Wo = H // 2, W // 2
    p = np.arange(Ho * Wo)
    yo, xo = p // Wo, p % Wo
    base = 2 * yo * Wp + 2 * xo          # window corner (0,0) in conv-flat coords
    ia = 2 * yo * W + 2 * xo             # PyTorch flat index into the H*W plane
    return (jnp.asarray(base.reshape(1, -1), jnp.int32),
            jnp.asarray(ia.reshape(1, -1), jnp.int32))


def _unpool_maps(H, W):
    """Per padded-flat-position metadata for the fused MaxUnpool2d."""
    Wp = W + 2
    Lp = (H + 3) * Wp
    ll = np.arange(Lp)
    h, w = ll // Wp - 1, ll % Wp - 1
    interior = (h >= 0) & (h < H) & (w >= 0) & (w < W)
    src = np.where(interior, (h // 2) * (W // 2) + (w // 2), -1)
    tgt = np.where(interior, h * W + w, -(2 ** 20))
    return (jnp.asarray(src.reshape(1, -1), jnp.int32),
            jnp.asarray(tgt.reshape(1, -1), jnp.int32))


def _pad_flatten(x):
    """(B, C, H, W) -> (B, C, (H+3)*(W+2)) zero-padded, row-major flattened."""
    B, C, H, W = x.shape
    xp = jnp.pad(x, ((0, 0), (0, 0),
                     (_PAD_ROWS_TOP, _PAD_ROWS_BOT), (_PAD_COLS, _PAD_COLS)))
    return xp.reshape(B, C, (H + 3) * (W + 2))


# ---------------------------------------------------------------------------
# Fused encoder layer: conv3x3('same') + bias + ReLU + maxpool2x2(+indices)
# ---------------------------------------------------------------------------
def _enc_conv_pool_kernel(x_ref, w_ref, b_ref, base_ref, ia_ref, val_ref, idx_ref,
                          *, H, W, Cin):
    """Channels on sublanes, flattened spatial on lanes (lane-dense stores).

      x_ref    (1, Cin, Lp)     zero-padded input plane, rows of length Wp = W+2
      w_ref    (Cout, 9*Cin)    columns ordered (tap, ci)
      b_ref    (Cout, 1)
      base_ref (1, Ho*Wo)       conv-flat position of each window's (0,0) corner
      ia_ref   (1, Ho*Wo)       PyTorch flat H*W index of that corner
      val_ref  (1, Cout, Ho*Wo) pooled activations
      idx_ref  (1, Cout, Ho*Wo) PyTorch MaxPool2d indices (int32)
    """
    Wp = W + 2
    Np = H * Wp                                   # conv rows incl. 2 garbage cols/row
    Cout = val_ref.shape[1]
    Npool = val_ref.shape[2]

    wv = w_ref[...]
    # conv as 9 shifted (Cout,Cin) x (Cin,H*Wp) matmuls accumulated in f32
    y = jnp.zeros((Cout, Np), jnp.float32)
    for t, off in enumerate(_shift_offsets(Wp)):
        tap = x_ref[0, :, off:off + Np].astype(jnp.bfloat16)          # (Cin, Np)
        wt = wv[:, t * Cin:(t + 1) * Cin].astype(jnp.bfloat16)        # (Cout, Cin)
        y = y + jnp.dot(wt, tap, preferred_element_type=jnp.float32)
    y = jnp.maximum(y + b_ref[...], 0.0)                              # bias + ReLU

    # 2x2 max-pool: pull the four window corners out of y with one-hot
    # selection matmuls (no strided slicing / minor-dim reshapes needed).
    k_i = lax.broadcasted_iota(jnp.int32, (Np, Npool), 0)
    base = base_ref[...]                                              # (1, Npool)

    def corner(off):
        sel = (k_i == base + off).astype(jnp.float32)                 # (Np, Npool)
        return jnp.dot(y, sel, preferred_element_type=jnp.float32)    # (Cout, Npool)

    a = corner(0)
    b = corner(1)
    c = corner(Wp)
    d = corner(Wp + 1)

    ia = ia_ref[...]                                                  # (1, Npool)
    v1 = jnp.maximum(a, b)
    i1 = jnp.where(a >= b, ia, ia + 1)
    v2 = jnp.maximum(c, d)
    i2 = jnp.where(c >= d, ia + W, ia + W + 1)
    val_ref[0] = jnp.where(v1 >= v2, v1, v2)
    idx_ref[0] = jnp.where(v1 >= v2, i1, i2)


def conv_relu_pool(xpf, w, b, base_map, ia_map, *, H, W, Cin, Cout):
    B = xpf.shape[0]
    Lp = xpf.shape[2]
    Npool = (H // 2) * (W // 2)
    return pl.pallas_call(
        partial(_enc_conv_pool_kernel, H=H, W=W, Cin=Cin),
        grid=(B,),
        in_specs=[pl.BlockSpec((1, Cin, Lp), lambda i: (i, 0, 0)),
                  pl.BlockSpec((Cout, 9 * Cin), lambda i: (0, 0)),
                  pl.BlockSpec((Cout, 1), lambda i: (0, 0)),
                  pl.BlockSpec((1, Npool), lambda i: (0, 0)),
                  pl.BlockSpec((1, Npool), lambda i: (0, 0))],
        out_specs=(pl.BlockSpec((1, Cout, Npool), lambda i: (i, 0, 0)),
                   pl.BlockSpec((1, Cout, Npool), lambda i: (i, 0, 0))),
        out_shape=(jax.ShapeDtypeStruct((B, Cout, Npool), jnp.float32),
                   jax.ShapeDtypeStruct((B, Cout, Npool), jnp.int32)),
        compiler_params=pltpu.CompilerParams(dimension_semantics=("parallel",)),
    )(xpf, w, b, base_map, ia_map)


# ---------------------------------------------------------------------------
# Fused bottleneck: [means | vars] matmul + sampler + decoder expand linear
# ---------------------------------------------------------------------------
def _bottleneck_kernel(flat_ref, wmv_ref, bmv_ref, eps_ref, wexp_ref, bexp_ref,
                       mean_ref, logv_ref, dexp_ref, *, bn):
    flat = flat_ref[...]
    mv = jnp.dot(flat.astype(jnp.bfloat16), wmv_ref[...].astype(jnp.bfloat16),
                 preferred_element_type=jnp.float32) + bmv_ref[...]
    means = mv[:, :bn]
    logv = mv[:, bn:]
    # latentSamplerCNN: z = mu + exp(logvar) * eps   (reference uses exp, not exp(0.5*))
    z = means + jnp.exp(logv) * eps_ref[...]
    d = jnp.dot(z.astype(jnp.bfloat16), wexp_ref[...].astype(jnp.bfloat16),
                preferred_element_type=jnp.float32) + bexp_ref[...]
    mean_ref[...] = means
    logv_ref[...] = logv
    dexp_ref[...] = d


def bottleneck(flat, wmv, bmv, eps, wexp, bexp, *, bn):
    B = flat.shape[0]
    dexp_dim = wexp.shape[1]
    return pl.pallas_call(
        partial(_bottleneck_kernel, bn=bn),
        out_shape=(jax.ShapeDtypeStruct((B, bn), jnp.float32),
                   jax.ShapeDtypeStruct((B, bn), jnp.float32),
                   jax.ShapeDtypeStruct((B, dexp_dim), jnp.float32)),
        in_specs=[_VMEM] * 6,
        out_specs=(_VMEM, _VMEM, _VMEM),
    )(flat, wmv, bmv, eps, wexp, bexp)


# ---------------------------------------------------------------------------
# Fused decoder layer: MaxUnpool2d(2,2) + ConvTranspose2d(3x3,'same') + bias(+ReLU)
# ---------------------------------------------------------------------------
def _dec_unpool_conv_kernel(d_ref, i_ref, src_ref, tgt_ref, w_ref, b_ref, o_ref,
                            *, H, W, Cin, relu):
    """
      d_ref   (1, Cin, (H*W)//4)  low-res values
      i_ref   (1, Cin, (H*W)//4)  flat argmax indices into the H*W plane
      src_ref (1, Lp)             low-res source cell of each padded-flat pos (-1 = pad)
      tgt_ref (1, Lp)             flat H*W index of each padded-flat position
      w_ref   (Cout, 9*Cin)       equivalent-conv weight
      b_ref   (Cout, 1)
      o_ref   (1, Cout, H*W)
    """
    Wp = W + 2
    Np = H * Wp
    Cout = o_ref.shape[1]
    npool = d_ref.shape[2]
    Lp = src_ref.shape[1]

    d = d_ref[0]                                        # (Cin, npool)
    di = i_ref[0].astype(jnp.float32)                   # exact: indices < 2**24
    src = src_ref[...]
    tgt = tgt_ref[...]

    # MaxUnpool2d as a one-hot gather + argmax-position compare (all in VMEM).
    s_i = lax.broadcasted_iota(jnp.int32, (npool, Lp), 0)
    sel = (s_i == src).astype(jnp.float32)              # (npool, Lp)
    g_val = jnp.dot(d, sel, preferred_element_type=jnp.float32)    # (Cin, Lp)
    g_idx = jnp.dot(di, sel, preferred_element_type=jnp.float32)   # (Cin, Lp)
    up = jnp.where(g_idx.astype(jnp.int32) == tgt, g_val, 0.0)     # unpooled, padded, flat
    # TODO(synk): assumes indices point inside their own 2x2 window (true for this model).

    wv = w_ref[...]
    y = jnp.zeros((Cout, Np), jnp.float32)
    for t, off in enumerate(_shift_offsets(Wp)):
        tap = up[:, off:off + Np].astype(jnp.bfloat16)              # (Cin, Np)
        wt = wv[:, t * Cin:(t + 1) * Cin].astype(jnp.bfloat16)      # (Cout, Cin)
        y = y + jnp.dot(wt, tap, preferred_element_type=jnp.float32)
    y = y + b_ref[...]
    if relu:
        y = jnp.maximum(y, 0.0)

    # drop the two padding columns of every conv row when writing the output
    for r in range(H):
        o_ref[0, :, pl.ds(r * W, W)] = y[:, r * Wp:r * Wp + W]


def unpool_conv_t(d, idx, src_map, tgt_map, w, b, *, H, W, relu):
    B, Cin, npool = d.shape
    Cout = w.shape[0]
    Lp = src_map.shape[1]
    return pl.pallas_call(
        partial(_dec_unpool_conv_kernel, H=H, W=W, Cin=Cin, relu=relu),
        grid=(B,),
        in_specs=[pl.BlockSpec((1, Cin, npool), lambda i: (i, 0, 0)),
                  pl.BlockSpec((1, Cin, npool), lambda i: (i, 0, 0)),
                  pl.BlockSpec((1, Lp), lambda i: (0, 0)),
                  pl.BlockSpec((1, Lp), lambda i: (0, 0)),
                  pl.BlockSpec((Cout, 9 * Cin), lambda i: (0, 0)),
                  pl.BlockSpec((Cout, 1), lambda i: (0, 0))],
        out_specs=pl.BlockSpec((1, Cout, H * W), lambda i: (i, 0, 0)),
        out_shape=jax.ShapeDtypeStruct((B, Cout, H * W), jnp.float32),
        compiler_params=pltpu.CompilerParams(dimension_semantics=("parallel",)),
    )(d, idx, src_map, tgt_map, w, b)


# ---------------------------------------------------------------------------
# Model: parameter init (all layout conversions done here) + forward
# ---------------------------------------------------------------------------
def init_params(key, input_h, input_w, in_channels, out_channels, kernel, bn_size):
    assert tuple(kernel) == (3, 3)  # TODO(synk): only 3x3 stride-1 'same' kernels lowered

    def nrm(k, shape, scale=0.05):
        return scale * jax.random.normal(k, shape, dtype=jnp.float32)

    keys = iter(jax.random.split(key, 64))
    params = {"enc_w": [], "enc_b": [], "enc_base": [], "enc_ia": [],
              "dec_w": [], "dec_b": [], "dec_src": [], "dec_tgt": []}

    h, w = input_h, input_w
    enc_shapes = []
    for ci, co in zip(in_channels, out_channels):
        wt = nrm(next(keys), (co, ci, 3, 3))                 # nn.Conv2d layout
        params["enc_w"].append(_conv_w_to_taps(wt))
        params["enc_b"].append(nrm(next(keys), (co, 1)))
        base_m, ia_m = _pool_maps(h, w)
        params["enc_base"].append(base_m)
        params["enc_ia"].append(ia_m)
        enc_shapes.append((h, w, ci, co))
        h = (h - 2) // 2 + 1
        w = (w - 2) // 2 + 1

    cnn_out_dim = out_channels[-1] * h * w
    mw = nrm(next(keys), (bn_size, cnn_out_dim))             # nn.Linear layout (out, in)
    mb = nrm(next(keys), (bn_size,))
    vw = nrm(next(keys), (bn_size, cnn_out_dim))
    vb = nrm(next(keys), (bn_size,))
    params["wmv"] = jnp.concatenate([mw.T, vw.T], axis=1)    # one fused (K, 2*bn) matmul
    params["bmv"] = jnp.concatenate([mb, vb]).reshape(1, 2 * bn_size)

    dec_in = out_channels[::-1]
    dec_out = in_channels[::-1]
    dexp = h * w * dec_in[0]
    params["wexp"] = nrm(next(keys), (dexp, bn_size)).T      # (bn, dexp)
    params["bexp"] = nrm(next(keys), (dexp,)).reshape(1, dexp)

    for (ci, co), (H, W, _, _) in zip(zip(dec_in, dec_out), enc_shapes[::-1]):
        wt = nrm(next(keys), (ci, co, 3, 3))                 # nn.ConvTranspose2d layout
        w_conv = jnp.transpose(jnp.flip(wt, axis=(2, 3)), (1, 0, 2, 3))  # equivalent conv
        params["dec_w"].append(_conv_w_to_taps(w_conv))
        params["dec_b"].append(nrm(next(keys), (co, 1)))
        src_m, tgt_m = _unpool_maps(H, W)
        params["dec_src"].append(src_m)
        params["dec_tgt"].append(tgt_m)

    meta = {"enc_shapes": enc_shapes, "bottleneck_h": h, "bottleneck_w": w,
            "expand_c": dec_in[0], "bn": bn_size}
    return params, meta


def make_forward(meta):
    enc_shapes = meta["enc_shapes"]       # per encoder layer: (H, W, Cin, Cout) pre-pool
    bn = meta["bn"]

    def forward(params, x, eps):
        """x: (B, C, H, W) NCHW, eps: (B, bn) ~ N(0, 1)."""
        B = x.shape[0]

        # ------------------------- encoder -------------------------
        cur = x
        idx_list = []
        for li, (H, W, Ci, Co) in enumerate(enc_shapes):
            xin = _pad_flatten(cur)                                   # (B, Ci, Lp)
            val, idx = conv_relu_pool(xin, params["enc_w"][li], params["enc_b"][li],
                                      params["enc_base"][li], params["enc_ia"][li],
                                      H=H, W=W, Cin=Ci, Cout=Co)
            idx_list.append(idx)                                      # (B, Co, Ho*Wo)
            cur = val.reshape(B, Co, H // 2, W // 2)
        flat = cur.reshape(B, -1)                                     # NCHW flatten (= .view)

        # ---------------- bottleneck + sampler + expand -------------
        means, logv, dexp = bottleneck(flat, params["wmv"], params["bmv"], eps,
                                       params["wexp"], params["bexp"], bn=bn)

        # ------------------------- decoder -------------------------
        d = dexp.reshape(B, meta["expand_c"],
                         meta["bottleneck_h"] * meta["bottleneck_w"])
        rev = enc_shapes[::-1]
        rev_idx = idx_list[::-1]
        for li, (H, W, Ci, Co) in enumerate(rev):
            d = unpool_conv_t(d, rev_idx[li],
                              params["dec_src"][li], params["dec_tgt"][li],
                              params["dec_w"][li], params["dec_b"][li],
                              H=H, W=W, relu=(li < len(rev) - 1))     # (B, Cout, H*W)
        H0, W0 = enc_shapes[0][0], enc_shapes[0][1]
        recon = d.reshape(B, d.shape[1], H0, W0)

        # latent bookkeeping in the PyTorch convention (outside the hot path)
        indices = [idx.reshape(B, Co, H // 2, W // 2)
                   for (H, W, Ci, Co), idx in zip(enc_shapes, idx_list)]
        sizes = [(B, Co, H, W) for (H, W, Ci, Co) in enc_shapes]
        return recon, (means, logv, indices, sizes)

    return forward


# ---------------------------------------------------------------------------
if __name__ == "__main__":
    input_h, input_w = 16, 16
    in_channels = [4, 8]
    out_channels = [8, 16]
    kernel = (3, 3)
    bn_size = 16
    batch = 2

    key = jax.random.PRNGKey(0)
    k_param, k_x, k_eps = jax.random.split(key, 3)

    params, meta = init_params(k_param, input_h, input_w, in_channels,
                               out_channels, kernel, bn_size)
    x = jax.random.normal(k_x, (batch, in_channels[0], input_h, input_w),
                          dtype=jnp.float32)
    # torch.randn stream is not reproducible in JAX; eps is an explicit input.
    eps = jax.random.normal(k_eps, (batch, bn_size), dtype=jnp.float32)

    forward = jax.jit(make_forward(meta))
    recon, latent = forward(params, x, eps)
    recon = jax.block_until_ready(recon)
    means = jax.block_until_ready(latent[0])

    assert recon.shape == x.shape, recon.shape
    assert means.shape == (batch, bn_size), means.shape
    assert latent[2][0].shape == (batch, out_channels[0], input_h // 2, input_w // 2)
    assert bool(jnp.all(jnp.isfinite(recon)))
    print("KERNEL_OK")
</pallas_src>

<mosaic_0001>
module attributes {stable_mosaic.version = 11 : i64} {
  func.func @_enc_conv_pool_kernel(%arg0: i32, %arg1: memref<1x4x342xf32, #tpu.memory_space<vmem>>, %arg2: memref<8x36xf32, #tpu.memory_space<vmem>>, %arg3: memref<8x1xf32, #tpu.memory_space<vmem>>, %arg4: memref<1x64xi32, #tpu.memory_space<vmem>>, %arg5: memref<1x64xi32, #tpu.memory_space<vmem>>, %arg6: memref<1x8x64xf32, #tpu.memory_space<vmem>>, %arg7: memref<1x8x64xi32, #tpu.memory_space<vmem>>) attributes {dimension_semantics = [#tpu.dimension_semantics<parallel>], iteration_bounds = array<i64: 2>, scalar_prefetch = 0 : i64, scratch_operands = 0 : i64, tpu.core_type = #tpu.core_type<tc>, window_params = [{transform_indices = @transform_0, window_bounds = array<i64: 1, 4, 342>}, {pipeline_mode = #tpu.pipeline_mode<synchronous>, transform_indices = @transform_1, window_bounds = array<i64: 8, 36>}, {pipeline_mode = #tpu.pipeline_mode<synchronous>, transform_indices = @transform_2, window_bounds = array<i64: 8, 1>}, {pipeline_mode = #tpu.pipeline_mode<synchronous>, transform_indices = @transform_3, window_bounds = array<i64: 1, 64>}, {pipeline_mode = #tpu.pipeline_mode<synchronous>, transform_indices = @transform_4, window_bounds = array<i64: 1, 64>}, {transform_indices = @transform_5, window_bounds = array<i64: 1, 8, 64>}, {transform_indices = @transform_6, window_bounds = array<i64: 1, 8, 64>}]} {
    %c0 = arith.constant 0 : index
    %c0_0 = arith.constant 0 : index
    %0 = vector.load %arg2[%c0, %c0_0] : memref<8x36xf32, #tpu.memory_space<vmem>>, vector<8x36xf32>
    %cst = arith.constant 0.000000e+00 : f32
    %1 = vector.broadcast %cst : f32 to vector<8x288xf32>
    %c0_1 = arith.constant 0 : index
    %c0_2 = arith.constant 0 : index
    %c0_3 = arith.constant 0 : index
    %2 = vector.load %arg1[%c0_1, %c0_2, %c0_3] : memref<1x4x342xf32, #tpu.memory_space<vmem>>, vector<1x4x288xf32>
    %3 = vector.shape_cast %2 : vector<1x4x288xf32> to vector<4x288xf32>
    %4 = arith.truncf %3 : vector<4x288xf32> to vector<4x288xbf16>
    %5 = vector.extract_strided_slice %0 {offsets = [0, 0], sizes = [8, 4], strides = [1, 1]} : vector<8x36xf32> to vector<8x4xf32>
    %6 = arith.truncf %5 : vector<8x4xf32> to vector<8x4xbf16>
    %cst_4 = arith.constant dense<0.000000e+00> : vector<8x288xf32>
    %7 = tpu.matmul %6, %4, %cst_4 {dimension_numbers = #tpu.dot_dimension_numbers<[1], [0], [0], [1], [0, 0, 1, 1], [], []>} : vector<8x4xbf16>, vector<4x288xbf16>, vector<8x288xf32> -> vector<8x288xf32>
    %8 = arith.addf %1, %7 : vector<8x288xf32>
    %c0_5 = arith.constant 0 : index
    %c0_6 = arith.constant 0 : index
    %c1 = arith.constant 1 : index
    %9 = vector.load %arg1[%c0_5, %c0_6, %c1] : memref<1x4x342xf32, #tpu.memory_space<vmem>>, vector<1x4x288xf32>
    %10 = vector.shape_cast %9 : vector<1x4x288xf32> to vector<4x288xf32>
    %11 = arith.truncf %10 : vector<4x288xf32> to vector<4x288xbf16>
    %12 = vector.extract_strided_slice %0 {offsets = [0, 4], sizes = [8, 4], strides = [1, 1]} : vector<8x36xf32> to vector<8x4xf32>
    %13 = arith.truncf %12 : vector<8x4xf32> to vector<8x4xbf16>
    %cst_7 = arith.constant dense<0.000000e+00> : vector<8x288xf32>
    %14 = tpu.matmul %13, %11, %cst_7 {dimension_numbers = #tpu.dot_dimension_numbers<[1], [0], [0], [1], [0, 0, 1, 1], [], []>} : vector<8x4xbf16>, vector<4x288xbf16>, vector<8x288xf32> -> vector<8x288xf32>
    %15 = arith.addf %8, %14 : vector<8x288xf32>
    %c0_8 = arith.constant 0 : index
    %c0_9 = arith.constant 0 : index
    %c2 = arith.constant 2 : index
    %16 = vector.load %arg1[%c0_8, %c0_9, %c2] : memref<1x4x342xf32, #tpu.memory_space<vmem>>, vector<1x4x288xf32>
    %17 = vector.shape_cast %16 : vector<1x4x288xf32> to vector<4x288xf32>
    %18 = arith.truncf %17 : vector<4x288xf32> to vector<4x288xbf16>
    %19 = vector.extract_strided_slice %0 {offsets = [0, 8], sizes = [8, 4], strides = [1, 1]} : vector<8x36xf32> to vector<8x4xf32>
    %20 = arith.truncf %19 : vector<8x4xf32> to vector<8x4xbf16>
    %cst_10 = arith.constant dense<0.000000e+00> : vector<8x288xf32>
    %21 = tpu.matmul %20, %18, %cst_10 {dimension_numbers = #tpu.dot_dimension_numbers<[1], [0], [0], [1], [0, 0, 1, 1], [], []>} : vector<8x4xbf16>, vector<4x288xbf16>, vector<8x288xf32> -> vector<8x288xf32>
    %22 = arith.addf %15, %21 : vector<8x288xf32>
    %c0_11 = arith.constant 0 : index
    %c0_12 = arith.constant 0 : index
    %c18 = arith.constant 18 : index
    %23 = vector.load %arg1[%c0_11, %c0_12, %c18] : memref<1x4x342xf32, #tpu.memory_space<vmem>>, vector<1x4x288xf32>
    %24 = vector.shape_cast %23 : vector<1x4x288xf32> to vector<4x288xf32>
    %25 = arith.truncf %24 : vector<4x288xf32> to vector<4x288xbf16>
    %26 = vector.extract_strided_slice %0 {offsets = [0, 12], sizes = [8, 4], strides = [1, 1]} : vector<8x36xf32> to vector<8x4xf32>
    %27 = arith.truncf %26 : vector<8x4xf32> to vector<8x4xbf16>
    %cst_13 = arith.constant dense<0.000000e+00> : vector<8x288xf32>
    %28 = tpu.matmul %27, %25, %cst_13 {dimension_numbers = #tpu.dot_dimension_numbers<[1], [0], [0], [1], [0, 0, 1, 1], [], []>} : vector<8x4xbf16>, vector<4x288xbf16>, vector<8x288xf32> -> vector<8x288xf32>
    %29 = arith.addf %22, %28 : vector<8x288xf32>
    %c0_14 = arith.constant 0 : index
    %c0_15 = arith.constant 0 : index
    %c19 = arith.constant 19 : index
    %30 = vector.load %arg1[%c0_14, %c0_15, %c19] : memref<1x4x342xf32, #tpu.memory_space<vmem>>, vector<1x4x288xf32>
    %31 = vector.shape_cast %30 : vector<1x4x288xf32> to vector<4x288xf32>
    %32 = arith.truncf %31 : vector<4x288xf32> to vector<4x288xbf16>
    %33 = vector.extract_strided_slice %0 {offsets = [0, 16], sizes = [8, 4], strides = [1, 1]} : vector<8x36xf32> to vector<8x4xf32>
    %34 = arith.truncf %33 : vector<8x4xf32> to vector<8x4xbf16>
    %cst_16 = arith.constant dense<0.000000e+00> : vector<8x288xf32>
    %35 = tpu.matmul %34, %32, %cst_16 {dimension_numbers = #tpu.dot_dimension_numbers<[1], [0], [0], [1], [0, 0, 1, 1], [], []>} : vector<8x4xbf16>, vector<4x288xbf16>, vector<8x288xf32> -> vector<8x288xf32>
    %36 = arith.addf %29, %35 : vector<8x288xf32>
    %c0_17 = arith.constant 0 : index
    %c0_18 = arith.constant 0 : index
    %c20 = arith.constant 20 : index
    %37 = vector.load %arg1[%c0_17, %c0_18, %c20] : memref<1x4x342xf32, #tpu.memory_space<vmem>>, vector<1x4x288xf32>
    %38 = vector.shape_cast %37 : vector<1x4x288xf32> to vector<4x288xf32>
    %39 = arith.truncf %38 : vector<4x288xf32> to vector<4x288xbf16>
    %40 = vector.extract_strided_slice %0 {offsets = [0, 20], sizes = [8, 4], strides = [1, 1]} : vector<8x36xf32> to vector<8x4xf32>
    %41 = arith.truncf %40 : vector<8x4xf32> to vector<8x4xbf16>
    %cst_19 = arith.constant dense<0.000000e+00> : vector<8x288xf32>
    %42 = tpu.matmul %41, %39, %cst_19 {dimension_numbers = #tpu.dot_dimension_numbers<[1], [0], [0], [1], [0, 0, 1, 1], [], []>} : vector<8x4xbf16>, vector<4x288xbf16>, vector<8x288xf32> -> vector<8x288xf32>
    %43 = arith.addf %36, %42 : vector<8x288xf32>
    %c0_20 = arith.constant 0 : index
    %c0_21 = arith.constant 0 : index
    %c36 = arith.constant 36 : index
    %44 = vector.load %arg1[%c0_20, %c0_21, %c36] : memref<1x4x342xf32, #tpu.memory_space<vmem>>, vector<1x4x288xf32>
    %45 = vector.shape_cast %44 : vector<1x4x288xf32> to vector<4x288xf32>
    %46 = arith.truncf %45 : vector<4x288xf32> to vector<4x288xbf16>
    %47 = vector.extract_strided_slice %0 {offsets = [0, 24], sizes = [8, 4], strides = [1, 1]} : vector<8x36xf32> to vector<8x4xf32>
    %48 = arith.truncf %47 : vector<8x4xf32> to vector<8x4xbf16>
    %cst_22 = arith.constant dense<0.000000e+00> : vector<8x288xf32>
    %49 = tpu.matmul %48, %46, %cst_22 {dimension_numbers = #tpu.dot_dimension_numbers<[1], [0], [0], [1], [0, 0, 1, 1], [], []>} : vector<8x4xbf16>, vector<4x288xbf16>, vector<8x288xf32> -> vector<8x288xf32>
    %50 = arith.addf %43, %49 : vector<8x288xf32>
    %c0_23 = arith.constant 0 : index
    %c0_24 = arith.constant 0 : index
    %c37 = arith.constant 37 : index
    %51 = vector.load %arg1[%c0_23, %c0_24, %c37] : memref<1x4x342xf32, #tpu.memory_space<vmem>>, vector<1x4x288xf32>
    %52 = vector.shape_cast %51 : vector<1x4x288xf32> to vector<4x288xf32>
    %53 = arith.truncf %52 : vector<4x288xf32> to vector<4x288xbf16>
    %54 = vector.extract_strided_slice %0 {offsets = [0, 28], sizes = [8, 4], strides = [1, 1]} : vector<8x36xf32> to vector<8x4xf32>
    %55 = arith.truncf %54 : vector<8x4xf32> to vector<8x4xbf16>
    %cst_25 = arith.constant dense<0.000000e+00> : vector<8x288xf32>
    %56 = tpu.matmul %55, %53, %cst_25 {dimension_numbers = #tpu.dot_dimension_numbers<[1], [0], [0], [1], [0, 0, 1, 1], [], []>} : vector<8x4xbf16>, vector<4x288xbf16>, vector<8x288xf32> -> vector<8x288xf32>
    %57 = arith.addf %50, %56 : vector<8x288xf32>
    %c0_26 = arith.constant 0 : index
    %c0_27 = arith.constant 0 : index
    %c38 = arith.constant 38 : index
    %58 = vector.load %arg1[%c0_26, %c0_27, %c38] : memref<1x4x342xf32, #tpu.memory_space<vmem>>, vector<1x4x288xf32>
    %59 = vector.shape_cast %58 : vector<1x4x288xf32> to vector<4x288xf32>
    %60 = arith.truncf %59 : vector<4x288xf32> to vector<4x288xbf16>
    %61 = vector.extract_strided_slice %0 {offsets = [0, 32], sizes = [8, 4], strides = [1, 1]} : vector<8x36xf32> to vector<8x4xf32>
    %62 = arith.truncf %61 : vector<8x4xf32> to vector<8x4xbf16>
    %cst_28 = arith.constant dense<0.000000e+00> : vector<8x288xf32>
    %63 = tpu.matmul %62, %60, %cst_28 {dimension_numbers = #tpu.dot_dimension_numbers<[1], [0], [0], [1], [0, 0, 1, 1], [], []>} : vector<8x4xbf16>, vector<4x288xbf16>, vector<8x288xf32> -> vector<8x288xf32>
    %64 = arith.addf %57, %63 : vector<8x288xf32>
    %c0_29 = arith.constant 0 : index
    %c0_30 = arith.constant 0 : index
    %65 = vector.load %arg3[%c0_29, %c0_30] : memref<8x1xf32, #tpu.memory_space<vmem>>, vector<8x1xf32>
    %66 = vector.broadcast %65 : vector<8x1xf32> to vector<8x288xf32>
    %67 = arith.addf %64, %66 : vector<8x288xf32>
    %cst_31 = arith.constant 0.000000e+00 : f32
    %68 = vector.broadcast %cst_31 : f32 to vector<8x288xf32>
    %69 = arith.maximumf %67, %68 : vector<8x288xf32>
    %70 = tpu.iota {dimensions = array<i32: 0>} : vector<288x64xi32>
    %c0_32 = arith.constant 0 : index
    %c0_33 = arith.constant 0 : index
    %71 = vector.load %arg4[%c0_32, %c0_33] : memref<1x64xi32, #tpu.memory_space<vmem>>, vector<1x64xi32>
    %c0_i32 = arith.constant 0 : i32
    %72 = vector.broadcast %c0_i32 : i32 to vector<1x64xi32>
    %73 = arith.addi %71, %72 : vector<1x64xi32>
    %74 = vector.broadcast %73 : vector<1x64xi32> to vector<288x64xi32>
    %75 = arith.cmpi eq, %70, %74 : vector<288x64xi32>
    %76 = arith.extui %75 : vector<288x64xi1> to vector<288x64xi32>
    %77 = arith.sitofp %76 : vector<288x64xi32> to vector<288x64xf32>
    %cst_34 = arith.constant dense<0.000000e+00> : vector<8x64xf32>
    %78 = tpu.matmul %69, %77, %cst_34 {dimension_numbers = #tpu.dot_dimension_numbers<[1], [0], [0], [1], [0, 0, 1, 1], [], []>} : vector<8x288xf32>, vector<288x64xf32>, vector<8x64xf32> -> vector<8x64xf32>
    %c1_i32 = arith.constant 1 : i32
    %79 = vector.broadcast %c1_i32 : i32 to vector<1x64xi32>
    %80 = arith.addi %71, %79 : vector<1x64xi32>
    %81 = vector.broadcast %80 : vector<1x64xi32> to vector<288x64xi32>
    %82 = arith.cmpi eq, %70, %81 : vector<288x64xi32>
    %83 = arith.extui %82 : vector<288x64xi1> to vector<288x64xi32>
    %84 = arith.sitofp %83 : vector<288x64xi32> to vector<288x64xf32>
    %cst_35 = arith.constant dense<0.000000e+00> : vector<8x64xf32>
    %85 = tpu.matmul %69, %84, %cst_35 {dimension_numbers = #tpu.dot_dimension_numbers<[1], [0], [0], [1], [0, 0, 1, 1], [], []>} : vector<8x288xf32>, vector<288x64xf32>, vector<8x64xf32> -> vector<8x64xf32>
    %c18_i32 = arith.constant 18 : i32
    %86 = vector.broadcast %c18_i32 : i32 to vector<1x64xi32>
    %87 = arith.addi %71, %86 : vector<1x64xi32>
    %88 = vector.broadcast %87 : vector<1x64xi32> to vector<288x64xi32>
    %89 = arith.cmpi eq, %70, %88 : vector<288x64xi32>
    %90 = arith.extui %89 : vector<288x64xi1> to vector<288x64xi32>
    %91 = arith.sitofp %90 : vector<288x64xi32> to vector<288x64xf32>
    %cst_36 = arith.constant dense<0.000000e+00> : vector<8x64xf32>
    %92 = tpu.matmul %69, %91, %cst_36 {dimension_numbers = #tpu.dot_dimension_numbers<[1], [0], [0], [1], [0, 0, 1, 1], [], []>} : vector<8x288xf32>, vector<288x64xf32>, vector<8x64xf32> -> vector<8x64xf32>
    %c19_i32 = arith.constant 19 : i32
    %93 = vector.broadcast %c19_i32 : i32 to vector<1x64xi32>
    %94 = arith.addi %71, %93 : vector<1x64xi32>
    %95 = vector.broadcast %94 : vector<1x64xi32> to vector<288x64xi32>
    %96 = arith.cmpi eq, %70, %95 : vector<288x64xi32>
    %97 = arith.extui %96 : vector<288x64xi1> to vector<288x64xi32>
    %98 = arith.sitofp %97 : vector<288x64xi32> to vector<288x64xf32>
    %cst_37 = arith.constant dense<0.000000e+00> : vector<8x64xf32>
    %99 = tpu.matmul %69, %98, %cst_37 {dimension_numbers = #tpu.dot_dimension_numbers<[1], [0], [0], [1], [0, 0, 1, 1], [], []>} : vector<8x288xf32>, vector<288x64xf32>, vector<8x64xf32> -> vector<8x64xf32>
    %c0_38 = arith.constant 0 : index
    %c0_39 = arith.constant 0 : index
    %100 = vector.load %arg5[%c0_38, %c0_39] : memref<1x64xi32, #tpu.memory_space<vmem>>, vector<1x64xi32>
    %101 = arith.maximumf %78, %85 : vector<8x64xf32>
    %102 = arith.cmpf oge, %78, %85 : vector<8x64xf32>
    %c1_i32_40 = arith.constant 1 : i32
    %103 = vector.broadcast %c1_i32_40 : i32 to vector<1x64xi32>
    %104 = arith.addi %100, %103 : vector<1x64xi32>
    %105 = vector.shape_cast %100 : vector<1x64xi32> to vector<1x64xi32>
    %106 = vector.broadcast %105 : vector<1x64xi32> to vector<8x64xi32>
    %107 = vector.shape_cast %104 : vector<1x64xi32> to vector<1x64xi32>
    %108 = vector.broadcast %107 : vector<1x64xi32> to vector<8x64xi32>
    %109 = arith.select %102, %106, %108 : vector<8x64xi1>, vector<8x64xi32>
    %110 = arith.maximumf %92, %99 : vector<8x64xf32>
    %111 = arith.cmpf oge, %92, %99 : vector<8x64xf32>
    %c16_i32 = arith.constant 16 : i32
    %112 = vector.broadcast %c16_i32 : i32 to vector<1x64xi32>
    %113 = arith.addi %100, %112 : vector<1x64xi32>
    %c16_i32_41 = arith.constant 16 : i32
    %114 = vector.broadcast %c16_i32_41 : i32 to vector<1x64xi32>
    %115 = arith.addi %100, %114 : vector<1x64xi32>
    %c1_i32_42 = arith.constant 1 : i32
    %116 = vector.broadcast %c1_i32_42 : i32 to vector<1x64xi32>
    %117 = arith.addi %115, %116 : vector<1x64xi32>
    %118 = vector.shape_cast %113 : vector<1x64xi32> to vector<1x64xi32>
    %119 = vector.broadcast %118 : vector<1x64xi32> to vector<8x64xi32>
    %120 = vector.shape_cast %117 : vector<1x64xi32> to vector<1x64xi32>
    %121 = vector.broadcast %120 : vector<1x64xi32> to vector<8x64xi32>
    %122 = arith.select %111, %119, %121 : vector<8x64xi1>, vector<8x64xi32>
    %123 = arith.cmpf oge, %101, %110 : vector<8x64xf32>
    %124 = arith.select %123, %101, %110 : vector<8x64xi1>, vector<8x64xf32>
    %c0_43 = arith.constant 0 : index
    %c0_44 = arith.constant 0 : index
    %c0_45 = arith.constant 0 : index
    %125 = vector.load %arg6[%c0_43, %c0_44, %c0_45] : memref<1x8x64xf32, #tpu.memory_space<vmem>>, vector<1x8x64xf32>
    %126 = vector.shape_cast %125 : vector<1x8x64xf32> to vector<8x64xf32>
    %127 = vector.shape_cast %124 : vector<8x64xf32> to vector<1x8x64xf32>
    tpu.vector_store %arg6[%c0_43, %c0_44, %c0_45], %127 {strides = array<i32>} : memref<1x8x64xf32, #tpu.memory_space<vmem>>, vector<1x8x64xf32>,
    %128 = arith.cmpf oge, %101, %110 : vector<8x64xf32>
    %129 = arith.select %128, %109, %122 : vector<8x64xi1>, vector<8x64xi32>
    %c0_46 = arith.constant 0 : index
    %c0_47 = arith.constant 0 : index
    %c0_48 = arith.constant 0 : index
    %130 = vector.load %arg7[%c0_46, %c0_47, %c0_48] : memref<1x8x64xi32, #tpu.memory_space<vmem>>, vector<1x8x64xi32>
    %131 = vector.shape_cast %130 : vector<1x8x64xi32> to vector<8x64xi32>
    %132 = vector.shape_cast %129 : vector<8x64xi32> to vector<1x8x64xi32>
    tpu.vector_store %arg7[%c0_46, %c0_47, %c0_48], %132 {strides = array<i32>} : memref<1x8x64xi32, #tpu.memory_space<vmem>>, vector<1x8x64xi32>,
    return
  }
  func.func @transform_0(%arg0: i32) -> (i32, i32, i32) {
    %c0_i32 = arith.constant 0 : i32
    %c0_i32_0 = arith.constant 0 : i32
    %c0_i32_1 = arith.constant 0 : i32
    return %arg0, %c0_i32, %c0_i32_0 : i32, i32, i32
  }
  func.func @transform_1(%arg0: i32) -> (i32, i32) {
    %c0_i32 = arith.constant 0 : i32
    %c0_i32_0 = arith.constant 0 : i32
    %c0_i32_1 = arith.constant 0 : i32
    return %c0_i32, %c0_i32_0 : i32, i32
  }
  func.func @transform_2(%arg0: i32) -> (i32, i32) {
    %c0_i32 = arith.constant 0 : i32
    %c0_i32_0 = arith.constant 0 : i32
    %c0_i32_1 = arith.constant 0 : i32
    return %c0_i32, %c0_i32_0 : i32, i32
  }
  func.func @transform_3(%arg0: i32) -> (i32, i32) {
    %c0_i32 = arith.constant 0 : i32
    %c0_i32_0 = arith.constant 0 : i32
    %c0_i32_1 = arith.constant 0 : i32
    return %c0_i32, %c0_i32_0 : i32, i32
  }
  func.func @transform_4(%arg0: i32) -> (i32, i32) {
    %c0_i32 = arith.constant 0 : i32
    %c0_i32_0 = arith.constant 0 : i32
    %c0_i32_1 = arith.constant 0 : i32
    return %c0_i32, %c0_i32_0 : i32, i32
  }
  func.func @transform_5(%arg0: i32) -> (i32, i32, i32) {
    %c0_i32 = arith.constant 0 : i32
    %c0_i32_0 = arith.constant 0 : i32
    %c0_i32_1 = arith.constant 0 : i32
    return %arg0, %c0_i32, %c0_i32_0 : i32, i32, i32
  }
  func.func @transform_6(%arg0: i32) -> (i32, i32, i32) {
    %c0_i32 = arith.constant 0 : i32
    %c0_i32_0 = arith.constant 0 : i32
    %c0_i32_1 = arith.constant 0 : i32
    return %arg0, %c0_i32, %c0_i32_0 : i32, i32, i32
  }
}

module attributes {stable_mosaic.version = 11 : i64} {
  func.func @_enc_conv_pool_kernel(%arg0: i32, %arg1: memref<1x8x110xf32, #tpu.memory_space<vmem>>, %arg2: memref<16x72xf32, #tpu.memory_space<vmem>>, %arg3: memref<16x1xf32, #tpu.memory_space<vmem>>, %arg4: memref<1x16xi32, #tpu.memory_space<vmem>>, %arg5: memref<1x16xi32, #tpu.memory_space<vmem>>, %arg6: memref<1x16x16xf32, #tpu.memory_space<vmem>>, %arg7: memref<1x16x16xi32, #tpu.memory_space<vmem>>) attributes {dimension_semantics = [#tpu.dimension_semantics<parallel>], iteration_bounds = array<i64: 2>, scalar_prefetch = 0 : i64, scratch_operands = 0 : i64, tpu.core_type = #tpu.core_type<tc>, window_params = [{transform_indices = @transform_0, window_bounds = array<i64: 1, 8, 110>}, {pipeline_mode = #tpu.pipeline_mode<synchronous>, transform_indices = @transform_1, window_bounds = array<i64: 16, 72>}, {pipeline_mode = #tpu.pipeline_mode<synchronous>, transform_indices = @transform_2, window_bounds = array<i64: 16, 1>}, {pipeline_mode = #tpu.pipeline_mode<synchronous>, transform_indices = @transform_3, window_bounds = array<i64: 1, 16>}, {pipeline_mode = #tpu.pipeline_mode<synchronous>, transform_indices = @transform_4, window_bounds = array<i64: 1, 16>}, {transform_indices = @transform_5, window_bounds = array<i64: 1, 16, 16>}, {transform_indices = @transform_6, window_bounds = array<i64: 1, 16, 16>}]} {
    %c0 = arith.constant 0 : index
    %c0_0 = arith.constant 0 : index
    %0 = vector.load %arg2[%c0, %c0_0] : memref<16x72xf32, #tpu.memory_space<vmem>>, vector<16x72xf32>
    %cst = arith.constant 0.000000e+00 : f32
    %1 = vector.broadcast %cst : f32 to vector<16x80xf32>
    %c0_1 = arith.constant 0 : index
    %c0_2 = arith.constant 0 : index
    %c0_3 = arith.constant 0 : index
    %2 = vector.load %arg1[%c0_1, %c0_2, %c0_3] : memref<1x8x110xf32, #tpu.memory_space<vmem>>, vector<1x8x80xf32>
    %3 = vector.shape_cast %2 : vector<1x8x80xf32> to vector<8x80xf32>
    %4 = arith.truncf %3 : vector<8x80xf32> to vector<8x80xbf16>
    %5 = vector.extract_strided_slice %0 {offsets = [0, 0], sizes = [16, 8], strides = [1, 1]} : vector<16x72xf32> to vector<16x8xf32>
    %6 = arith.truncf %5 : vector<16x8xf32> to vector<16x8xbf16>
    %cst_4 = arith.constant dense<0.000000e+00> : vector<16x80xf32>
    %7 = tpu.matmul %6, %4, %cst_4 {dimension_numbers = #tpu.dot_dimension_numbers<[1], [0], [0], [1], [0, 0, 1, 1], [], []>} : vector<16x8xbf16>, vector<8x80xbf16>, vector<16x80xf32> -> vector<16x80xf32>
    %8 = arith.addf %1, %7 : vector<16x80xf32>
    %c0_5 = arith.constant 0 : index
    %c0_6 = arith.constant 0 : index
    %c1 = arith.constant 1 : index
    %9 = vector.load %arg1[%c0_5, %c0_6, %c1] : memref<1x8x110xf32, #tpu.memory_space<vmem>>, vector<1x8x80xf32>
    %10 = vector.shape_cast %9 : vector<1x8x80xf32> to vector<8x80xf32>
    %11 = arith.truncf %10 : vector<8x80xf32> to vector<8x80xbf16>
    %12 = vector.extract_strided_slice %0 {offsets = [0, 8], sizes = [16, 8], strides = [1, 1]} : vector<16x72xf32> to vector<16x8xf32>
    %13 = arith.truncf %12 : vector<16x8xf32> to vector<16x8xbf16>
    %cst_7 = arith.constant dense<0.000000e+00> : vector<16x80xf32>
    %14 = tpu.matmul %13, %11, %cst_7 {dimension_numbers = #tpu.dot_dimension_numbers<[1], [0], [0], [1], [0, 0, 1, 1], [], []>} : vector<16x8xbf16>, vector<8x80xbf16>, vector<16x80xf32> -> vector<16x80xf32>
    %15 = arith.addf %8, %14 : vector<16x80xf32>
    %c0_8 = arith.constant 0 : index
    %c0_9 = arith.constant 0 : index
    %c2 = arith.constant 2 : index
    %16 = vector.load %arg1[%c0_8, %c0_9, %c2] : memref<1x8x110xf32, #tpu.memory_space<vmem>>, vector<1x8x80xf32>
    %17 = vector.shape_cast %16 : vector<1x8x80xf32> to vector<8x80xf32>
    %18 = arith.truncf %17 : vector<8x80xf32> to vector<8x80xbf16>
    %19 = vector.extract_strided_slice %0 {offsets = [0, 16], sizes = [16, 8], strides = [1, 1]} : vector<16x72xf32> to vector<16x8xf32>
    %20 = arith.truncf %19 : vector<16x8xf32> to vector<16x8xbf16>
    %cst_10 = arith.constant dense<0.000000e+00> : vector<16x80xf32>
    %21 = tpu.matmul %20, %18, %cst_10 {dimension_numbers = #tpu.dot_dimension_numbers<[1], [0], [0], [1], [0, 0, 1, 1], [], []>} : vector<16x8xbf16>, vector<8x80xbf16>, vector<16x80xf32> -> vector<16x80xf32>
    %22 = arith.addf %15, %21 : vector<16x80xf32>
    %c0_11 = arith.constant 0 : index
    %c0_12 = arith.constant 0 : index
    %c10 = arith.constant 10 : index
    %23 = vector.load %arg1[%c0_11, %c0_12, %c10] : memref<1x8x110xf32, #tpu.memory_space<vmem>>, vector<1x8x80xf32>
    %24 = vector.shape_cast %23 : vector<1x8x80xf32> to vector<8x80xf32>
    %25 = arith.truncf %24 : vector<8x80xf32> to vector<8x80xbf16>
    %26 = vector.extract_strided_slice %0 {offsets = [0, 24], sizes = [16, 8], strides = [1, 1]} : vector<16x72xf32> to vector<16x8xf32>
    %27 = arith.truncf %26 : vector<16x8xf32> to vector<16x8xbf16>
    %cst_13 = arith.constant dense<0.000000e+00> : vector<16x80xf32>
    %28 = tpu.matmul %27, %25, %cst_13 {dimension_numbers = #tpu.dot_dimension_numbers<[1], [0], [0], [1], [0, 0, 1, 1], [], []>} : vector<16x8xbf16>, vector<8x80xbf16>, vector<16x80xf32> -> vector<16x80xf32>
    %29 = arith.addf %22, %28 : vector<16x80xf32>
    %c0_14 = arith.constant 0 : index
    %c0_15 = arith.constant 0 : index
    %c11 = arith.constant 11 : index
    %30 = vector.load %arg1[%c0_14, %c0_15, %c11] : memref<1x8x110xf32, #tpu.memory_space<vmem>>, vector<1x8x80xf32>
    %31 = vector.shape_cast %30 : vector<1x8x80xf32> to vector<8x80xf32>
    %32 = arith.truncf %31 : vector<8x80xf32> to vector<8x80xbf16>
    %33 = vector.extract_strided_slice %0 {offsets = [0, 32], sizes = [16, 8], strides = [1, 1]} : vector<16x72xf32> to vector<16x8xf32>
    %34 = arith.truncf %33 : vector<16x8xf32> to vector<16x8xbf16>
    %cst_16 = arith.constant dense<0.000000e+00> : vector<16x80xf32>
    %35 = tpu.matmul %34, %32, %cst_16 {dimension_numbers = #tpu.dot_dimension_numbers<[1], [0], [0], [1], [0, 0, 1, 1], [], []>} : vector<16x8xbf16>, vector<8x80xbf16>, vector<16x80xf32> -> vector<16x80xf32>
    %36 = arith.addf %29, %35 : vector<16x80xf32>
    %c0_17 = arith.constant 0 : index
    %c0_18 = arith.constant 0 : index
    %c12 = arith.constant 12 : index
    %37 = vector.load %arg1[%c0_17, %c0_18, %c12] : memref<1x8x110xf32, #tpu.memory_space<vmem>>, vector<1x8x80xf32>
    %38 = vector.shape_cast %37 : vector<1x8x80xf32> to vector<8x80xf32>
    %39 = arith.truncf %38 : vector<8x80xf32> to vector<8x80xbf16>
    %40 = vector.extract_strided_slice %0 {offsets = [0, 40], sizes = [16, 8], strides = [1, 1]} : vector<16x72xf32> to vector<16x8xf32>
    %41 = arith.truncf %40 : vector<16x8xf32> to vector<16x8xbf16>
    %cst_19 = arith.constant dense<0.000000e+00> : vector<16x80xf32>
    %42 = tpu.matmul %41, %39, %cst_19 {dimension_numbers = #tpu.dot_dimension_numbers<[1], [0], [0], [1], [0, 0, 1, 1], [], []>} : vector<16x8xbf16>, vector<8x80xbf16>, vector<16x80xf32> -> vector<16x80xf32>
    %43 = arith.addf %36, %42 : vector<16x80xf32>
    %c0_20 = arith.constant 0 : index
    %c0_21 = arith.constant 0 : index
    %c20 = arith.constant 20 : index
    %44 = vector.load %arg1[%c0_20, %c0_21, %c20] : memref<1x8x110xf32, #tpu.memory_space<vmem>>, vector<1x8x80xf32>
    %45 = vector.shape_cast %44 : vector<1x8x80xf32> to vector<8x80xf32>
    %46 = arith.truncf %45 : vector<8x80xf32> to vector<8x80xbf16>
    %47 = vector.extract_strided_slice %0 {offsets = [0, 48], sizes = [16, 8], strides = [1, 1]} : vector<16x72xf32> to vector<16x8xf32>
    %48 = arith.truncf %47 : vector<16x8xf32> to vector<16x8xbf16>
    %cst_22 = arith.constant dense<0.000000e+00> : vector<16x80xf32>
    %49 = tpu.matmul %48, %46, %cst_22 {dimension_numbers = #tpu.dot_dimension_numbers<[1], [0], [0], [1], [0, 0, 1, 1], [], []>} : vector<16x8xbf16>, vector<8x80xbf16>, vector<16x80xf32> -> vector<16x80xf32>
    %50 = arith.addf %43, %49 : vector<16x80xf32>
    %c0_23 = arith.constant 0 : index
    %c0_24 = arith.constant 0 : index
    %c21 = arith.constant 21 : index
    %51 = vector.load %arg1[%c0_23, %c0_24, %c21] : memref<1x8x110xf32, #tpu.memory_space<vmem>>, vector<1x8x80xf32>
    %52 = vector.shape_cast %51 : vector<1x8x80xf32> to vector<8x80xf32>
    %53 = arith.truncf %52 : vector<8x80xf32> to vector<8x80xbf16>
    %54 = vector.extract_strided_slice %0 {offsets = [0, 56], sizes = [16, 8], strides = [1, 1]} : vector<16x72xf32> to vector<16x8xf32>
    %55 = arith.truncf %54 : vector<16x8xf32> to vector<16x8xbf16>
    %cst_25 = arith.constant dense<0.000000e+00> : vector<16x80xf32>
    %56 = tpu.matmul %55, %53, %cst_25 {dimension_numbers = #tpu.dot_dimension_numbers<[1], [0], [0], [1], [0, 0, 1, 1], [], []>} : vector<16x8xbf16>, vector<8x80xbf16>, vector<16x80xf32> -> vector<16x80xf32>
    %57 = arith.addf %50, %56 : vector<16x80xf32>
    %c0_26 = arith.constant 0 : index
    %c0_27 = arith.constant 0 : index
    %c22 = arith.constant 22 : index
    %58 = vector.load %arg1[%c0_26, %c0_27, %c22] : memref<1x8x110xf32, #tpu.memory_space<vmem>>, vector<1x8x80xf32>
    %59 = vector.shape_cast %58 : vector<1x8x80xf32> to vector<8x80xf32>
    %60 = arith.truncf %59 : vector<8x80xf32> to vector<8x80xbf16>
    %61 = vector.extract_strided_slice %0 {offsets = [0, 64], sizes = [16, 8], strides = [1, 1]} : vector<16x72xf32> to vector<16x8xf32>
    %62 = arith.truncf %61 : vector<16x8xf32> to vector<16x8xbf16>
    %cst_28 = arith.constant dense<0.000000e+00> : vector<16x80xf32>
    %63 = tpu.matmul %62, %60, %cst_28 {dimension_numbers = #tpu.dot_dimension_numbers<[1], [0], [0], [1], [0, 0, 1, 1], [], []>} : vector<16x8xbf16>, vector<8x80xbf16>, vector<16x80xf32> -> vector<16x80xf32>
    %64 = arith.addf %57, %63 : vector<16x80xf32>
    %c0_29 = arith.constant 0 : index
    %c0_30 = arith.constant 0 : index
    %65 = vector.load %arg3[%c0_29, %c0_30] : memref<16x1xf32, #tpu.memory_space<vmem>>, vector<16x1xf32>
    %66 = vector.broadcast %65 : vector<16x1xf32> to vector<16x80xf32>
    %67 = arith.addf %64, %66 : vector<16x80xf32>
    %cst_31 = arith.constant 0.000000e+00 : f32
    %68 = vector.broadcast %cst_31 : f32 to vector<16x80xf32>
    %69 = arith.maximumf %67, %68 : vector<16x80xf32>
    %70 = tpu.iota {dimensions = array<i32: 0>} : vector<80x16xi32>
    %c0_32 = arith.constant 0 : index
    %c0_33 = arith.constant 0 : index
    %71 = vector.load %arg4[%c0_32, %c0_33] : memref<1x16xi32, #tpu.memory_space<vmem>>, vector<1x16xi32>
    %c0_i32 = arith.constant 0 : i32
    %72 = vector.broadcast %c0_i32 : i32 to vector<1x16xi32>
    %73 = arith.addi %71, %72 : vector<1x16xi32>
    %74 = vector.broadcast %73 : vector<1x16xi32> to vector<80x16xi32>
    %75 = arith.cmpi eq, %70, %74 : vector<80x16xi32>
    %76 = arith.extui %75 : vector<80x16xi1> to vector<80x16xi32>
    %77 = arith.sitofp %76 : vector<80x16xi32> to vector<80x16xf32>
    %cst_34 = arith.constant dense<0.000000e+00> : vector<16x16xf32>
    %78 = tpu.matmul %69, %77, %cst_34 {dimension_numbers = #tpu.dot_dimension_numbers<[1], [0], [0], [1], [0, 0, 1, 1], [], []>} : vector<16x80xf32>, vector<80x16xf32>, vector<16x16xf32> -> vector<16x16xf32>
    %c1_i32 = arith.constant 1 : i32
    %79 = vector.broadcast %c1_i32 : i32 to vector<1x16xi32>
    %80 = arith.addi %71, %79 : vector<1x16xi32>
    %81 = vector.broadcast %80 : vector<1x16xi32> to vector<80x16xi32>
    %82 = arith.cmpi eq, %70, %81 : vector<80x16xi32>
    %83 = arith.extui %82 : vector<80x16xi1> to vector<80x16xi32>
    %84 = arith.sitofp %83 : vector<80x16xi32> to vector<80x16xf32>
    %cst_35 = arith.constant dense<0.000000e+00> : vector<16x16xf32>
    %85 = tpu.matmul %69, %84, %cst_35 {dimension_numbers = #tpu.dot_dimension_numbers<[1], [0], [0], [1], [0, 0, 1, 1], [], []>} : vector<16x80xf32>, vector<80x16xf32>, vector<16x16xf32> -> vector<16x16xf32>
    %c10_i32 = arith.constant 10 : i32
    %86 = vector.broadcast %c10_i32 : i32 to vector<1x16xi32>
    %87 = arith.addi %71, %86 : vector<1x16xi32>
    %88 = vector.broadcast %87 : vector<1x16xi32> to vector<80x16xi32>
    %89 = arith.cmpi eq, %70, %88 : vector<80x16xi32>
    %90 = arith.extui %89 : vector<80x16xi1> to vector<80x16xi32>
    %91 = arith.sitofp %90 : vector<80x16xi32> to vector<80x16xf32>
    %cst_36 = arith.constant dense<0.000000e+00> : vector<16x16xf32>
    %92 = tpu.matmul %69, %91, %cst_36 {dimension_numbers = #tpu.dot_dimension_numbers<[1], [0], [0], [1], [0, 0, 1, 1], [], []>} : vector<16x80xf32>, vector<80x16xf32>, vector<16x16xf32> -> vector<16x16xf32>
    %c11_i32 = arith.constant 11 : i32
    %93 = vector.broadcast %c11_i32 : i32 to vector<1x16xi32>
    %94 = arith.addi %71, %93 : vector<1x16xi32>
    %95 = vector.broadcast %94 : vector<1x16xi32> to vector<80x16xi32>
    %96 = arith.cmpi eq, %70, %95 : vector<80x16xi32>
    %97 = arith.extui %96 : vector<80x16xi1> to vector<80x16xi32>
    %98 = arith.sitofp %97 : vector<80x16xi32> to vector<80x16xf32>
    %cst_37 = arith.constant dense<0.000000e+00> : vector<16x16xf32>
    %99 = tpu.matmul %69, %98, %cst_37 {dimension_numbers = #tpu.dot_dimension_numbers<[1], [0], [0], [1], [0, 0, 1, 1], [], []>} : vector<16x80xf32>, vector<80x16xf32>, vector<16x16xf32> -> vector<16x16xf32>
    %c0_38 = arith.constant 0 : index
    %c0_39 = arith.constant 0 : index
    %100 = vector.load %arg5[%c0_38, %c0_39] : memref<1x16xi32, #tpu.memory_space<vmem>>, vector<1x16xi32>
    %101 = arith.maximumf %78, %85 : vector<16x16xf32>
    %102 = arith.cmpf oge, %78, %85 : vector<16x16xf32>
    %c1_i32_40 = arith.constant 1 : i32
    %103 = vector.broadcast %c1_i32_40 : i32 to vector<1x16xi32>
    %104 = arith.addi %100, %103 : vector<1x16xi32>
    %105 = vector.shape_cast %100 : vector<1x16xi32> to vector<1x16xi32>
    %106 = vector.broadcast %105 : vector<1x16xi32> to vector<16x16xi32>
    %107 = vector.shape_cast %104 : vector<1x16xi32> to vector<1x16xi32>
    %108 = vector.broadcast %107 : vector<1x16xi32> to vector<16x16xi32>
    %109 = arith.select %102, %106, %108 : vector<16x16xi1>, vector<16x16xi32>
    %110 = arith.maximumf %92, %99 : vector<16x16xf32>
    %111 = arith.cmpf oge, %92, %99 : vector<16x16xf32>
    %c8_i32 = arith.constant 8 : i32
    %112 = vector.broadcast %c8_i32 : i32 to vector<1x16xi32>
    %113 = arith.addi %100, %112 : vector<1x16xi32>
    %c8_i32_41 = arith.constant 8 : i32
    %114 = vector.broadcast %c8_i32_41 : i32 to vector<1x16xi32>
    %115 = arith.addi %100, %114 : vector<1x16xi32>
    %c1_i32_42 = arith.constant 1 : i32
    %116 = vector.broadcast %c1_i32_42 : i32 to vector<1x16xi32>
    %117 = arith.addi %115, %116 : vector<1x16xi32>
    %118 = vector.shape_cast %113 : vector<1x16xi32> to vector<1x16xi32>
    %119 = vector.broadcast %118 : vector<1x16xi32> to vector<16x16xi32>
    %120 = vector.shape_cast %117 : vector<1x16xi32> to vector<1x16xi32>
    %121 = vector.broadcast %120 : vector<1x16xi32> to vector<16x16xi32>
    %122 = arith.select %111, %119, %121 : vector<16x16xi1>, vector<16x16xi32>
    %123 = arith.cmpf oge, %101, %110 : vector<16x16xf32>
    %124 = arith.select %123, %101, %110 : vector<16x16xi1>, vector<16x16xf32>
    %c0_43 = arith.constant 0 : index
    %c0_44 = arith.constant 0 : index
    %c0_45 = arith.constant 0 : index
    %125 = vector.load %arg6[%c0_43, %c0_44, %c0_45] : memref<1x16x16xf32, #tpu.memory_space<vmem>>, vector<1x16x16xf32>
    %126 = vector.shape_cast %125 : vector<1x16x16xf32> to vector<16x16xf32>
    %127 = vector.shape_cast %124 : vector<16x16xf32> to vector<1x16x16xf32>
    tpu.vector_store %arg6[%c0_43, %c0_44, %c0_45], %127 {strides = array<i32>} : memref<1x16x16xf32, #tpu.memory_space<vmem>>, vector<1x16x16xf32>,
    %128 = arith.cmpf oge, %101, %110 : vector<16x16xf32>
    %129 = arith.select %128, %109, %122 : vector<16x16xi1>, vector<16x16xi32>
    %c0_46 = arith.constant 0 : index
    %c0_47 = arith.constant 0 : index
    %c0_48 = arith.constant 0 : index
    %130 = vector.load %arg7[%c0_46, %c0_47, %c0_48] : memref<1x16x16xi32, #tpu.memory_space<vmem>>, vector<1x16x16xi32>
    %131 = vector.shape_cast %130 : vector<1x16x16xi32> to vector<16x16xi32>
    %132 = vector.shape_cast %129 : vector<16x16xi32> to vector<1x16x16xi32>
    tpu.vector_store %arg7[%c0_46, %c0_47, %c0_48], %132 {strides = array<i32>} : memref<1x16x16xi32, #tpu.memory_space<vmem>>, vector<1x16x16xi32>,
    return
  }
  func.func @transform_0(%arg0: i32) -> (i32, i32, i32) {
    %c0_i32 = arith.constant 0 : i32
    %c0_i32_0 = arith.constant 0 : i32
    %c0_i32_1 = arith.constant 0 : i32
    return %arg0, %c0_i32, %c0_i32_0 : i32, i32, i32
  }
  func.func @transform_1(%arg0: i32) -> (i32, i32) {
    %c0_i32 = arith.constant 0 : i32
    %c0_i32_0 = arith.constant 0 : i32
    %c0_i32_1 = arith.constant 0 : i32
    return %c0_i32, %c0_i32_0 : i32, i32
  }
  func.func @transform_2(%arg0: i32) -> (i32, i32) {
    %c0_i32 = arith.constant 0 : i32
    %c0_i32_0 = arith.constant 0 : i32
    %c0_i32_1 = arith.constant 0 : i32
    return %c0_i32, %c0_i32_0 : i32, i32
  }
  func.func @transform_3(%arg0: i32) -> (i32, i32) {
    %c0_i32 = arith.constant 0 : i32
    %c0_i32_0 = arith.constant 0 : i32
    %c0_i32_1 = arith.constant 0 : i32
    return %c0_i32, %c0_i32_0 : i32, i32
  }
  func.func @transform_4(%arg0: i32) -> (i32, i32) {
    %c0_i32 = arith.constant 0 : i32
    %c0_i32_0 = arith.constant 0 : i32
    %c0_i32_1 = arith.constant 0 : i32
    return %c0_i32, %c0_i32_0 : i32, i32
  }
  func.func @transform_5(%arg0: i32) -> (i32, i32, i32) {
    %c0_i32 = arith.constant 0 : i32
    %c0_i32_0 = arith.constant 0 : i32
    %c0_i32_1 = arith.constant 0 : i32
    return %arg0, %c0_i32, %c0_i32_0 : i32, i32, i32
  }
  func.func @transform_6(%arg0: i32) -> (i32, i32, i32) {
    %c0_i32 = arith.constant 0 : i32
    %c0_i32_0 = arith.constant 0 : i32
    %c0_i32_1 = arith.constant 0 : i32
    return %arg0, %c0_i32, %c0_i32_0 : i32, i32, i32
  }
}

module attributes {stable_mosaic.version = 11 : i64} {
  func.func @_bottleneck_kernel(%arg0: memref<2x256xf32, #tpu.memory_space<vmem>>, %arg1: memref<256x32xf32, #tpu.memory_space<vmem>>, %arg2: memref<1x32xf32, #tpu.memory_space<vmem>>, %arg3: memref<2x16xf32, #tpu.memory_space<vmem>>, %arg4: memref<16x256xf32, #tpu.memory_space<vmem>>, %arg5: memref<1x256xf32, #tpu.memory_space<vmem>>, %arg6: memref<2x16xf32, #tpu.memory_space<vmem>>, %arg7: memref<2x16xf32, #tpu.memory_space<vmem>>, %arg8: memref<2x256xf32, #tpu.memory_space<vmem>>) attributes {dimension_semantics = [], scalar_prefetch = 0 : i64, scratch_operands = 0 : i64, tpu.core_type = #tpu.core_type<tc>} {
    %c0 = arith.constant 0 : index
    %c0_0 = arith.constant 0 : index
    %0 = vector.load %arg0[%c0, %c0_0] : memref<2x256xf32, #tpu.memory_space<vmem>>, vector<2x256xf32>
    %1 = arith.truncf %0 : vector<2x256xf32> to vector<2x256xbf16>
    %c0_1 = arith.constant 0 : index
    %c0_2 = arith.constant 0 : index
    %2 = vector.load %arg1[%c0_1, %c0_2] : memref<256x32xf32, #tpu.memory_space<vmem>>, vector<256x32xf32>
    %3 = arith.truncf %2 : vector<256x32xf32> to vector<256x32xbf16>
    %cst = arith.constant dense<0.000000e+00> : vector<2x32xf32>
    %4 = tpu.matmul %1, %3, %cst {dimension_numbers = #tpu.dot_dimension_numbers<[1], [0], [0], [1], [0, 0, 1, 1], [], []>} : vector<2x256xbf16>, vector<256x32xbf16>, vector<2x32xf32> -> vector<2x32xf32>
    %c0_3 = arith.constant 0 : index
    %c0_4 = arith.constant 0 : index
    %5 = vector.load %arg2[%c0_3, %c0_4] : memref<1x32xf32, #tpu.memory_space<vmem>>, vector<1x32xf32>
    %6 = vector.broadcast %5 : vector<1x32xf32> to vector<2x32xf32>
    %7 = arith.addf %4, %6 : vector<2x32xf32>
    %8 = vector.extract_strided_slice %7 {offsets = [0, 0], sizes = [2, 16], strides = [1, 1]} : vector<2x32xf32> to vector<2x16xf32>
    %9 = vector.extract_strided_slice %7 {offsets = [0, 16], sizes = [2, 16], strides = [1, 1]} : vector<2x32xf32> to vector<2x16xf32>
    %10 = math.exp %9 : vector<2x16xf32>
    %c0_5 = arith.constant 0 : index
    %c0_6 = arith.constant 0 : index
    %11 = vector.load %arg3[%c0_5, %c0_6] : memref<2x16xf32, #tpu.memory_space<vmem>>, vector<2x16xf32>
    %12 = arith.mulf %10, %11 : vector<2x16xf32>
    %13 = arith.addf %8, %12 : vector<2x16xf32>
    %14 = arith.truncf %13 : vector<2x16xf32> to vector<2x16xbf16>
    %c0_7 = arith.constant 0 : index
    %c0_8 = arith.constant 0 : index
    %15 = vector.load %arg4[%c0_7, %c0_8] : memref<16x256xf32, #tpu.memory_space<vmem>>, vector<16x256xf32>
    %16 = arith.truncf %15 : vector<16x256xf32> to vector<16x256xbf16>
    %cst_9 = arith.constant dense<0.000000e+00> : vector<2x256xf32>
    %17 = tpu.matmul %14, %16, %cst_9 {dimension_numbers = #tpu.dot_dimension_numbers<[1], [0], [0], [1], [0, 0, 1, 1], [], []>} : vector<2x16xbf16>, vector<16x256xbf16>, vector<2x256xf32> -> vector<2x256xf32>
    %c0_10 = arith.constant 0 : index
    %c0_11 = arith.constant 0 : index
    %18 = vector.load %arg5[%c0_10, %c0_11] : memref<1x256xf32, #tpu.memory_space<vmem>>, vector<1x256xf32>
    %19 = vector.broadcast %18 : vector<1x256xf32> to vector<2x256xf32>
    %20 = arith.addf %17, %19 : vector<2x256xf32>
    %c0_12 = arith.constant 0 : index
    %c0_13 = arith.constant 0 : index
    %21 = vector.load %arg6[%c0_12, %c0_13] : memref<2x16xf32, #tpu.memory_space<vmem>>, vector<2x16xf32>
    tpu.vector_store %arg6[%c0_12, %c0_13], %8 {strides = array<i32>} : memref<2x16xf32, #tpu.memory_space<vmem>>, vector<2x16xf32>,
    %c0_14 = arith.constant 0 : index
    %c0_15 = arith.constant 0 : index
    %22 = vector.load %arg7[%c0_14, %c0_15] : memref<2x16xf32, #tpu.memory_space<vmem>>, vector<2x16xf32>
    tpu.vector_store %arg7[%c0_14, %c0_15], %9 {strides = array<i32>} : memref<2x16xf32, #tpu.memory_space<vmem>>, vector<2x16xf32>,
    %c0_16 = arith.constant 0 : index
    %c0_17 = arith.constant 0 : index
    %23 = vector.load %arg8[%c0_16, %c0_17] : memref<2x256xf32, #tpu.memory_space<vmem>>, vector<2x256xf32>
    tpu.vector_store %arg8[%c0_16, %c0_17], %20 {strides = array<i32>} : memref<2x256xf32, #tpu.memory_space<vmem>>, vector<2x256xf32>,
    return
  }
}

module attributes {stable_mosaic.version = 11 : i64} {
  func.func @_dec_unpool_conv_kernel(%arg0: i32, %arg1: memref<1x16x16xf32, #tpu.memory_space<vmem>>, %arg2: memref<1x16x16xi32, #tpu.memory_space<vmem>>, %arg3: memref<1x110xi32, #tpu.memory_space<vmem>>, %arg4: memref<1x110xi32, #tpu.memory_space<vmem>>, %arg5: memref<8x144xf32, #tpu.memory_space<vmem>>, %arg6: memref<8x1xf32, #tpu.memory_space<vmem>>, %arg7: memref<1x8x64xf32, #tpu.memory_space<vmem>>) attributes {dimension_semantics = [#tpu.dimension_semantics<parallel>], iteration_bounds = array<i64: 2>, scalar_prefetch = 0 : i64, scratch_operands = 0 : i64, tpu.core_type = #tpu.core_type<tc>, window_params = [{transform_indices = @transform_0, window_bounds = array<i64: 1, 16, 16>}, {transform_indices = @transform_1, window_bounds = array<i64: 1, 16, 16>}, {pipeline_mode = #tpu.pipeline_mode<synchronous>, transform_indices = @transform_2, window_bounds = array<i64: 1, 110>}, {pipeline_mode = #tpu.pipeline_mode<synchronous>, transform_indices = @transform_3, window_bounds = array<i64: 1, 110>}, {pipeline_mode = #tpu.pipeline_mode<synchronous>, transform_indices = @transform_4, window_bounds = array<i64: 8, 144>}, {pipeline_mode = #tpu.pipeline_mode<synchronous>, transform_indices = @transform_5, window_bounds = array<i64: 8, 1>}, {transform_indices = @transform_6, window_bounds = array<i64: 1, 8, 64>}]} {
    %c0 = arith.constant 0 : index
    %c0_0 = arith.constant 0 : index
    %c0_1 = arith.constant 0 : index
    %0 = vector.load %arg1[%c0, %c0_0, %c0_1] : memref<1x16x16xf32, #tpu.memory_space<vmem>>, vector<1x16x16xf32>
    %1 = vector.shape_cast %0 : vector<1x16x16xf32> to vector<16x16xf32>
    %c0_2 = arith.constant 0 : index
    %c0_3 = arith.constant 0 : index
    %c0_4 = arith.constant 0 : index
    %2 = vector.load %arg2[%c0_2, %c0_3, %c0_4] : memref<1x16x16xi32, #tpu.memory_space<vmem>>, vector<1x16x16xi32>
    %3 = vector.shape_cast %2 : vector<1x16x16xi32> to vector<16x16xi32>
    %4 = arith.sitofp %3 : vector<16x16xi32> to vector<16x16xf32>
    %c0_5 = arith.constant 0 : index
    %c0_6 = arith.constant 0 : index
    %5 = vector.load %arg3[%c0_5, %c0_6] : memref<1x110xi32, #tpu.memory_space<vmem>>, vector<1x110xi32>
    %c0_7 = arith.constant 0 : index
    %c0_8 = arith.constant 0 : index
    %6 = vector.load %arg4[%c0_7, %c0_8] : memref<1x110xi32, #tpu.memory_space<vmem>>, vector<1x110xi32>
    %7 = tpu.iota {dimensions = array<i32: 0>} : vector<16x110xi32>
    %8 = vector.broadcast %5 : vector<1x110xi32> to vector<16x110xi32>
    %9 = arith.cmpi eq, %7, %8 : vector<16x110xi32>
    %10 = arith.extui %9 : vector<16x110xi1> to vector<16x110xi32>
    %11 = arith.sitofp %10 : vector<16x110xi32> to vector<16x110xf32>
    %cst = arith.constant dense<0.000000e+00> : vector<16x110xf32>
    %12 = tpu.matmul %1, %11, %cst {dimension_numbers = #tpu.dot_dimension_numbers<[1], [0], [0], [1], [0, 0, 1, 1], [], []>} : vector<16x16xf32>, vector<16x110xf32>, vector<16x110xf32> -> vector<16x110xf32>
    %cst_9 = arith.constant dense<0.000000e+00> : vector<16x110xf32>
    %13 = tpu.matmul %4, %11, %cst_9 {dimension_numbers = #tpu.dot_dimension_numbers<[1], [0], [0], [1], [0, 0, 1, 1], [], []>} : vector<16x16xf32>, vector<16x110xf32>, vector<16x110xf32> -> vector<16x110xf32>
    %14 = arith.fptosi %13 : vector<16x110xf32> to vector<16x110xi32>
    %15 = vector.broadcast %6 : vector<1x110xi32> to vector<16x110xi32>
    %16 = arith.cmpi eq, %14, %15 : vector<16x110xi32>
    %cst_10 = arith.constant 0.000000e+00 : f32
    %17 = vector.broadcast %cst_10 : f32 to vector<16x110xf32>
    %18 = arith.select %16, %12, %17 : vector<16x110xi1>, vector<16x110xf32>
    %c0_11 = arith.constant 0 : index
    %c0_12 = arith.constant 0 : index
    %19 = vector.load %arg5[%c0_11, %c0_12] : memref<8x144xf32, #tpu.memory_space<vmem>>, vector<8x144xf32>
    %cst_13 = arith.constant 0.000000e+00 : f32
    %20 = vector.broadcast %cst_13 : f32 to vector<8x80xf32>
    %21 = vector.extract_strided_slice %18 {offsets = [0, 0], sizes = [16, 80], strides = [1, 1]} : vector<16x110xf32> to vector<16x80xf32>
    %22 = arith.truncf %21 : vector<16x80xf32> to vector<16x80xbf16>
    %23 = vector.extract_strided_slice %19 {offsets = [0, 0], sizes = [8, 16], strides = [1, 1]} : vector<8x144xf32> to vector<8x16xf32>
    %24 = arith.truncf %23 : vector<8x16xf32> to vector<8x16xbf16>
    %cst_14 = arith.constant dense<0.000000e+00> : vector<8x80xf32>
    %25 = tpu.matmul %24, %22, %cst_14 {dimension_numbers = #tpu.dot_dimension_numbers<[1], [0], [0], [1], [0, 0, 1, 1], [], []>} : vector<8x16xbf16>, vector<16x80xbf16>, vector<8x80xf32> -> vector<8x80xf32>
    %26 = arith.addf %20, %25 : vector<8x80xf32>
    %27 = vector.extract_strided_slice %18 {offsets = [0, 1], sizes = [16, 80], strides = [1, 1]} : vector<16x110xf32> to vector<16x80xf32>
    %28 = arith.truncf %27 : vector<16x80xf32> to vector<16x80xbf16>
    %29 = vector.extract_strided_slice %19 {offsets = [0, 16], sizes = [8, 16], strides = [1, 1]} : vector<8x144xf32> to vector<8x16xf32>
    %30 = arith.truncf %29 : vector<8x16xf32> to vector<8x16xbf16>
    %cst_15 = arith.constant dense<0.000000e+00> : vector<8x80xf32>
    %31 = tpu.matmul %30, %28, %cst_15 {dimension_numbers = #tpu.dot_dimension_numbers<[1], [0], [0], [1], [0, 0, 1, 1], [], []>} : vector<8x16xbf16>, vector<16x80xbf16>, vector<8x80xf32> -> vector<8x80xf32>
    %32 = arith.addf %26, %31 : vector<8x80xf32>
    %33 = vector.extract_strided_slice %18 {offsets = [0, 2], sizes = [16, 80], strides = [1, 1]} : vector<16x110xf32> to vector<16x80xf32>
    %34 = arith.truncf %33 : vector<16x80xf32> to vector<16x80xbf16>
    %35 = vector.extract_strided_slice %19 {offsets = [0, 32], sizes = [8, 16], strides = [1, 1]} : vector<8x144xf32> to vector<8x16xf32>
    %36 = arith.truncf %35 : vector<8x16xf32> to vector<8x16xbf16>
    %cst_16 = arith.constant dense<0.000000e+00> : vector<8x80xf32>
    %37 = tpu.matmul %36, %34, %cst_16 {dimension_numbers = #tpu.dot_dimension_numbers<[1], [0], [0], [1], [0, 0, 1, 1], [], []>} : vector<8x16xbf16>, vector<16x80xbf16>, vector<8x80xf32> -> vector<8x80xf32>
    %38 = arith.addf %32, %37 : vector<8x80xf32>
    %39 = vector.extract_strided_slice %18 {offsets = [0, 10], sizes = [16, 80], strides = [1, 1]} : vector<16x110xf32> to vector<16x80xf32>
    %40 = arith.truncf %39 : vector<16x80xf32> to vector<16x80xbf16>
    %41 = vector.extract_strided_slice %19 {offsets = [0, 48], sizes = [8, 16], strides = [1, 1]} : vector<8x144xf32> to vector<8x16xf32>
    %42 = arith.truncf %41 : vector<8x16xf32> to vector<8x16xbf16>
    %cst_17 = arith.constant dense<0.000000e+00> : vector<8x80xf32>
    %43 = tpu.matmul %42, %40, %cst_17 {dimension_numbers = #tpu.dot_dimension_numbers<[1], [0], [0], [1], [0, 0, 1, 1], [], []>} : vector<8x16xbf16>, vector<16x80xbf16>, vector<8x80xf32> -> vector<8x80xf32>
    %44 = arith.addf %38, %43 : vector<8x80xf32>
    %45 = vector.extract_strided_slice %18 {offsets = [0, 11], sizes = [16, 80], strides = [1, 1]} : vector<16x110xf32> to vector<16x80xf32>
    %46 = arith.truncf %45 : vector<16x80xf32> to vector<16x80xbf16>
    %47 = vector.extract_strided_slice %19 {offsets = [0, 64], sizes = [8, 16], strides = [1, 1]} : vector<8x144xf32> to vector<8x16xf32>
    %48 = arith.truncf %47 : vector<8x16xf32> to vector<8x16xbf16>
    %cst_18 = arith.constant dense<0.000000e+00> : vector<8x80xf32>
    %49 = tpu.matmul %48, %46, %cst_18 {dimension_numbers = #tpu.dot_dimension_numbers<[1], [0], [0], [1], [0, 0, 1, 1], [], []>} : vector<8x16xbf16>, vector<16x80xbf16>, vector<8x80xf32> -> vector<8x80xf32>
    %50 = arith.addf %44, %49 : vector<8x80xf32>
    %51 = vector.extract_strided_slice %18 {offsets = [0, 12], sizes = [16, 80], strides = [1, 1]} : vector<16x110xf32> to vector<16x80xf32>
    %52 = arith.truncf %51 : vector<16x80xf32> to vector<16x80xbf16>
    %53 = vector.extract_strided_slice %19 {offsets = [0, 80], sizes = [8, 16], strides = [1, 1]} : vector<8x144xf32> to vector<8x16xf32>
    %54 = arith.truncf %53 : vector<8x16xf32> to vector<8x16xbf16>
    %cst_19 = arith.constant dense<0.000000e+00> : vector<8x80xf32>
    %55 = tpu.matmul %54, %52, %cst_19 {dimension_numbers = #tpu.dot_dimension_numbers<[1], [0], [0], [1], [0, 0, 1, 1], [], []>} : vector<8x16xbf16>, vector<16x80xbf16>, vector<8x80xf32> -> vector<8x80xf32>
    %56 = arith.addf %50, %55 : vector<8x80xf32>
    %57 = vector.extract_strided_slice %18 {offsets = [0, 20], sizes = [16, 80], strides = [1, 1]} : vector<16x110xf32> to vector<16x80xf32>
    %58 = arith.truncf %57 : vector<16x80xf32> to vector<16x80xbf16>
    %59 = vector.extract_strided_slice %19 {offsets = [0, 96], sizes = [8, 16], strides = [1, 1]} : vector<8x144xf32> to vector<8x16xf32>
    %60 = arith.truncf %59 : vector<8x16xf32> to vector<8x16xbf16>
    %cst_20 = arith.constant dense<0.000000e+00> : vector<8x80xf32>
    %61 = tpu.matmul %60, %58, %cst_20 {dimension_numbers = #tpu.dot_dimension_numbers<[1], [0], [0], [1], [0, 0, 1, 1], [], []>} : vector<8x16xbf16>, vector<16x80xbf16>, vector<8x80xf32> -> vector<8x80xf32>
    %62 = arith.addf %56, %61 : vector<8x80xf32>
    %63 = vector.extract_strided_slice %18 {offsets = [0, 21], sizes = [16, 80], strides = [1, 1]} : vector<16x110xf32> to vector<16x80xf32>
    %64 = arith.truncf %63 : vector<16x80xf32> to vector<16x80xbf16>
    %65 = vector.extract_strided_slice %19 {offsets = [0, 112], sizes = [8, 16], strides = [1, 1]} : vector<8x144xf32> to vector<8x16xf32>
    %66 = arith.truncf %65 : vector<8x16xf32> to vector<8x16xbf16>
    %cst_21 = arith.constant dense<0.000000e+00> : vector<8x80xf32>
    %67 = tpu.matmul %66, %64, %cst_21 {dimension_numbers = #tpu.dot_dimension_numbers<[1], [0], [0], [1], [0, 0, 1, 1], [], []>} : vector<8x16xbf16>, vector<16x80xbf16>, vector<8x80xf32> -> vector<8x80xf32>
    %68 = arith.addf %62, %67 : vector<8x80xf32>
    %69 = vector.extract_strided_slice %18 {offsets = [0, 22], sizes = [16, 80], strides = [1, 1]} : vector<16x110xf32> to vector<16x80xf32>
    %70 = arith.truncf %69 : vector<16x80xf32> to vector<16x80xbf16>
    %71 = vector.extract_strided_slice %19 {offsets = [0, 128], sizes = [8, 16], strides = [1, 1]} : vector<8x144xf32> to vector<8x16xf32>
    %72 = arith.truncf %71 : vector<8x16xf32> to vector<8x16xbf16>
    %cst_22 = arith.constant dense<0.000000e+00> : vector<8x80xf32>
    %73 = tpu.matmul %72, %70, %cst_22 {dimension_numbers = #tpu.dot_dimension_numbers<[1], [0], [0], [1], [0, 0, 1, 1], [], []>} : vector<8x16xbf16>, vector<16x80xbf16>, vector<8x80xf32> -> vector<8x80xf32>
    %74 = arith.addf %68, %73 : vector<8x80xf32>
    %c0_23 = arith.constant 0 : index
    %c0_24 = arith.constant 0 : index
    %75 = vector.load %arg6[%c0_23, %c0_24] : memref<8x1xf32, #tpu.memory_space<vmem>>, vector<8x1xf32>
    %76 = vector.broadcast %75 : vector<8x1xf32> to vector<8x80xf32>
    %77 = arith.addf %74, %76 : vector<8x80xf32>
    %cst_25 = arith.constant 0.000000e+00 : f32
    %78 = vector.broadcast %cst_25 : f32 to vector<8x80xf32>
    %79 = arith.maximumf %77, %78 : vector<8x80xf32>
    %80 = vector.extract_strided_slice %79 {offsets = [0, 0], sizes = [8, 8], strides = [1, 1]} : vector<8x80xf32> to vector<8x8xf32>
    %c0_26 = arith.constant 0 : index
    %c0_27 = arith.constant 0 : index
    %c0_28 = arith.constant 0 : index
    %81 = vector.load %arg7[%c0_26, %c0_27, %c0_28] : memref<1x8x64xf32, #tpu.memory_space<vmem>>, vector<1x8x8xf32>
    %82 = vector.shape_cast %81 : vector<1x8x8xf32> to vector<8x8xf32>
    %83 = vector.shape_cast %80 : vector<8x8xf32> to vector<1x8x8xf32>
    tpu.vector_store %arg7[%c0_26, %c0_27, %c0_28], %83 {strides = array<i32>} : memref<1x8x64xf32, #tpu.memory_space<vmem>>, vector<1x8x8xf32>,
    %84 = vector.extract_strided_slice %79 {offsets = [0, 10], sizes = [8, 8], strides = [1, 1]} : vector<8x80xf32> to vector<8x8xf32>
    %c0_29 = arith.constant 0 : index
    %c0_30 = arith.constant 0 : index
    %c8 = arith.constant 8 : index
    %85 = vector.load %arg7[%c0_29, %c0_30, %c8] : memref<1x8x64xf32, #tpu.memory_space<vmem>>, vector<1x8x8xf32>
    %86 = vector.shape_cast %85 : vector<1x8x8xf32> to vector<8x8xf32>
    %87 = vector.shape_cast %84 : vector<8x8xf32> to vector<1x8x8xf32>
    tpu.vector_store %arg7[%c0_29, %c0_30, %c8], %87 {strides = array<i32>} : memref<1x8x64xf32, #tpu.memory_space<vmem>>, vector<1x8x8xf32>,
    %88 = vector.extract_strided_slice %79 {offsets = [0, 20], sizes = [8, 8], strides = [1, 1]} : vector<8x80xf32> to vector<8x8xf32>
    %c0_31 = arith.constant 0 : index
    %c0_32 = arith.constant 0 : index
    %c16 = arith.constant 16 : index
    %89 = vector.load %arg7[%c0_31, %c0_32, %c16] : memref<1x8x64xf32, #tpu.memory_space<vmem>>, vector<1x8x8xf32>
    %90 = vector.shape_cast %89 : vector<1x8x8xf32> to vector<8x8xf32>
    %91 = vector.shape_cast %88 : vector<8x8xf32> to vector<1x8x8xf32>
    tpu.vector_store %arg7[%c0_31, %c0_32, %c16], %91 {strides = array<i32>} : memref<1x8x64xf32, #tpu.memory_space<vmem>>, vector<1x8x8xf32>,
    %92 = vector.extract_strided_slice %79 {offsets = [0, 30], sizes = [8, 8], strides = [1, 1]} : vector<8x80xf32> to vector<8x8xf32>
    %c0_33 = arith.constant 0 : index
    %c0_34 = arith.constant 0 : index
    %c24 = arith.constant 24 : index
    %93 = vector.load %arg7[%c0_33, %c0_34, %c24] : memref<1x8x64xf32, #tpu.memory_space<vmem>>, vector<1x8x8xf32>
    %94 = vector.shape_cast %93 : vector<1x8x8xf32> to vector<8x8xf32>
    %95 = vector.shape_cast %92 : vector<8x8xf32> to vector<1x8x8xf32>
    tpu.vector_store %arg7[%c0_33, %c0_34, %c24], %95 {strides = array<i32>} : memref<1x8x64xf32, #tpu.memory_space<vmem>>, vector<1x8x8xf32>,
    %96 = vector.extract_strided_slice %79 {offsets = [0, 40], sizes = [8, 8], strides = [1, 1]} : vector<8x80xf32> to vector<8x8xf32>
    %c0_35 = arith.constant 0 : index
    %c0_36 = arith.constant 0 : index
    %c32 = arith.constant 32 : index
    %97 = vector.load %arg7[%c0_35, %c0_36, %c32] : memref<1x8x64xf32, #tpu.memory_space<vmem>>, vector<1x8x8xf32>
    %98 = vector.shape_cast %97 : vector<1x8x8xf32> to vector<8x8xf32>
    %99 = vector.shape_cast %96 : vector<8x8xf32> to vector<1x8x8xf32>
    tpu.vector_store %arg7[%c0_35, %c0_36, %c32], %99 {strides = array<i32>} : memref<1x8x64xf32, #tpu.memory_space<vmem>>, vector<1x8x8xf32>,
    %100 = vector.extract_strided_slice %79 {offsets = [0, 50], sizes = [8, 8], strides = [1, 1]} : vector<8x80xf32> to vector<8x8xf32>
    %c0_37 = arith.constant 0 : index
    %c0_38 = arith.constant 0 : index
    %c40 = arith.constant 40 : index
    %101 = vector.load %arg7[%c0_37, %c0_38, %c40] : memref<1x8x64xf32, #tpu.memory_space<vmem>>, vector<1x8x8xf32>
    %102 = vector.shape_cast %101 : vector<1x8x8xf32> to vector<8x8xf32>
    %103 = vector.shape_cast %100 : vector<8x8xf32> to vector<1x8x8xf32>
    tpu.vector_store %arg7[%c0_37, %c0_38, %c40], %103 {strides = array<i32>} : memref<1x8x64xf32, #tpu.memory_space<vmem>>, vector<1x8x8xf32>,
    %104 = vector.extract_strided_slice %79 {offsets = [0, 60], sizes = [8, 8], strides = [1, 1]} : vector<8x80xf32> to vector<8x8xf32>
    %c0_39 = arith.constant 0 : index
    %c0_40 = arith.constant 0 : index
    %c48 = arith.constant 48 : index
    %105 = vector.load %arg7[%c0_39, %c0_40, %c48] : memref<1x8x64xf32, #tpu.memory_space<vmem>>, vector<1x8x8xf32>
    %106 = vector.shape_cast %105 : vector<1x8x8xf32> to vector<8x8xf32>
    %107 = vector.shape_cast %104 : vector<8x8xf32> to vector<1x8x8xf32>
    tpu.vector_store %arg7[%c0_39, %c0_40, %c48], %107 {strides = array<i32>} : memref<1x8x64xf32, #tpu.memory_space<vmem>>, vector<1x8x8xf32>,
    %108 = vector.extract_strided_slice %79 {offsets = [0, 70], sizes = [8, 8], strides = [1, 1]} : vector<8x80xf32> to vector<8x8xf32>
    %c0_41 = arith.constant 0 : index
    %c0_42 = arith.constant 0 : index
    %c56 = arith.constant 56 : index
    %109 = vector.load %arg7[%c0_41, %c0_42, %c56] : memref<1x8x64xf32, #tpu.memory_space<vmem>>, vector<1x8x8xf32>
    %110 = vector.shape_cast %109 : vector<1x8x8xf32> to vector<8x8xf32>
    %111 = vector.shape_cast %108 : vector<8x8xf32> to vector<1x8x8xf32>
    tpu.vector_store %arg7[%c0_41, %c0_42, %c56], %111 {strides = array<i32>} : memref<1x8x64xf32, #tpu.memory_space<vmem>>, vector<1x8x8xf32>,
    return
  }
  func.func @transform_0(%arg0: i32) -> (i32, i32, i32) {
    %c0_i32 = arith.constant 0 : i32
    %c0_i32_0 = arith.constant 0 : i32
    %c0_i32_1 = arith.constant 0 : i32
    return %arg0, %c0_i32, %c0_i32_0 : i32, i32, i32
  }
  func.func @transform_1(%arg0: i32) -> (i32, i32, i32) {
    %c0_i32 = arith.constant 0 : i32
    %c0_i32_0 = arith.constant 0 : i32
    %c0_i32_1 = arith.constant 0 : i32
    return %arg0, %c0_i32, %c0_i32_0 : i32, i32, i32
  }
  func.func @transform_2(%arg0: i32) -> (i32, i32) {
    %c0_i32 = arith.constant 0 : i32
    %c0_i32_0 = arith.constant 0 : i32
    %c0_i32_1 = arith.constant 0 : i32
    return %c0_i32, %c0_i32_0 : i32, i32
  }
  func.func @transform_3(%arg0: i32) -> (i32, i32) {
    %c0_i32 = arith.constant 0 : i32
    %c0_i32_0 = arith.constant 0 : i32
    %c0_i32_1 = arith.constant 0 : i32
    return %c0_i32, %c0_i32_0 : i32, i32
  }
  func.func @transform_4(%arg0: i32) -> (i32, i32) {
    %c0_i32 = arith.constant 0 : i32
    %c0_i32_0 = arith.constant 0 : i32
    %c0_i32_1 = arith.constant 0 : i32
    return %c0_i32, %c0_i32_0 : i32, i32
  }
  func.func @transform_5(%arg0: i32) -> (i32, i32) {
    %c0_i32 = arith.constant 0 : i32
    %c0_i32_0 = arith.constant 0 : i32
    %c0_i32_1 = arith.constant 0 : i32
    return %c0_i32, %c0_i32_0 : i32, i32
  }
  func.func @transform_6(%arg0: i32) -> (i32, i32, i32) {
    %c0_i32 = arith.constant 0 : i32
    %c0_i32_0 = arith.constant 0 : i32
    %c0_i32_1 = arith.constant 0 : i32
    return %arg0, %c0_i32, %c0_i32_0 : i32, i32, i32
  }
}

module attributes {stable_mosaic.version = 11 : i64} {
  func.func @_dec_unpool_conv_kernel(%arg0: i32, %arg1: memref<1x8x64xf32, #tpu.memory_space<vmem>>, %arg2: memref<1x8x64xi32, #tpu.memory_space<vmem>>, %arg3: memref<1x342xi32, #tpu.memory_space<vmem>>, %arg4: memref<1x342xi32, #tpu.memory_space<vmem>>, %arg5: memref<4x72xf32, #tpu.memory_space<vmem>>, %arg6: memref<4x1xf32, #tpu.memory_space<vmem>>, %arg7: memref<1x4x256xf32, #tpu.memory_space<vmem>>) attributes {dimension_semantics = [#tpu.dimension_semantics<parallel>], iteration_bounds = array<i64: 2>, scalar_prefetch = 0 : i64, scratch_operands = 0 : i64, tpu.core_type = #tpu.core_type<tc>, window_params = [{transform_indices = @transform_0, window_bounds = array<i64: 1, 8, 64>}, {transform_indices = @transform_1, window_bounds = array<i64: 1, 8, 64>}, {pipeline_mode = #tpu.pipeline_mode<synchronous>, transform_indices = @transform_2, window_bounds = array<i64: 1, 342>}, {pipeline_mode = #tpu.pipeline_mode<synchronous>, transform_indices = @transform_3, window_bounds = array<i64: 1, 342>}, {pipeline_mode = #tpu.pipeline_mode<synchronous>, transform_indices = @transform_4, window_bounds = array<i64: 4, 72>}, {pipeline_mode = #tpu.pipeline_mode<synchronous>, transform_indices = @transform_5, window_bounds = array<i64: 4, 1>}, {transform_indices = @transform_6, window_bounds = array<i64: 1, 4, 256>}]} {
    %c0 = arith.constant 0 : index
    %c0_0 = arith.constant 0 : index
    %c0_1 = arith.constant 0 : index
    %0 = vector.load %arg1[%c0, %c0_0, %c0_1] : memref<1x8x64xf32, #tpu.memory_space<vmem>>, vector<1x8x64xf32>
    %1 = vector.shape_cast %0 : vector<1x8x64xf32> to vector<8x64xf32>
    %c0_2 = arith.constant 0 : index
    %c0_3 = arith.constant 0 : index
    %c0_4 = arith.constant 0 : index
    %2 = vector.load %arg2[%c0_2, %c0_3, %c0_4] : memref<1x8x64xi32, #tpu.memory_space<vmem>>, vector<1x8x64xi32>
    %3 = vector.shape_cast %2 : vector<1x8x64xi32> to vector<8x64xi32>
    %4 = arith.sitofp %3 : vector<8x64xi32> to vector<8x64xf32>
    %c0_5 = arith.constant 0 : index
    %c0_6 = arith.constant 0 : index
    %5 = vector.load %arg3[%c0_5, %c0_6] : memref<1x342xi32, #tpu.memory_space<vmem>>, vector<1x342xi32>
    %c0_7 = arith.constant 0 : index
    %c0_8 = arith.constant 0 : index
    %6 = vector.load %arg4[%c0_7, %c0_8] : memref<1x342xi32, #tpu.memory_space<vmem>>, vector<1x342xi32>
    %7 = tpu.iota {dimensions = array<i32: 0>} : vector<64x342xi32>
    %8 = vector.broadcast %5 : vector<1x342xi32> to vector<64x342xi32>
    %9 = arith.cmpi eq, %7, %8 : vector<64x342xi32>
    %10 = arith.extui %9 : vector<64x342xi1> to vector<64x342xi32>
    %11 = arith.sitofp %10 : vector<64x342xi32> to vector<64x342xf32>
    %cst = arith.constant dense<0.000000e+00> : vector<8x342xf32>
    %12 = tpu.matmul %1, %11, %cst {dimension_numbers = #tpu.dot_dimension_numbers<[1], [0], [0], [1], [0, 0, 1, 1], [], []>} : vector<8x64xf32>, vector<64x342xf32>, vector<8x342xf32> -> vector<8x342xf32>
    %cst_9 = arith.constant dense<0.000000e+00> : vector<8x342xf32>
    %13 = tpu.matmul %4, %11, %cst_9 {dimension_numbers = #tpu.dot_dimension_numbers<[1], [0], [0], [1], [0, 0, 1, 1], [], []>} : vector<8x64xf32>, vector<64x342xf32>, vector<8x342xf32> -> vector<8x342xf32>
    %14 = arith.fptosi %13 : vector<8x342xf32> to vector<8x342xi32>
    %15 = vector.broadcast %6 : vector<1x342xi32> to vector<8x342xi32>
    %16 = arith.cmpi eq, %14, %15 : vector<8x342xi32>
    %cst_10 = arith.constant 0.000000e+00 : f32
    %17 = vector.broadcast %cst_10 : f32 to vector<8x342xf32>
    %18 = arith.select %16, %12, %17 : vector<8x342xi1>, vector<8x342xf32>
    %c0_11 = arith.constant 0 : index
    %c0_12 = arith.constant 0 : index
    %19 = vector.load %arg5[%c0_11, %c0_12] : memref<4x72xf32, #tpu.memory_space<vmem>>, vector<4x72xf32>
    %cst_13 = arith.constant 0.000000e+00 : f32
    %20 = vector.broadcast %cst_13 : f32 to vector<4x288xf32>
    %21 = vector.extract_strided_slice %18 {offsets = [0, 0], sizes = [8, 288], strides = [1, 1]} : vector<8x342xf32> to vector<8x288xf32>
    %22 = arith.truncf %21 : vector<8x288xf32> to vector<8x288xbf16>
    %23 = vector.extract_strided_slice %19 {offsets = [0, 0], sizes = [4, 8], strides = [1, 1]} : vector<4x72xf32> to vector<4x8xf32>
    %24 = arith.truncf %23 : vector<4x8xf32> to vector<4x8xbf16>
    %cst_14 = arith.constant dense<0.000000e+00> : vector<4x288xf32>
    %25 = tpu.matmul %24, %22, %cst_14 {dimension_numbers = #tpu.dot_dimension_numbers<[1], [0], [0], [1], [0, 0, 1, 1], [], []>} : vector<4x8xbf16>, vector<8x288xbf16>, vector<4x288xf32> -> vector<4x288xf32>
    %26 = arith.addf %20, %25 : vector<4x288xf32>
    %27 = vector.extract_strided_slice %18 {offsets = [0, 1], sizes = [8, 288], strides = [1, 1]} : vector<8x342xf32> to vector<8x288xf32>
    %28 = arith.truncf %27 : vector<8x288xf32> to vector<8x288xbf16>
    %29 = vector.extract_strided_slice %19 {offsets = [0, 8], sizes = [4, 8], strides = [1, 1]} : vector<4x72xf32> to vector<4x8xf32>
    %30 = arith.truncf %29 : vector<4x8xf32> to vector<4x8xbf16>
    %cst_15 = arith.constant dense<0.000000e+00> : vector<4x288xf32>
    %31 = tpu.matmul %30, %28, %cst_15 {dimension_numbers = #tpu.dot_dimension_numbers<[1], [0], [0], [1], [0, 0, 1, 1], [], []>} : vector<4x8xbf16>, vector<8x288xbf16>, vector<4x288xf32> -> vector<4x288xf32>
    %32 = arith.addf %26, %31 : vector<4x288xf32>
    %33 = vector.extract_strided_slice %18 {offsets = [0, 2], sizes = [8, 288], strides = [1, 1]} : vector<8x342xf32> to vector<8x288xf32>
    %34 = arith.truncf %33 : vector<8x288xf32> to vector<8x288xbf16>
    %35 = vector.extract_strided_slice %19 {offsets = [0, 16], sizes = [4, 8], strides = [1, 1]} : vector<4x72xf32> to vector<4x8xf32>
    %36 = arith.truncf %35 : vector<4x8xf32> to vector<4x8xbf16>
    %cst_16 = arith.constant dense<0.000000e+00> : vector<4x288xf32>
    %37 = tpu.matmul %36, %34, %cst_16 {dimension_numbers = #tpu.dot_dimension_numbers<[1], [0], [0], [1], [0, 0, 1, 1], [], []>} : vector<4x8xbf16>, vector<8x288xbf16>, vector<4x288xf32> -> vector<4x288xf32>
    %38 = arith.addf %32, %37 : vector<4x288xf32>
    %39 = vector.extract_strided_slice %18 {offsets = [0, 18], sizes = [8, 288], strides = [1, 1]} : vector<8x342xf32> to vector<8x288xf32>
    %40 = arith.truncf %39 : vector<8x288xf32> to vector<8x288xbf16>
    %41 = vector.extract_strided_slice %19 {offsets = [0, 24], sizes = [4, 8], strides = [1, 1]} : vector<4x72xf32> to vector<4x8xf32>
    %42 = arith.truncf %41 : vector<4x8xf32> to vector<4x8xbf16>
    %cst_17 = arith.constant dense<0.000000e+00> : vector<4x288xf32>
    %43 = tpu.matmul %42, %40, %cst_17 {dimension_numbers = #tpu.dot_dimension_numbers<[1], [0], [0], [1], [0, 0, 1, 1], [], []>} : vector<4x8xbf16>, vector<8x288xbf16>, vector<4x288xf32> -> vector<4x288xf32>
    %44 = arith.addf %38, %43 : vector<4x288xf32>
    %45 = vector.extract_strided_slice %18 {offsets = [0, 19], sizes = [8, 288], strides = [1, 1]} : vector<8x342xf32> to vector<8x288xf32>
    %46 = arith.truncf %45 : vector<8x288xf32> to vector<8x288xbf16>
    %47 = vector.extract_strided_slice %19 {offsets = [0, 32], sizes = [4, 8], strides = [1, 1]} : vector<4x72xf32> to vector<4x8xf32>
    %48 = arith.truncf %47 : vector<4x8xf32> to vector<4x8xbf16>
    %cst_18 = arith.constant dense<0.000000e+00> : vector<4x288xf32>
    %49 = tpu.matmul %48, %46, %cst_18 {dimension_numbers = #tpu.dot_dimension_numbers<[1], [0], [0], [1], [0, 0, 1, 1], [], []>} : vector<4x8xbf16>, vector<8x288xbf16>, vector<4x288xf32> -> vector<4x288xf32>
    %50 = arith.addf %44, %49 : vector<4x288xf32>
    %51 = vector.extract_strided_slice %18 {offsets = [0, 20], sizes = [8, 288], strides = [1, 1]} : vector<8x342xf32> to vector<8x288xf32>
    %52 = arith.truncf %51 : vector<8x288xf32> to vector<8x288xbf16>
    %53 = vector.extract_strided_slice %19 {offsets = [0, 40], sizes = [4, 8], strides = [1, 1]} : vector<4x72xf32> to vector<4x8xf32>
    %54 = arith.truncf %53 : vector<4x8xf32> to vector<4x8xbf16>
    %cst_19 = arith.constant dense<0.000000e+00> : vector<4x288xf32>
    %55 = tpu.matmul %54, %52, %cst_19 {dimension_numbers = #tpu.dot_dimension_numbers<[1], [0], [0], [1], [0, 0, 1, 1], [], []>} : vector<4x8xbf16>, vector<8x288xbf16>, vector<4x288xf32> -> vector<4x288xf32>
    %56 = arith.addf %50, %55 : vector<4x288xf32>
    %57 = vector.extract_strided_slice %18 {offsets = [0, 36], sizes = [8, 288], strides = [1, 1]} : vector<8x342xf32> to vector<8x288xf32>
    %58 = arith.truncf %57 : vector<8x288xf32> to vector<8x288xbf16>
    %59 = vector.extract_strided_slice %19 {offsets = [0, 48], sizes = [4, 8], strides = [1, 1]} : vector<4x72xf32> to vector<4x8xf32>
    %60 = arith.truncf %59 : vector<4x8xf32> to vector<4x8xbf16>
    %cst_20 = arith.constant dense<0.000000e+00> : vector<4x288xf32>
    %61 = tpu.matmul %60, %58, %cst_20 {dimension_numbers = #tpu.dot_dimension_numbers<[1], [0], [0], [1], [0, 0, 1, 1], [], []>} : vector<4x8xbf16>, vector<8x288xbf16>, vector<4x288xf32> -> vector<4x288xf32>
    %62 = arith.addf %56, %61 : vector<4x288xf32>
    %63 = vector.extract_strided_slice %18 {offsets = [0, 37], sizes = [8, 288], strides = [1, 1]} : vector<8x342xf32> to vector<8x288xf32>
    %64 = arith.truncf %63 : vector<8x288xf32> to vector<8x288xbf16>
    %65 = vector.extract_strided_slice %19 {offsets = [0, 56], sizes = [4, 8], strides = [1, 1]} : vector<4x72xf32> to vector<4x8xf32>
    %66 = arith.truncf %65 : vector<4x8xf32> to vector<4x8xbf16>
    %cst_21 = arith.constant dense<0.000000e+00> : vector<4x288xf32>
    %67 = tpu.matmul %66, %64, %cst_21 {dimension_numbers = #tpu.dot_dimension_numbers<[1], [0], [0], [1], [0, 0, 1, 1], [], []>} : vector<4x8xbf16>, vector<8x288xbf16>, vector<4x288xf32> -> vector<4x288xf32>
    %68 = arith.addf %62, %67 : vector<4x288xf32>
    %69 = vector.extract_strided_slice %18 {offsets = [0, 38], sizes = [8, 288], strides = [1, 1]} : vector<8x342xf32> to vector<8x288xf32>
    %70 = arith.truncf %69 : vector<8x288xf32> to vector<8x288xbf16>
    %71 = vector.extract_strided_slice %19 {offsets = [0, 64], sizes = [4, 8], strides = [1, 1]} : vector<4x72xf32> to vector<4x8xf32>
    %72 = arith.truncf %71 : vector<4x8xf32> to vector<4x8xbf16>
    %cst_22 = arith.constant dense<0.000000e+00> : vector<4x288xf32>
    %73 = tpu.matmul %72, %70, %cst_22 {dimension_numbers = #tpu.dot_dimension_numbers<[1], [0], [0], [1], [0, 0, 1, 1], [], []>} : vector<4x8xbf16>, vector<8x288xbf16>, vector<4x288xf32> -> vector<4x288xf32>
    %74 = arith.addf %68, %73 : vector<4x288xf32>
    %c0_23 = arith.constant 0 : index
    %c0_24 = arith.constant 0 : index
    %75 = vector.load %arg6[%c0_23, %c0_24] : memref<4x1xf32, #tpu.memory_space<vmem>>, vector<4x1xf32>
    %76 = vector.broadcast %75 : vector<4x1xf32> to vector<4x288xf32>
    %77 = arith.addf %74, %76 : vector<4x288xf32>
    %78 = vector.extract_strided_slice %77 {offsets = [0, 0], sizes = [4, 16], strides = [1, 1]} : vector<4x288xf32> to vector<4x16xf32>
    %c0_25 = arith.constant 0 : index
    %c0_26 = arith.constant 0 : index
    %c0_27 = arith.constant 0 : index
    %79 = vector.load %arg7[%c0_25, %c0_26, %c0_27] : memref<1x4x256xf32, #tpu.memory_space<vmem>>, vector<1x4x16xf32>
    %80 = vector.shape_cast %79 : vector<1x4x16xf32> to vector<4x16xf32>
    %81 = vector.shape_cast %78 : vector<4x16xf32> to vector<1x4x16xf32>
    tpu.vector_store %arg7[%c0_25, %c0_26, %c0_27], %81 {strides = array<i32>} : memref<1x4x256xf32, #tpu.memory_space<vmem>>, vector<1x4x16xf32>,
    %82 = vector.extract_strided_slice %77 {offsets = [0, 18], sizes = [4, 16], strides = [1, 1]} : vector<4x288xf32> to vector<4x16xf32>
    %c0_28 = arith.constant 0 : index
    %c0_29 = arith.constant 0 : index
    %c16 = arith.constant 16 : index
    %83 = vector.load %arg7[%c0_28, %c0_29, %c16] : memref<1x4x256xf32, #tpu.memory_space<vmem>>, vector<1x4x16xf32>
    %84 = vector.shape_cast %83 : vector<1x4x16xf32> to vector<4x16xf32>
    %85 = vector.shape_cast %82 : vector<4x16xf32> to vector<1x4x16xf32>
    tpu.vector_store %arg7[%c0_28, %c0_29, %c16], %85 {strides = array<i32>} : memref<1x4x256xf32, #tpu.memory_space<vmem>>, vector<1x4x16xf32>,
    %86 = vector.extract_strided_slice %77 {offsets = [0, 36], sizes = [4, 16], strides = [1, 1]} : vector<4x288xf32> to vector<4x16xf32>
    %c0_30 = arith.constant 0 : index
    %c0_31 = arith.constant 0 : index
    %c32 = arith.constant 32 : index
    %87 = vector.load %arg7[%c0_30, %c0_31, %c32] : memref<1x4x256xf32, #tpu.memory_space<vmem>>, vector<1x4x16xf32>
    %88 = vector.shape_cast %87 : vector<1x4x16xf32> to vector<4x16xf32>
    %89 = vector.shape_cast %86 : vector<4x16xf32> to vector<1x4x16xf32>
    tpu.vector_store %arg7[%c0_30, %c0_31, %c32], %89 {strides = array<i32>} : memref<1x4x256xf32, #tpu.memory_space<vmem>>, vector<1x4x16xf32>,
    %90 = vector.extract_strided_slice %77 {offsets = [0, 54], sizes = [4, 16], strides = [1, 1]} : vector<4x288xf32> to vector<4x16xf32>
    %c0_32 = arith.constant 0 : index
    %c0_33 = arith.constant 0 : index
    %c48 = arith.constant 48 : index
    %91 = vector.load %arg7[%c0_32, %c0_33, %c48] : memref<1x4x256xf32, #tpu.memory_space<vmem>>, vector<1x4x16xf32>
    %92 = vector.shape_cast %91 : vector<1x4x16xf32> to vector<4x16xf32>
    %93 = vector.shape_cast %90 : vector<4x16xf32> to vector<1x4x16xf32>
    tpu.vector_store %arg7[%c0_32, %c0_33, %c48], %93 {strides = array<i32>} : memref<1x4x256xf32, #tpu.memory_space<vmem>>, vector<1x4x16xf32>,
    %94 = vector.extract_strided_slice %77 {offsets = [0, 72], sizes = [4, 16], strides = [1, 1]} : vector<4x288xf32> to vector<4x16xf32>
    %c0_34 = arith.constant 0 : index
    %c0_35 = arith.constant 0 : index
    %c64 = arith.constant 64 : index
    %95 = vector.load %arg7[%c0_34, %c0_35, %c64] : memref<1x4x256xf32, #tpu.memory_space<vmem>>, vector<1x4x16xf32>
    %96 = vector.shape_cast %95 : vector<1x4x16xf32> to vector<4x16xf32>
    %97 = vector.shape_cast %94 : vector<4x16xf32> to vector<1x4x16xf32>
    tpu.vector_store %arg7[%c0_34, %c0_35, %c64], %97 {strides = array<i32>} : memref<1x4x256xf32, #tpu.memory_space<vmem>>, vector<1x4x16xf32>,
    %98 = vector.extract_strided_slice %77 {offsets = [0, 90], sizes = [4, 16], strides = [1, 1]} : vector<4x288xf32> to vector<4x16xf32>
    %c0_36 = arith.constant 0 : index
    %c0_37 = arith.constant 0 : index
    %c80 = arith.constant 80 : index
    %99 = vector.load %arg7[%c0_36, %c0_37, %c80] : memref<1x4x256xf32, #tpu.memory_space<vmem>>, vector<1x4x16xf32>
    %100 = vector.shape_cast %99 : vector<1x4x16xf32> to vector<4x16xf32>
    %101 = vector.shape_cast %98 : vector<4x16xf32> to vector<1x4x16xf32>
    tpu.vector_store %arg7[%c0_36, %c0_37, %c80], %101 {strides = array<i32>} : memref<1x4x256xf32, #tpu.memory_space<vmem>>, vector<1x4x16xf32>,
    %102 = vector.extract_strided_slice %77 {offsets = [0, 108], sizes = [4, 16], strides = [1, 1]} : vector<4x288xf32> to vector<4x16xf32>
    %c0_38 = arith.constant 0 : index
    %c0_39 = arith.constant 0 : index
    %c96 = arith.constant 96 : index
    %103 = vector.load %arg7[%c0_38, %c0_39, %c96] : memref<1x4x256xf32, #tpu.memory_space<vmem>>, vector<1x4x16xf32>
    %104 = vector.shape_cast %103 : vector<1x4x16xf32> to vector<4x16xf32>
    %105 = vector.shape_cast %102 : vector<4x16xf32> to vector<1x4x16xf32>
    tpu.vector_store %arg7[%c0_38, %c0_39, %c96], %105 {strides = array<i32>} : memref<1x4x256xf32, #tpu.memory_space<vmem>>, vector<1x4x16xf32>,
    %106 = vector.extract_strided_slice %77 {offsets = [0, 126], sizes = [4, 16], strides = [1, 1]} : vector<4x288xf32> to vector<4x16xf32>
    %c0_40 = arith.constant 0 : index
    %c0_41 = arith.constant 0 : index
    %c112 = arith.constant 112 : index
    %107 = vector.load %arg7[%c0_40, %c0_41, %c112] : memref<1x4x256xf32, #tpu.memory_space<vmem>>, vector<1x4x16xf32>
    %108 = vector.shape_cast %107 : vector<1x4x16xf32> to vector<4x16xf32>
    %109 = vector.shape_cast %106 : vector<4x16xf32> to vector<1x4x16xf32>
    tpu.vector_store %arg7[%c0_40, %c0_41, %c112], %109 {strides = array<i32>} : memref<1x4x256xf32, #tpu.memory_space<vmem>>, vector<1x4x16xf32>,
    %110 = vector.extract_strided_slice %77 {offsets = [0, 144], sizes = [4, 16], strides = [1, 1]} : vector<4x288xf32> to vector<4x16xf32>
    %c0_42 = arith.constant 0 : index
    %c0_43 = arith.constant 0 : index
    %c128 = arith.constant 128 : index
    %111 = vector.load %arg7[%c0_42, %c0_43, %c128] : memref<1x4x256xf32, #tpu.memory_space<vmem>>, vector<1x4x16xf32>
    %112 = vector.shape_cast %111 : vector<1x4x16xf32> to vector<4x16xf32>
    %113 = vector.shape_cast %110 : vector<4x16xf32> to vector<1x4x16xf32>
    tpu.vector_store %arg7[%c0_42, %c0_43, %c128], %113 {strides = array<i32>} : memref<1x4x256xf32, #tpu.memory_space<vmem>>, vector<1x4x16xf32>,
    %114 = vector.extract_strided_slice %77 {offsets = [0, 162], sizes = [4, 16], strides = [1, 1]} : vector<4x288xf32> to vector<4x16xf32>
    %c0_44 = arith.constant 0 : index
    %c0_45 = arith.constant 0 : index
    %c144 = arith.constant 144 : index
    %115 = vector.load %arg7[%c0_44, %c0_45, %c144] : memref<1x4x256xf32, #tpu.memory_space<vmem>>, vector<1x4x16xf32>
    %116 = vector.shape_cast %115 : vector<1x4x16xf32> to vector<4x16xf32>
    %117 = vector.shape_cast %114 : vector<4x16xf32> to vector<1x4x16xf32>
    tpu.vector_store %arg7[%c0_44, %c0_45, %c144], %117 {strides = array<i32>} : memref<1x4x256xf32, #tpu.memory_space<vmem>>, vector<1x4x16xf32>,
    %118 = vector.extract_strided_slice %77 {offsets = [0, 180], sizes = [4, 16], strides = [1, 1]} : vector<4x288xf32> to vector<4x16xf32>
    %c0_46 = arith.constant 0 : index
    %c0_47 = arith.constant 0 : index
    %c160 = arith.constant 160 : index
    %119 = vector.load %arg7[%c0_46, %c0_47, %c160] : memref<1x4x256xf32, #tpu.memory_space<vmem>>, vector<1x4x16xf32>
    %120 = vector.shape_cast %119 : vector<1x4x16xf32> to vector<4x16xf32>
    %121 = vector.shape_cast %118 : vector<4x16xf32> to vector<1x4x16xf32>
    tpu.vector_store %arg7[%c0_46, %c0_47, %c160], %121 {strides = array<i32>} : memref<1x4x256xf32, #tpu.memory_space<vmem>>, vector<1x4x16xf32>,
    %122 = vector.extract_strided_slice %77 {offsets = [0, 198], sizes = [4, 16], strides = [1, 1]} : vector<4x288xf32> to vector<4x16xf32>
    %c0_48 = arith.constant 0 : index
    %c0_49 = arith.constant 0 : index
    %c176 = arith.constant 176 : index
    %123 = vector.load %arg7[%c0_48, %c0_49, %c176] : memref<1x4x256xf32, #tpu.memory_space<vmem>>, vector<1x4x16xf32>
    %124 = vector.shape_cast %123 : vector<1x4x16xf32> to vector<4x16xf32>
    %125 = vector.shape_cast %122 : vector<4x16xf32> to vector<1x4x16xf32>
    tpu.vector_store %arg7[%c0_48, %c0_49, %c176], %125 {strides = array<i32>} : memref<1x4x256xf32, #tpu.memory_space<vmem>>, vector<1x4x16xf32>,
    %126 = vector.extract_strided_slice %77 {offsets = [0, 216], sizes = [4, 16], strides = [1, 1]} : vector<4x288xf32> to vector<4x16xf32>
    %c0_50 = arith.constant 0 : index
    %c0_51 = arith.constant 0 : index
    %c192 = arith.constant 192 : index
    %127 = vector.load %arg7[%c0_50, %c0_51, %c192] : memref<1x4x256xf32, #tpu.memory_space<vmem>>, vector<1x4x16xf32>
    %128 = vector.shape_cast %127 : vector<1x4x16xf32> to vector<4x16xf32>
    %129 = vector.shape_cast %126 : vector<4x16xf32> to vector<1x4x16xf32>
    tpu.vector_store %arg7[%c0_50, %c0_51, %c192], %129 {strides = array<i32>} : memref<1x4x256xf32, #tpu.memory_space<vmem>>, vector<1x4x16xf32>,
    %130 = vector.extract_strided_slice %77 {offsets = [0, 234], sizes = [4, 16], strides = [1, 1]} : vector<4x288xf32> to vector<4x16xf32>
    %c0_52 = arith.constant 0 : index
    %c0_53 = arith.constant 0 : index
    %c208 = arith.constant 208 : index
    %131 = vector.load %arg7[%c0_52, %c0_53, %c208] : memref<1x4x256xf32, #tpu.memory_space<vmem>>, vector<1x4x16xf32>
    %132 = vector.shape_cast %131 : vector<1x4x16xf32> to vector<4x16xf32>
    %133 = vector.shape_cast %130 : vector<4x16xf32> to vector<1x4x16xf32>
    tpu.vector_store %arg7[%c0_52, %c0_53, %c208], %133 {strides = array<i32>} : memref<1x4x256xf32, #tpu.memory_space<vmem>>, vector<1x4x16xf32>,
    %134 = vector.extract_strided_slice %77 {offsets = [0, 252], sizes = [4, 16], strides = [1, 1]} : vector<4x288xf32> to vector<4x16xf32>
    %c0_54 = arith.constant 0 : index
    %c0_55 = arith.constant 0 : index
    %c224 = arith.constant 224 : index
    %135 = vector.load %arg7[%c0_54, %c0_55, %c224] : memref<1x4x256xf32, #tpu.memory_space<vmem>>, vector<1x4x16xf32>
    %136 = vector.shape_cast %135 : vector<1x4x16xf32> to vector<4x16xf32>
    %137 = vector.shape_cast %134 : vector<4x16xf32> to vector<1x4x16xf32>
    tpu.vector_store %arg7[%c0_54, %c0_55, %c224], %137 {strides = array<i32>} : memref<1x4x256xf32, #tpu.memory_space<vmem>>, vector<1x4x16xf32>,
    %138 = vector.extract_strided_slice %77 {offsets = [0, 270], sizes = [4, 16], strides = [1, 1]} : vector<4x288xf32> to vector<4x16xf32>
    %c0_56 = arith.constant 0 : index
    %c0_57 = arith.constant 0 : index
    %c240 = arith.constant 240 : index
    %139 = vector.load %arg7[%c0_56, %c0_57, %c240] : memref<1x4x256xf32, #tpu.memory_space<vmem>>, vector<1x4x16xf32>
    %140 = vector.shape_cast %139 : vector<1x4x16xf32> to vector<4x16xf32>
    %141 = vector.shape_cast %138 : vector<4x16xf32> to vector<1x4x16xf32>
    tpu.vector_store %arg7[%c0_56, %c0_57, %c240], %141 {strides = array<i32>} : memref<1x4x256xf32, #tpu.memory_space<vmem>>, vector<1x4x16xf32>,
    return
  }
  func.func @transform_0(%arg0: i32) -> (i32, i32, i32) {
    %c0_i32 = arith.constant 0 : i32
    %c0_i32_0 = arith.constant 0 : i32
    %c0_i32_1 = arith.constant 0 : i32
    return %arg0, %c0_i32, %c0_i32_0 : i32, i32, i32
  }
  func.func @transform_1(%arg0: i32) -> (i32, i32, i32) {
    %c0_i32 = arith.constant 0 : i32
    %c0_i32_0 = arith.constant 0 : i32
    %c0_i32_1 = arith.constant 0 : i32
    return %arg0, %c0_i32, %c0_i32_0 : i32, i32, i32
  }
  func.func @transform_2(%arg0: i32) -> (i32, i32) {
    %c0_i32 = arith.constant 0 : i32
    %c0_i32_0 = arith.constant 0 : i32
    %c0_i32_1 = arith.constant 0 : i32
    return %c0_i32, %c0_i32_0 : i32, i32
  }
  func.func @transform_3(%arg0: i32) -> (i32, i32) {
    %c0_i32 = arith.constant 0 : i32
    %c0_i32_0 = arith.constant 0 : i32
    %c0_i32_1 = arith.constant 0 : i32
    return %c0_i32, %c0_i32_0 : i32, i32
  }
  func.func @transform_4(%arg0: i32) -> (i32, i32) {
    %c0_i32 = arith.constant 0 : i32
    %c0_i32_0 = arith.constant 0 : i32
    %c0_i32_1 = arith.constant 0 : i32
    return %c0_i32, %c0_i32_0 : i32, i32
  }
  func.func @transform_5(%arg0: i32) -> (i32, i32) {
    %c0_i32 = arith.constant 0 : i32
    %c0_i32_0 = arith.constant 0 : i32
    %c0_i32_1 = arith.constant 0 : i32
    return %c0_i32, %c0_i32_0 : i32, i32
  }
  func.func @transform_6(%arg0: i32) -> (i32, i32, i32) {
    %c0_i32 = arith.constant 0 : i32
    %c0_i32_0 = arith.constant 0 : i32
    %c0_i32_1 = arith.constant 0 : i32
    return %arg0, %c0_i32, %c0_i32_0 : i32, i32, i32
  }
}

</mosaic_0001>

<bundles_post_ra>
// kernel: forward.7
= control target key start
LH: loop header
LB: loop body
LE: loop exit
PB: predicated region body
PF: predicated region fallthrough
CT: control target
= control target key end

     0   :  { %14 = vsyncpa [#allocation3], 0  ;;  %s546_s0 = inlined_call_operand.vmem [shape: f32[2,256], index: 0, kind: input, shape index: {}]   ;;  %s547_s1 = inlined_call_operand.vmem [shape: f32[256,32], index: 1, kind: input, shape index: {}]   ;;  %s548_s2 = inlined_call_operand.vmem [shape: f32[1,32], index: 2, kind: input, shape index: {}]   ;;  %s549_s3 = inlined_call_operand.vmem [shape: f32[2,16], index: 3, kind: input, shape index: {}]   ;;  %s550_s4 = inlined_call_operand.vmem [shape: f32[16,256], index: 4, kind: input, shape index: {}]   ;;  %s551_s5 = inlined_call_operand.vmem [shape: f32[1,256], index: 5, kind: input, shape index: {}]   ;;  %s552_s6 = inlined_call_operand.hbm [shape: f32[2,16], index: 6, kind: output, shape index: {0}]   ;;  %s553_s7 = inlined_call_operand.hbm [shape: f32[2,16], index: 7, kind: output, shape index: {1}]   ;;  %s554_s8 = inlined_call_operand.vmem [shape: f32[2,256], index: 8, kind: output, shape index: {2}]  }
   0x1   :  { %v59_v0 = vld [vmem:[%s547_s1 + $0x80] sm:$0xff]  ;;  %v60_v1 = vld [vmem:[%s547_s1 + $0x88] sm:$0xff]  ;;  %v61_v5 = vld [vmem:[%s547_s1 + $0x90] sm:$0xff] }
   0x2   :  { %v43_v2 = vld [vmem:[%s547_s1] sm:$0xff]  ;;  %v83_v3 = vpack.c.bf16 %v60_v1, %v59_v0  ;;  %v44_v4 = vld [vmem:[%s547_s1 + $0x8] sm:$0xff]  ;;  %v62_v6 = vld [vmem:[%s547_s1 + $0x98] sm:$0xff] }
   0x3   :  { %v75_v7 = vpack.c.bf16 %v44_v4, %v43_v2  ;;  %v84_v8 = vpack.c.bf16 %v62_v6, %v61_v5  ;;  %v45_v9 = vld [vmem:[%s547_s1 + $0x10] sm:$0xff]  ;;  %v46_v10 = vld [vmem:[%s547_s1 + $0x18] sm:$0xff]  ;;  %v63_v11 = vld [vmem:[%s547_s1 + $0xa0] sm:$0xff] }
   0x4   :  { %270 = vmatprep.subr.bf16.mxu0 %v83_v3  ;;  %v64_v12 = vld [vmem:[%s547_s1 + $0xa8] sm:$0xff]  ;;  %v76_v13 = vpack.c.bf16 %v46_v10, %v45_v9  ;;  %v47_v15 = vld [vmem:[%s547_s1 + $0x20] sm:$0xff]  ;;  %v65_v17 = vld [vmem:[%s547_s1 + $0xb0] sm:$0xff] }
   0x5   :  { %271 = vmatpush3.bf16.msra.mxu0 %v75_v7  ;;  %v85_v14 = vpack.c.bf16 %v64_v12, %v63_v11  ;;  %v48_v16 = vld [vmem:[%s547_s1 + $0x28] sm:$0xff]  ;;  %v66_v18 = vld [vmem:[%s547_s1 + $0xb8] sm:$0xff]  ;;  %v49_v21 = vld [vmem:[%s547_s1 + $0x30] sm:$0xff] }
   0x6   :  { %272 = vmatprep.subr.bf16.mxu0 %v84_v8  ;;  %v77_v19 = vpack.c.bf16 %v48_v16, %v47_v15  ;;  %v86_v20 = vpack.c.bf16 %v66_v18, %v65_v17  ;;  %v50_v22 = vld [vmem:[%s547_s1 + $0x38] sm:$0xff]  ;;  %v67_v23 = vld [vmem:[%s547_s1 + $0xc0] sm:$0xff]  ;;  %v68_v24 = vld [vmem:[%s547_s1 + $0xc8] sm:$0xff] }
   0x7   :  { %v266_v25 = vld.sshfl [vmem:[%s546_s0] sm:$0x33 pattern:$0x76325410] }
   0x8   :  { %v38_v26 = vcombine.high %v266_v25, %v266_v25  ;;  %v140_v27 = vld [vmem:[%s549_s3] sm:$0x3] }
   0x9   :  { %273 = vmatpush3.bf16.msra.mxu0 %v76_v13 }
   0xa   :  { %274 = vmatprep.subr.bf16.mxu0 %v85_v14 }
   0xb   :  { %15 = vsyncpa [#allocation5], 0  ;;  %v78_v28 = vpack.c.bf16 %v50_v22, %v49_v21  ;;  %s347_s23 = smov 16   ;;  %v87_v29 = vpack.c.bf16 %v68_v24, %v67_v23  ;;  %v51_v30 = vld [vmem:[%s547_s1 + $0x40] sm:$0xff]  ;;  %v52_v31 = vld [vmem:[%s547_s1 + $0x48] sm:$0xff]  ;;  %v42_v32 = vpack.c.bf16 %v38_v26, %v38_v26  ;;  %v41_v52 = vpack.c.bf16 %v266_v25, %v266_v25  ;;  %s348_s9 = smov 112  }
   0xc   :  { %142 = vrot.lane.b32.xlu0 %v140_v27, %s347_s23  ;;  %v69_v33 = vld [vmem:[%s547_s1 + $0xd0] sm:$0xff]  ;;  %v70_v34 = vld [vmem:[%s547_s1 + $0xd8] sm:$0xff]  ;;  %v79_v35 = vpack.c.bf16 %v52_v31, %v51_v30  ;;  %v71_v39 = vld [vmem:[%s547_s1 + $0xe0] sm:$0xff]  ;;  %vm215_vm0 = vcmask 123904   ;;  %v349_v3 = vmov 0   ;;  %vm170_vm1 = vcmask 130048  }
   0xd   :  { %275 = vmatpush3.bf16.msra.mxu0 %v77_v19  ;;  %130 = vmatprep.mubr.bf16.mxu0 %v42_v32  ;;  %v88_v36 = vpack.c.bf16 %v70_v34, %v69_v33  ;;  %v53_v37 = vld [vmem:[%s547_s1 + $0x50] sm:$0xff]  ;;  %v54_v38 = vld [vmem:[%s547_s1 + $0x58] sm:$0xff]  ;;  %v72_v40 = vld [vmem:[%s547_s1 + $0xe8] sm:$0xff]  ;;  %s350_s13 = smov [#allocation2]   ;;  %s351_s14 = smov [#allocation4]  }
   0xe   :  { %276 = vmatprep.subr.bf16.mxu0 %v86_v20  ;;  %v80_v41 = vpack.c.bf16 %v54_v38, %v53_v37  ;;  %v89_v42 = vpack.c.bf16 %v72_v40, %v71_v39  ;;  %v55_v43 = vld [vmem:[%s547_s1 + $0x60] sm:$0xff]  ;;  %v56_v44 = vld [vmem:[%s547_s1 + $0x68] sm:$0xff]  ;;  %v73_v45 = vld [vmem:[%s547_s1 + $0xf0] sm:$0xff]  ;;  %206 = vmatprep.mubr.bf16.mxu1 %v349_v3  ;;  %s250_s15 = sshll.u32 %s351_s14, 4  ;;  %s251_s15 = int_to_ptr.vmem [resolvable:$true] %s250_s15 }
   0xf   :  { %v74_v46 = vld [vmem:[%s547_s1 + $0xf8] sm:$0xff]  ;;  %v81_v47 = vpack.c.bf16 %v56_v44, %v55_v43  ;;  %v57_v49 = vld [vmem:[%s547_s1 + $0x70] sm:$0xff]  ;;  %v267_v54 = vld [vmem:[%s548_s2] ss:$0 sm:$0xff] }
  0x10   :  { %v90_v48 = vpack.c.bf16 %v74_v46, %v73_v45  ;;  %v58_v50 = vld [vmem:[%s547_s1 + $0x78] sm:$0xff]  ;;  %v153_v60 = vld [vmem:[%s550_s4 + $0x8] sm:$0xff]  ;;  %v152_v0 = vld [vmem:[%s550_s4] sm:$0xff] }
  0x11   :  { %277 = vmatpush3.bf16.msra.mxu0 %v78_v28  ;;  %v82_v51 = vpack.c.bf16 %v58_v50, %v57_v49  ;;  %v155_v61 = vld [vmem:[%s550_s4 + $0x18] sm:$0xff]  ;;  %v154_v1 = vld [vmem:[%s550_s4 + $0x10] sm:$0xff]  ;;  %s240_s4 = sshll.u32 %s350_s13, 4  ;;  %s241_s4 = int_to_ptr.vmem [resolvable:$true] %s240_s4 }
  0x12   :  { %278 = vmatprep.subr.bf16.mxu0 %v87_v29  ;;  %v157_v63 = vpack.c.bf16 %v155_v61, %v153_v60  ;;  %v156_v2 = vpack.c.bf16 %v154_v1, %v152_v0  ;;  %s299_s16 = scalar_lea.vmem %s241_s4, 32  ;;  %p304_p1 = scmp.lt.s32.totalorder %s241_s4, %s241_s4 }
  0x13   :  { %p300_p0 = scmp.ne.s32.totalorder %s241_s4, %s299_s16  ;;  %p305_p2 = scmp.lt.s32.totalorder %s299_s16, %s299_s16 }
  0x14   :  { %174 = vmatprep.subr.bf16.mxu1 %v157_v63 }
  0x15   :  { %279 = vmatpush3.bf16.msra.mxu0 %v79_v35  ;;  %175 = vmatpush1.bf16.msra.mxu1 %v156_v2  ;;  %p306_p3 = por %p305_p2, %p304_p1 }
  0x16   :  { %280 = vmatprep.subr.bf16.mxu0 %v88_v36 }
  0x17   :  { %p307_p4 = pnand %p306_p3, %p300_p0 }
  0x19   :  { %281 = vmatpush3.bf16.msra.mxu0 %v80_v41 }
  0x1a   :  { %282 = vmatprep.subr.bf16.mxu0 %v89_v42 }
  0x1d   :  { %283 = vmatpush3.bf16.msra.mxu0 %v81_v47 }
  0x1e   :  { %284 = vmatprep.subr.bf16.mxu0 %v90_v48 }
  0x21   :  { %285 = vmatpush3.bf16.msra.mxu0 %v82_v51 }
  0x24   :  { %131 = vmatmul.mubr.bf16.vlgmr.msra.gmra.mrb[0].mxu0 %v41_v52 }
  0x7e   :  { %v143_v4 = vpop.permute.xlu0 %142 }
  0xf7   :  { %v286_v53 = vpop.f32.mrb[0].mxu0 }
  0xf8   :  { %v287_v55 = vpop.f32.mrb[1].mxu0 }
  0xf9   :  { %v288_v56 = vadd.f32 %v287_v55, %v286_v53  ;;  %v289_v57 = vpop.f32.mrb[2].mxu0 }
  0xfa   :  { %v290_v58 = vpop.f32.mrb[3].mxu0 }
  0xfb   :  { %v133_v59 = vadd.f32 %v288_v56, %v267_v54 }
  0xfd   :  { %v138_v62 = vmul.f32 1.442695, %v133_v59  ;;  %218 = vrot.lane.b32.xlu1 %v133_v59, %s348_s9  ;;  %216 = vst.msk [vmem:[#allocation2] sm:$0x3] %vm215_vm0, %v133_v59 }
  0xff   :  { %297 = vpow2.f32 %v138_v62 }
 0x109   :  { %v298_v5 = vpop.eup %297 }
 0x10a   :  { %v145_v6 = vmul.f32 %v298_v5, %v143_v4 }
 0x10c   :  { %147 = vrot.lane.b32.xlu0 %v145_v6, %s348_s9 }
 0x16f   :  { %v219_v7 = vpop.permute.xlu1 %218 }
 0x170   :  { %221 = vst.msk [vmem:[#allocation4] sm:$0x3] %vm215_vm0, %v219_v7 }
 0x17e   :  { %v148_v8 = vpop.permute.xlu0 %147 }
 0x17f   :  { %v150_v9 = vadd.f32 %v148_v8, %v133_v59 }
 0x181   :  { %v151_v10 = vpack.c.bf16 %v150_v9, %v150_v9 }
 0x183   :  { %268 = vmatmul.mubr.msk.bf16.vlgmr.msra.gmra.mrb[0].mxu1 %vm170_vm1, %v151_v10 }
 0x184   :  { %310 = shalt.err (!%p307_p4)
}
 0x185   :  { %s311_s19 = scalar_lea.hbm %s552_s6, 32 }
 0x186   :  { %p312_p5 = scmp.ne.s32.totalorder %s552_s6, %s311_s19  ;;  %p315_p6 = scmp.lt.u32.totalorder %s311_s19, %s552_s6 }
 0x188   :  { %p317_p7 = pnand %p315_p6, %p312_p5 }
 0x18a   :  { %320 = shalt.err (!%p317_p7)
}
 0x18b   :  { %243 = dma.vmem_to_hbm [thread:$0]  %s241_s4, 32, %s552_s6, [#allocation3]  }
 0x18c   :  { %s321_s26 = scalar_lea.vmem %s251_s15, 32  ;;  %p326_p9 = scmp.lt.s32.totalorder %s251_s15, %s251_s15 }
 0x18d   :  { %p322_p8 = scmp.ne.s32.totalorder %s251_s15, %s321_s26  ;;  %p327_p10 = scmp.lt.s32.totalorder %s321_s26, %s321_s26 }
 0x18f   :  { %p328_p11 = por %p327_p10, %p326_p9 }
 0x191   :  { %p329_p12 = pnand %p328_p11, %p322_p8 }
 0x193   :  { %332 = shalt.err (!%p329_p12)
}
 0x194   :  { %s333_s28 = scalar_lea.hbm %s553_s7, 32 }
 0x195   :  { %p334_p13 = scmp.ne.s32.totalorder %s553_s7, %s333_s28  ;;  %p337_p0 = scmp.lt.u32.totalorder %s333_s28, %s553_s7 }
 0x197   :  { %p339_p1 = pnand %p337_p0, %p334_p13 }
 0x199   :  { %342 = shalt.err (!%p339_p1)
}
 0x19a   :  { %253 = dma.vmem_to_hbm [thread:$0]  %s251_s15, 32, %s553_s7, [#allocation5]   ;;  %v160_v11 = vlaneseq  ;;  %v158_v14 = vld [vmem:[%s551_s5] sm:$0x3] }
 0x19c   :  { %v161_v12 = vshrl.u32 %v160_v11, 7 }
 0x19e   :  { %v162_v13 = vsub.s32 0, %v161_v12  ;;  %v166_v15 = vsub.s32 1, %v161_v12 }
 0x1a0   :  { %v163_v16 = vrot.slane %v158_v14, %v162_v13  ;;  %v167_v17 = vrot.slane %v158_v14, %v166_v15 }
 0x256   :  { %v208_v18 = vpop.f32.mrb[0].mxu1 }
 0x257   :  { %v209_v19 = vadd.f32 %v208_v18, %v163_v16  ;;  %v210_v20 = vpop.f32.mrb[1].mxu1 }
 0x258   :  { %v211_v21 = vadd.f32 %v210_v20, %v167_v17  ;;  %v212_v22 = vpop.f32.mrb[2].mxu1 }
 0x259   :  { %v213_v23 = vpop.f32.mrb[3].mxu1 }
 0x25a   :  { %v224_v24 = vcombine.low %v209_v19, %v211_v21 }
 0x25c   :  { %269 = vst.sshfl [vmem:[%s554_s8] sm:$0x33 pattern:$0x76325410] %v224_v24 }
 0x25d   :  { %343 = dma.done.wait [#allocation3], 32  }
 0x25e   :  { %344 = vsyncadd [#allocation3], 4294967264 }
 0x25f   :  { %345 = dma.done.wait [#allocation5], 32  }
 0x260   :  { %346 = vsyncadd [#allocation5], 4294967264 }
 0x261   :  { %264 = vsyncpa [#allocation3], 1 }
 0x262   :  { %265 = vsyncpa [#allocation5], 1 }

// kernel: forward.5
= control target key start
LH: loop header
LB: loop body
LE: loop exit
PB: predicated region body
PF: predicated region fallthrough
CT: control target
= control target key end

     0   :  { %s3333_s21 = smov 0   ;;  %s4358_s0 = inlined_call_operand.vmem [shape: f32[2,4,342], index: 0, kind: input, shape index: {}]   ;;  %s4359_s1 = inlined_call_operand.vmem [shape: f32[8,36], index: 1, kind: input, shape index: {}]   ;;  %s4360_s2 = inlined_call_operand.vmem [shape: f32[8,1], index: 2, kind: input, shape index: {}]   ;;  %s4361_s3 = inlined_call_operand.vmem [shape: s32[1,64], index: 3, kind: input, shape index: {}]   ;;  %s4362_s4 = inlined_call_operand.vmem [shape: s32[1,64], index: 4, kind: input, shape index: {}]   ;;  %s4363_s5 = inlined_call_operand.vmem [shape: f32[2,8,64], index: 5, kind: output, shape index: {0}]   ;;  %s4364_s6 = inlined_call_operand.vmem [shape: s32[2,8,64], index: 6, kind: output, shape index: {1}]  }
   0x1 LB: > { %s2482_s22 = sadd.s32 4294967295, %s3276_s21   ;;  %p2486_p0 = scmp.ge.s32.totalorder %s3276_s21, 1  ;;  %s3276_s21 = sphi %s3333_s21, %s17_s21  }
   0x2   : > { %p215_p1 = scmp.lt.s32.totalorder %s3276_s21, 3 }
   0x4   : > { %p216_p2 = pnand %p2486_p0, %p215_p1 }
   0x6   : > { %219 = sbr.rel (%p216_p2) target bundleno = 718 (0x2ce), region = 40 }
   0xd   : > { %p248_p3 = scmp.lt.s32.totalorder %s2482_s22, 1  ;;  %v4369_v0 = vmov 0.0   ;;  %vm4365_vm0 = vmmov 0   ;;  %v262_v1 = vld [vmem:[%s4359_s1] sm:$0xff]  ;;  %s3280_s29 = smov 126   ;;  %v3282_v9 = vmov 0  }
   0xe   : > { %2989 = vmatprep.subr.bf16.mxu1 %v4369_v0  ;;  %2991 = vmatprep.mubr.msk.bf16.mxu1 %vm4365_vm0, %v4369_v0  ;;  %s3281_s30 = smov 127   ;;  %v3362_v7 = vpack.c.bf16 %v262_v1, %v262_v1  ;;  %s3283_s7 = smov 120   ;;  %v1301_v24 = vld [vmem:[%s4360_s2] sm:$0xff]  ;;  %vm291_vm1 = vcmask 1041408   ;;  %vm287_vm2 = vcmask 31744   ;;  %vm284_vm3 = vcmask 1039360  }
   0xf   : > { %s4568_s22 = smov (!%p248_p3, %s2482_s22), 1  ;;  %333 = vmatprep.mubr.bf16.mxu0 %v3282_v9  ;;  %3268 = vset.pattern.permute.xlu0 %v3282_v9  ;;  %s3284_s8 = smov 124   ;;  %vm494_vm4 = vcmask 1031168   ;;  %vm612_vm5 = vcmask 900096   ;;  %vm730_vm6 = vcmask 891904   ;;  %vm848_vm7 = vcmask 883712  }
  0x10   : > { %s3239_s23 = smul.u32 12, %s4568_s22  ;;  %s3285_s9 = smov 116   ;;  %vm966_vm8 = vcmask 752640   ;;  %vm1084_vm9 = vcmask 744448   ;;  %vm1202_vm10 = vcmask 736256  }
  0x11   : > { %s3286_s10 = smov 110   ;;  %s3287_s11 = smov 112  }
  0x12   : > { %s3350_s26 = scalar_lea.vmem %s4358_s0, %s3239_s23  ;;  %s3288_s12 = smov 109  }
  0x13   : > { %v476_v2 = vld [vmem:[%s3350_s26 + $0x8] sm:$0xf]  ;;  %v263_v4 = vld [vmem:[%s3350_s26] sm:$0xff]  ;;  %s3289_s13 = smov 108   ;;  %s3290_s14 = smov 104  }
  0x14   : > { %v264_v3 = vld [vmem:[%s3350_s26 + $0x8] sm:$0xf]  ;;  %v482_v5 = vpack.c.bf16 %v476_v2, %v476_v2  ;;  %v266_v8 = vcombine.high %v263_v4, %v263_v4  ;;  %v3368_v10 = vpack.c.bf16 %v263_v4, %v263_v4  ;;  %s3291_s15 = smov 92   ;;  %s3292_s16 = smov 100  }
  0x15   : > { %v3358_v6 = vpack.c.bf16 %v264_v3, %v264_v3  ;;  %v594_v12 = vld [vmem:[%s3350_s26 + $0x8] sm:$0xf]  ;;  %s3293_s17 = smov 91   ;;  %s3294_s18 = smov 96  }
  0x16   : > { %492 = vrot.lane.b32.xlu1 %v482_v5, %s3280_s29  ;;  %v3370_v11 = vpack.c.bf16 %v266_v8, %v266_v8  ;;  %v600_v13 = vpack.c.bf16 %v594_v12, %v594_v12  ;;  %v712_v14 = vld [vmem:[%s3350_s26 + $0x8] sm:$0xf]  ;;  %s3295_s19 = smov 90   ;;  %v386_v39 = vsel %vm291_vm1, %v3368_v10, 0  ;;  %s2488_s28 = sshll.u32 %s4568_s22, 3 }
  0x17   : > { %282 = vrot.lane.b32.xlu0 %v3358_v6, %s3281_s30  ;;  %v718_v15 = vpack.c.bf16 %v712_v14, %v712_v14  ;;  %v830_v16 = vld [vmem:[%s3350_s26 + $0x8] sm:$0xf]  ;;  %v392_v28 = vsel %vm291_vm1, %v3358_v6, 0 }
  0x18   : > { %v836_v17 = vpack.c.bf16 %v830_v16, %v830_v16  ;;  %v948_v18 = vld [vmem:[%s3350_s26 + $0x8] sm:$0xf] }
  0x19   : > { %v954_v19 = vpack.c.bf16 %v948_v18, %v948_v18  ;;  %v1066_v20 = vld [vmem:[%s3350_s26 + $0x8] sm:$0xf] }
  0x1a   : > { %483 = vrot.lane.b32.xlu1 %v3362_v7, %s3283_s7  ;;  %v1072_v21 = vpack.c.bf16 %v1066_v20, %v1066_v20  ;;  %v1184_v22 = vld [vmem:[%s3350_s26 + $0x8] sm:$0xf]  ;;  %s256_s7 = scalar_lea.vmem %s4363_s5, %s2488_s28 }
  0x1b   : > { %273 = vrot.lane.b32.xlu0 %v3362_v7, %s3284_s8  ;;  %v1190_v23 = vpack.c.bf16 %v1184_v22, %v1184_v22 }
  0x1e   : > { %280 = vrot.lane.b32.xlu1 %v3370_v11, %s3281_s30 }
  0x1f   : > { %278 = vrot.lane.b32.xlu0 %v3368_v10, %s3281_s30 }
  0x22   : > { %601 = vrot.lane.b32.xlu1 %v3362_v7, %s3285_s9 }
  0x23   : > { %610 = vrot.lane.b32.xlu0 %v600_v13, %s3286_s10 }
  0x26   : > { %719 = vrot.lane.b32.xlu1 %v3362_v7, %s3287_s11 }
  0x27   : > { %728 = vrot.lane.b32.xlu0 %v718_v15, %s3288_s12 }
  0x2a   : > { %490 = vrot.lane.b32.xlu1 %v3370_v11, %s3280_s29 }
  0x2b   : > { %488 = vrot.lane.b32.xlu0 %v3368_v10, %s3280_s29 }
  0x2e   : > { %837 = vrot.lane.b32.xlu1 %v3362_v7, %s3289_s13 }
  0x2f   : > { %846 = vrot.lane.b32.xlu0 %v836_v17, %s3289_s13 }
  0x32   : > { %608 = vrot.lane.b32.xlu1 %v3370_v11, %s3286_s10 }
  0x33   : > { %606 = vrot.lane.b32.xlu0 %v3368_v10, %s3286_s10  ;;  %s260_s10 = scalar_lea.vmem %s4364_s6, %s2488_s28 }
  0x36   : > { %955 = vrot.lane.b32.xlu1 %v3362_v7, %s3290_s14 }
  0x37   : > { %964 = vrot.lane.b32.xlu0 %v954_v19, %s3291_s15 }
  0x3a   : > { %726 = vrot.lane.b32.xlu1 %v3370_v11, %s3288_s12 }
  0x3b   : > { %724 = vrot.lane.b32.xlu0 %v3368_v10, %s3288_s12 }
  0x3e   : > { %1073 = vrot.lane.b32.xlu1 %v3362_v7, %s3292_s16 }
  0x3f   : > { %1082 = vrot.lane.b32.xlu0 %v1072_v21, %s3293_s17 }
  0x42   : > { %844 = vrot.lane.b32.xlu1 %v3370_v11, %s3289_s13 }
  0x43   : > { %842 = vrot.lane.b32.xlu0 %v3368_v10, %s3289_s13 }
  0x46   : > { %1191 = vrot.lane.b32.xlu1 %v3362_v7, %s3294_s18 }
  0x47   : > { %1200 = vrot.lane.b32.xlu0 %v1190_v23, %s3295_s19 }
  0x4a   : > { %962 = vrot.lane.b32.xlu1 %v3370_v11, %s3291_s15 }
  0x4b   : > { %960 = vrot.lane.b32.xlu0 %v3368_v10, %s3291_s15 }
  0x4e   : > { %1080 = vrot.lane.b32.xlu1 %v3370_v11, %s3293_s17 }
  0x4f   : > { %1078 = vrot.lane.b32.xlu0 %v3368_v10, %s3293_s17 }
  0x52   : > { %1198 = vrot.lane.b32.xlu1 %v3370_v11, %s3295_s19 }
  0x53   : > { %1196 = vrot.lane.b32.xlu0 %v3368_v10, %s3295_s19 }
  0x57   : > { %1304 = vperm.xlu0 %3268, %v1301_v24  }
  0x88   : > { %v493_v25 = vpop.permute.xlu1 %492 }
  0x89   : > { %v283_v26 = vpop.permute.xlu0 %282  ;;  %v507_v36 = vsel %vm291_vm1, %v493_v25, 0 }
  0x8a   : > { %v299_v27 = vsel %vm291_vm1, %v283_v26, 0 }
  0x8b   : > { %2990 = vmatpush3.bf16.msra.mxu1 %v299_v27 }
  0x8c   : > { %2995 = vmatprep.subr.bf16.mxu1 %v4369_v0  ;;  %v484_v29 = vpop.permute.xlu1 %483 }
  0x8d   : > { %v274_v30 = vpop.permute.xlu0 %273 }
  0x8e   : > { %2992 = vmatmul.mubr.msk.bf16.vlgmr.msra.gmra.mrb[0].mxu1 %vm287_vm2, %v274_v30 }
  0x8f   : > { %2996 = vmatpush3.bf16.msra.mxu1 %v392_v28  ;;  %2997 = vmatprep.mubr.msk.bf16.mxu1 %vm4365_vm0, %v4369_v0 }
  0x90   : > { %3001 = vmatprep.subr.bf16.mxu1 %v4369_v0  ;;  %v281_v32 = vpop.permute.xlu1 %280 }
  0x91   : > { %v279_v31 = vpop.permute.xlu0 %278  ;;  %v286_v33 = vsel %vm284_vm3, %v281_v32, %v283_v26 }
  0x92   : > { %v285_v34 = vsel %vm284_vm3, %v279_v31, %v281_v32  ;;  %2490 = vmatprep.subr.msk.bf16.mxu0 %vm291_vm1, %v286_v33  ;;  %v3509_v32 = vld [vmem:[%s4361_s3] sm:$0x1] }
  0x93   : > { %v293_v35 = vsel %vm291_vm1, %v285_v34, 0 }
  0x94   : > { %302 = vmatpush1.bf16.msra.mxu0 %v293_v35  ;;  %v602_v37 = vpop.permute.xlu1 %601 }
  0x95   : > { %v611_v38 = vpop.permute.xlu0 %610  ;;  %2493 = vmatprep.subr.msk.bf16.mxu0 %vm291_vm1, %v3370_v11 }
  0x96   : > { %2998 = vmatmul.mubr.msk.bf16.vlgmr.msra.gmra.mrb[4].mxu1 %vm287_vm2, %v3362_v7  ;;  %v625_v42 = vsel %vm291_vm1, %v611_v38, 0 }
  0x97   : > { %3002 = vmatpush3.bf16.msra.mxu1 %v507_v36  ;;  %2491 = vmatmul.mubr.msk.bf16.vlgmr.msra.gmra.mrb[0].mxu0 %vm287_vm2, %v274_v30  ;;  %v4371_v36 = vmov 1.0|1.0  }
  0x98   : > { %395 = vmatpush1.bf16.msra.mxu0 %v386_v39  ;;  %3003 = vmatprep.mubr.msk.bf16.mxu1 %vm4365_vm0, %v4369_v0  ;;  %v3425_v40 = vpop.permute.xlu1 %719 }
  0x99   : > { %v729_v41 = vpop.permute.xlu0 %728  ;;  %426 = vmatprep.mubr.bf16.mxu0 %v3282_v9  ;;  %3007 = vmatprep.subr.bf16.mxu1 %v4369_v0 }
  0x9a   : > { %v743_v50 = vsel %vm291_vm1, %v729_v41, 0 }
  0x9c   : > { %v491_v43 = vpop.permute.xlu1 %490 }
  0x9d   : > { %v489_v44 = vpop.permute.xlu0 %488  ;;  %v496_v45 = vsel %vm494_vm4, %v491_v43, %v493_v25 }
  0x9e   : > { %3004 = vmatmul.mubr.msk.bf16.vlgmr.msra.gmra.mrb[8].mxu1 %vm287_vm2, %v484_v29  ;;  %v495_v46 = vsel %vm494_vm4, %v489_v44, %v491_v43  ;;  %2496 = vmatprep.subr.msk.bf16.mxu0 %vm291_vm1, %v496_v45 }
  0x9f   : > { %3008 = vmatpush3.bf16.msra.mxu1 %v625_v42  ;;  %v501_v47 = vsel %vm291_vm1, %v495_v46, 0  ;;  %2494 = vmatmul.mubr.msk.bf16.vlgmr.msra.gmra.mrb[4].mxu0 %vm287_vm2, %v3362_v7 }
  0xa0   : > { %3009 = vmatprep.mubr.msk.bf16.mxu1 %vm4365_vm0, %v4369_v0  ;;  %v3437_v48 = vpop.permute.xlu1 %837  ;;  %510 = vmatpush1.bf16.msra.mxu0 %v501_v47 }
  0xa1   : > { %v847_v49 = vpop.permute.xlu0 %846  ;;  %541 = vmatprep.mubr.bf16.mxu0 %v3282_v9  ;;  %3013 = vmatprep.subr.bf16.mxu1 %v4369_v0 }
  0xa2   : > { %v861_v58 = vsel %vm291_vm1, %v847_v49, 0 }
  0xa4   : > { %v609_v51 = vpop.permute.xlu1 %608 }
  0xa5   : > { %v607_v52 = vpop.permute.xlu0 %606  ;;  %v614_v53 = vsel %vm612_vm5, %v609_v51, %v611_v38 }
  0xa6   : > { %3010 = vmatmul.mubr.msk.bf16.vlgmr.msra.gmra.mrb[12].mxu1 %vm287_vm2, %v602_v37  ;;  %v613_v54 = vsel %vm612_vm5, %v607_v52, %v609_v51  ;;  %2499 = vmatprep.subr.msk.bf16.mxu0 %vm291_vm1, %v614_v53 }
  0xa7   : > { %v619_v55 = vsel %vm291_vm1, %v613_v54, 0  ;;  %2497 = vmatmul.mubr.msk.bf16.vlgmr.msra.gmra.mrb[8].mxu0 %vm287_vm2, %v484_v29  ;;  %3014 = vmatpush3.bf16.msra.mxu1 %v743_v50  ;;  %v1313_v29 = vlaneseq  ;;  %v4367_v50 = vmov 0.0|0.0  }
  0xa8   : > { %628 = vmatpush1.bf16.msra.mxu0 %v619_v55  ;;  %v3446_v56 = vpop.permute.xlu1 %955  ;;  %3015 = vmatprep.mubr.msk.bf16.mxu1 %vm4365_vm0, %v4369_v0 }
  0xa9   : > { %v965_v57 = vpop.permute.xlu0 %964  ;;  %659 = vmatprep.mubr.bf16.mxu0 %v3282_v9  ;;  %3019 = vmatprep.subr.bf16.mxu1 %v4369_v0  ;;  %v3501_v30 = vshrl.u32 %v1313_v29, 7  ;;  %v4423_v29 = vmov 0 }
  0xaa   : > { %v979_v3 = vsel %vm291_vm1, %v965_v57, 0 }
  0xab   : > { %v3504_v31 = vsub.s32 0, %v3501_v30  ;;  %v3512_v33 = vadd.s32 128, %v3501_v30  ;;  %v3515_v34 = vadd.s32 136, %v3501_v30  ;;  %v3522_v35 = vadd.s32 8, %v3501_v30 }
  0xac   : > { %v727_v59 = vpop.permute.xlu1 %726  ;;  %v3537_v38 = vadd.s32 152, %v3501_v30  ;;  %v3541_v39 = vadd.s32 16, %v3501_v30  ;;  %v3559_v42 = vadd.s32 168, %v3501_v30  ;;  %v3563_v43 = vadd.s32 32, %v3501_v30 }
  0xad   : > { %v725_v60 = vpop.permute.xlu0 %724  ;;  %v732_v61 = vsel %vm730_vm6, %v727_v59, %v729_v41  ;;  %4388 = vst [vmem:[#allocation2_spill] sm:$0xff] %v3504_v31  ;;  %v3556_v41 = vadd.s32 160, %v3501_v30  ;;  %v3566_v44 = vadd.s32 40, %v3501_v30  ;;  %v3578_v45 = vadd.s32 176, %v3501_v30 }
  0xae   : > { %3016 = vmatmul.mubr.msk.bf16.vlgmr.msra.gmra.mrb[16].mxu1 %vm287_vm2, %v3425_v40  ;;  %v731_v62 = vsel %vm730_vm6, %v725_v60, %v727_v59  ;;  %2502 = vmatprep.subr.msk.bf16.mxu0 %vm291_vm1, %v732_v61  ;;  %v3581_v46 = vadd.s32 184, %v3501_v30  ;;  %v3585_v47 = vadd.s32 48, %v3501_v30  ;;  %v3603_v51 = vadd.s32 264, %v3501_v30 }
  0xaf   : > { %v737_v63 = vsel %vm291_vm1, %v731_v62, 0  ;;  %2500 = vmatmul.mubr.msk.bf16.vlgmr.msra.gmra.mrb[12].mxu0 %vm287_vm2, %v602_v37  ;;  %3020 = vmatpush3.bf16.msra.mxu1 %v861_v58  ;;  %v3534_v37 = vadd.s32 144, %v3501_v30  ;;  %v3609_v52 = vadd.s32 192, %v3501_v30  ;;  %v3612_v53 = vadd.s32 200, %v3501_v30 }
  0xb0   : > { %746 = vmatpush1.bf16.msra.mxu0 %v737_v63  ;;  %v1074_v1 = vpop.permute.xlu1 %1073  ;;  %3021 = vmatprep.mubr.msk.bf16.mxu1 %vm4365_vm0, %v4369_v0  ;;  %v3618_v54 = vadd.s32 64, %v3501_v30  ;;  %v3621_v55 = vadd.s32 72, %v3501_v30  ;;  %v1607_v58 = vadd.s32 1, %v3509_v32  ;;  %v3646_v59 = vadd.s32 208, %v3501_v30 }
  0xb1   : > { %v1083_v2 = vpop.permute.xlu0 %1082  ;;  %777 = vmatprep.mubr.bf16.mxu0 %v3282_v9  ;;  %3025 = vmatprep.subr.bf16.mxu1 %v4369_v0  ;;  %v3649_v60 = vadd.s32 216, %v3501_v30  ;;  %v3653_v61 = vadd.s32 80, %v3501_v30  ;;  %v3656_v62 = vadd.s32 88, %v3501_v30 }
  0xb2   : > { %v1097_v12 = vsel %vm291_vm1, %v1083_v2, 0  ;;  %v3659_v63 = vrot.slane %v1607_v58, %v3504_v31  ;;  %v4427_v58 = vmov 0 }
  0xb4   : > { %v845_v4 = vpop.permute.xlu1 %844 }
  0xb5   : > { %v843_v5 = vpop.permute.xlu0 %842  ;;  %v850_v6 = vsel %vm848_vm7, %v845_v4, %v847_v49  ;;  %v3595_v49 = vadd.s32 256, %v3501_v30 }
  0xb6   : > { %3022 = vmatmul.mubr.msk.bf16.vlgmr.msra.gmra.mrb[20].mxu1 %vm287_vm2, %v3437_v48  ;;  %v849_v7 = vsel %vm848_vm7, %v843_v5, %v845_v4  ;;  %2505 = vmatprep.subr.msk.bf16.mxu0 %vm291_vm1, %v850_v6  ;;  %v3690_v4 = vadd.s32 104, %v3501_v30  ;;  %v3714_v6 = vadd.s32 240, %v3501_v30 }
  0xb7   : > { %v855_v8 = vsel %vm291_vm1, %v849_v7, 0  ;;  %2503 = vmatmul.mubr.msk.bf16.vlgmr.msra.gmra.mrb[16].mxu0 %vm287_vm2, %v3425_v40  ;;  %3026 = vmatpush3.bf16.msra.mxu1 %v979_v3  ;;  %v3544_v40 = vadd.s32 24, %v3501_v30  ;;  %v3687_v3 = vadd.s32 96, %v3501_v30  ;;  %v3718_v7 = vadd.s32 248, %v3501_v30 }
  0xb8   : > { %864 = vmatpush1.bf16.msra.mxu0 %v855_v8  ;;  %v1192_v10 = vpop.permute.xlu1 %1191  ;;  %3027 = vmatprep.mubr.msk.bf16.mxu1 %vm4365_vm0, %v4369_v0  ;;  %v3721_v8 = vadd.s32 112, %v3501_v30 }
  0xb9   : > { %v1201_v11 = vpop.permute.xlu0 %1200  ;;  %895 = vmatprep.mubr.bf16.mxu0 %v3282_v9  ;;  %3031 = vmatprep.subr.bf16.mxu1 %v4369_v0 }
  0xba   : > { %v1215_v22 = vsel %vm291_vm1, %v1201_v11, 0 }
  0xbc   : > { %v963_v13 = vpop.permute.xlu1 %962 }
  0xbd   : > { %v961_v14 = vpop.permute.xlu0 %960  ;;  %v968_v15 = vsel %vm966_vm8, %v963_v13, %v965_v57  ;;  %v3631_v57 = vadd.s32 280, %v3501_v30 }
  0xbe   : > { %3028 = vmatmul.mubr.msk.bf16.vlgmr.msra.gmra.mrb[24].mxu1 %vm287_vm2, %v3446_v56  ;;  %v967_v16 = vsel %vm966_vm8, %v961_v14, %v963_v13  ;;  %2508 = vmatprep.subr.msk.bf16.mxu0 %vm291_vm1, %v968_v15 }
  0xbf   : > { %v973_v17 = vsel %vm291_vm1, %v967_v16, 0  ;;  %2506 = vmatmul.mubr.msk.bf16.vlgmr.msra.gmra.mrb[20].mxu0 %vm287_vm2, %v3437_v48  ;;  %3032 = vmatpush3.bf16.msra.mxu1 %v1097_v12  ;;  %v3588_v48 = vadd.s32 56, %v3501_v30  ;;  %v4401_v16 = vmov 0  ;;  %v4513_v12 = vmov 0.0|0.0  }
  0xc0   : > { %982 = vmatpush1.bf16.msra.mxu0 %v973_v17  ;;  %v1081_v18 = vpop.permute.xlu1 %1080  ;;  %3033 = vmatprep.mubr.msk.bf16.mxu1 %vm4365_vm0, %v4369_v0  ;;  %v4403_v17 = vmov 0 }
  0xc1   : > { %v1079_v19 = vpop.permute.xlu0 %1078  ;;  %1013 = vmatprep.mubr.bf16.mxu0 %v3282_v9  ;;  %v1086_v20 = vsel %vm1084_vm9, %v1081_v18, %v1083_v2  ;;  %3037 = vmatprep.subr.bf16.mxu1 %v4369_v0  ;;  %v3684_v2 = vadd.s32 232, %v3501_v30 }
  0xc2   : > { %v1085_v21 = vsel %vm1084_vm9, %v1079_v19, %v1081_v18  ;;  %2511 = vmatprep.subr.msk.bf16.mxu0 %vm291_vm1, %v1086_v20  ;;  %v1860_v18 = vadd.s32 18, %v3509_v32  ;;  %v4405_v19 = vmov 0  ;;  %v4407_v20 = vmov 0 }
  0xc3   : > { %v1091_v23 = vsel %vm291_vm1, %v1085_v21, 0 }
  0xc4   : > { %v1199_v24 = vpop.permute.xlu1 %1198  ;;  %v3808_v21 = vrot.slane %v1860_v18, %v3504_v31  ;;  %v4429_v18 = vmov 0 }
  0xc5   : > { %v1204_v25 = vsel %vm1202_vm10, %v1199_v24, %v1201_v11  ;;  %v1197_v26 = vpop.permute.xlu0 %1196  ;;  %v4510_v11 = vmov 0.0  }
  0xc6   : > { %3034 = vmatmul.mubr.msk.bf16.vlgmr.msra.gmra.mrb[28].mxu1 %vm287_vm2, %v1074_v1  ;;  %v1203_v27 = vsel %vm1202_vm10, %v1197_v26, %v1199_v24  ;;  %v4413_v24 = vmov 0  ;;  %v4417_v26 = vmov 0 }
  0xc7   : > { %2509 = vmatmul.mubr.msk.bf16.vlgmr.msra.gmra.mrb[24].mxu0 %vm287_vm2, %v3446_v56  ;;  %3038 = vmatpush3.bf16.msra.mxu1 %v1215_v22  ;;  %v1209_v28 = vsel %vm291_vm1, %v1203_v27, 0  ;;  %v3628_v56 = vadd.s32 272, %v3501_v30  ;;  %v4409_v22 = vmov 0  ;;  %v4419_v27 = vmov 0 }
  0xc8   : > { %1100 = vmatpush1.bf16.msra.mxu0 %v1091_v23  ;;  %3039 = vmatprep.mubr.msk.bf16.mxu1 %vm4365_vm0, %v4369_v0  ;;  %v4411_v23 = vmov 0 }
  0xc9   : > { %2514 = vmatprep.subr.msk.bf16.mxu0 %vm291_vm1, %v1204_v25  ;;  %1131 = vmatprep.mubr.bf16.mxu0 %v3282_v9  ;;  %v4415_v25 = vmov 0 }
  0xca   : > { %3119 = vmatprep.subr.bf16.mxu1 %v4367_v50 }
  0xce   : > { %3040 = vmatmul.mubr.msk.bf16.vlgmr.msra.gmra.mrb[32].mxu1 %vm287_vm2, %v1192_v10 }
  0xcf   : > { %2512 = vmatmul.mubr.msk.bf16.vlgmr.msra.gmra.mrb[28].mxu0 %vm287_vm2, %v1074_v1  ;;  %3051 = vmatprep.mubr.msk.f32.mxu1 %vm4365_vm0, %v4369_v0  ;;  %v3680_v1 = vadd.s32 224, %v3501_v30  ;;  %vm1621_vm0 = vcmp.eq.s32.totalorder %v3621_v55, %v3659_v63  ;;  %v4435_v0 = vmov 0 }
  0xd0   : > { %1218 = vmatpush1.bf16.msra.mxu0 %v1209_v28  ;;  %1249 = vmatprep.mubr.bf16.mxu0 %v3282_v9  ;;  %v3519_v9 = vrot.slane %v3509_v32, %v3504_v31  ;;  %v4421_v28 = vmov 0 }
  0xd2   : > { %vm1371_vm11 = vcmp.eq.s32.totalorder %v3512_v33, %v3519_v9  ;;  %vm1372_vm12 = vcmp.eq.s32.totalorder %v3515_v34, %v3519_v9  ;;  %vm1355_vm14 = vcmp.eq.s32.totalorder %v3501_v30, %v3519_v9  ;;  %vm1356_vm15 = vcmp.eq.s32.totalorder %v3522_v35, %v3519_v9 }
  0xd3   : > { %vm3087_vm13 = vmpackc.low %vm1372_vm12, %vm1371_vm11  ;;  %vm1374_vm3 = vcmp.eq.s32.totalorder %v3537_v38, %v3519_v9  ;;  %vm1357_vm5 = vcmp.eq.s32.totalorder %v3541_v39, %v3519_v9  ;;  %vm1358_vm6 = vcmp.eq.s32.totalorder %v3544_v40, %v3519_v9  ;;  %vm1375_vm8 = vcmp.eq.s32.totalorder %v3556_v41, %v3519_v9 }
  0xd4   : > { %3088 = vmatprep.subr.msk.bf16.mxu0 %vm3087_vm13, %v4371_v36  ;;  %vm3089_vm1 = vmpackc.low %vm1356_vm15, %vm1355_vm14  ;;  %vm1376_vm9 = vcmp.eq.s32.totalorder %v3559_v42, %v3519_v9  ;;  %vm1359_vm11 = vcmp.eq.s32.totalorder %v3563_v43, %v3519_v9  ;;  %vm1360_vm12 = vcmp.eq.s32.totalorder %v3566_v44, %v3519_v9  ;;  %vm1377_vm14 = vcmp.eq.s32.totalorder %v3578_v45, %v3519_v9 }
  0xd5   : > { %vm3093_vm7 = vmpackc.low %vm1358_vm6, %vm1357_vm5  ;;  %vm1378_vm15 = vcmp.eq.s32.totalorder %v3581_v46, %v3519_v9  ;;  %vm1387_vm5 = vcmp.eq.s32.totalorder %v3595_v49, %v3519_v9  ;;  %vm1388_vm6 = vcmp.eq.s32.totalorder %v3603_v51, %v3519_v9 }
  0xd6   : > { %vm3095_vm10 = vmpackc.low %vm1376_vm9, %vm1375_vm8  ;;  %vm1379_vm8 = vcmp.eq.s32.totalorder %v3609_v52, %v3519_v9  ;;  %vm1380_vm9 = vcmp.eq.s32.totalorder %v3612_v53, %v3519_v9 }
  0xd7   : > { %2515 = vmatmul.mubr.msk.bf16.vlgmr.msra.gmra.mrb[32].mxu0 %vm287_vm2, %v1192_v10  ;;  %vm1373_vm2 = vcmp.eq.s32.totalorder %v3534_v37, %v3519_v9  ;;  %vm3097_vm13 = vmpackc.low %vm1360_vm12, %vm1359_vm11  ;;  %vm1363_vm11 = vcmp.eq.s32.totalorder %v3618_v54, %v3519_v9  ;;  %vm1364_vm12 = vcmp.eq.s32.totalorder %v3621_v55, %v3519_v9  ;;  %v3724_v10 = vadd.s32 120, %v3501_v30 }
  0xd8   : > { %3090 = vmatpush3.bf16.msk.msra.mxu0 %vm3089_vm1, %v4371_v36  ;;  %vm3091_vm4 = vmpackc.low %vm1374_vm3, %vm1373_vm2  ;;  %vm1361_vm2 = vcmp.eq.s32.totalorder %v3585_v47, %v3519_v9  ;;  %vm1362_vm3 = vcmp.eq.s32.totalorder %v3588_v48, %v3519_v9 }
  0xd9   : > { %3092 = vmatprep.subr.msk.bf16.mxu0 %vm3091_vm4, %v4371_v36  ;;  %vm3099_vm1 = vmpackc.low %vm1378_vm15, %vm1377_vm14  ;;  %vm1389_vm14 = vcmp.eq.s32.totalorder %v3628_v56, %v3519_v9  ;;  %vm1390_vm15 = vcmp.eq.s32.totalorder %v3631_v57, %v3519_v9 }
  0xda   : > { %vm3101_vm4 = vmpackc.low %vm1362_vm3, %vm1361_vm2  ;;  %vm1381_vm2 = vcmp.eq.s32.totalorder %v3646_v59, %v3519_v9  ;;  %vm1382_vm3 = vcmp.eq.s32.totalorder %v3649_v60, %v3519_v9 }
  0xdc   : > { %3094 = vmatpush3.bf16.msk.msra.mxu0 %vm3093_vm7, %v4371_v36  ;;  %vm3120_vm7 = vmpackc.low %vm1388_vm6, %vm1387_vm5  ;;  %vm1365_vm5 = vcmp.eq.s32.totalorder %v3653_v61, %v3519_v9  ;;  %vm1366_vm6 = vcmp.eq.s32.totalorder %v3656_v62, %v3519_v9 }
  0xdd   : > { %3096 = vmatprep.subr.msk.bf16.mxu0 %vm3095_vm10, %v4371_v36  ;;  %3121 = vmatpush3.bf16.msk.msra.mxu1 %vm3120_vm7, %v4371_v36  ;;  %vm3103_vm10 = vmpackc.low %vm1380_vm9, %vm1379_vm8  ;;  %vm1628_vm7 = vcmp.eq.s32.totalorder %v3512_v33, %v3659_v63  ;;  %vm1629_vm8 = vcmp.eq.s32.totalorder %v3515_v34, %v3659_v63 }
  0xde   : > { %3122 = vmatprep.subr.bf16.mxu1 %v4367_v50  ;;  %vm3109_vm9 = vmpackc.low %vm1366_vm6, %vm1365_vm5  ;;  %vm1631_vm5 = vcmp.eq.s32.totalorder %v3537_v38, %v3659_v63  ;;  %vm1614_vm6 = vcmp.eq.s32.totalorder %v3541_v39, %v3659_v63 }
  0xe0   : > { %3098 = vmatpush3.bf16.msk.msra.mxu0 %vm3097_vm13, %v4371_v36  ;;  %vm3105_vm13 = vmpackc.low %vm1364_vm12, %vm1363_vm11  ;;  %vm1613_vm11 = vcmp.eq.s32.totalorder %v3522_v35, %v3659_v63 }
  0xe1   : > { %3100 = vmatprep.subr.msk.bf16.mxu0 %vm3099_vm1, %v4371_v36  ;;  %vm3123_vm1 = vmpackc.low %vm1390_vm15, %vm1389_vm14  ;;  %vm1383_vm14 = vcmp.eq.s32.totalorder %v3680_v1, %v3519_v9  ;;  %vm1384_vm15 = vcmp.eq.s32.totalorder %v3684_v2, %v3519_v9 }
  0xe2   : > { %3124 = vmatpush3.bf16.msk.msra.mxu1 %vm3123_vm1, %v4371_v36  ;;  %vm3125_vm12 = vmpackc.low %vm1629_vm8, %vm1628_vm7  ;;  %vm1367_vm1 = vcmp.eq.s32.totalorder %v3687_v3, %v3519_v9  ;;  %vm1615_vm7 = vcmp.eq.s32.totalorder %v3544_v40, %v3659_v63 }
  0xe3   : > { %3126 = vmatprep.subr.msk.bf16.mxu1 %vm3125_vm12, %v4371_v36  ;;  %vm1386_vm12 = vcmp.eq.s32.totalorder %v3718_v7, %v3519_v9 }
  0xe4   : > { %3102 = vmatpush3.bf16.msk.msra.mxu0 %vm3101_vm4, %v4371_v36  ;;  %vm3107_vm4 = vmpackc.low %vm1382_vm3, %vm1381_vm2  ;;  %vm1368_vm2 = vcmp.eq.s32.totalorder %v3690_v4, %v3519_v9  ;;  %vm1630_vm3 = vcmp.eq.s32.totalorder %v3534_v37, %v3659_v63 }
  0xe5   : > { %3104 = vmatprep.subr.msk.bf16.mxu0 %vm3103_vm10, %v4371_v36  ;;  %vm1612_vm10 = vcmp.eq.s32.totalorder %v3501_v30, %v3659_v63  ;;  %vm3113_vm8 = vmpackc.low %vm1368_vm2, %vm1367_vm1  ;;  %vm1632_vm1 = vcmp.eq.s32.totalorder %v3556_v41, %v3659_v63 }
  0xe8   : > { %3106 = vmatpush3.bf16.msk.msra.mxu0 %vm3105_vm13, %v4371_v36  ;;  %vm3693_vm13 = vmpackc.low %vm1613_vm11, %vm1612_vm10  ;;  %vm1385_vm10 = vcmp.eq.s32.totalorder %v3714_v6, %v3519_v9 }
  0xe9   : > { %3108 = vmatprep.subr.msk.bf16.mxu0 %vm3107_vm4, %v4371_v36  ;;  %vm3111_vm4 = vmpackc.low %vm1384_vm15, %vm1383_vm14  ;;  %vm1369_vm14 = vcmp.eq.s32.totalorder %v3721_v8, %v3519_v9  ;;  %vm1370_vm15 = vcmp.eq.s32.totalorder %v3724_v10, %v3519_v9  ;;  %v4425_v9 = vmov 0 }
  0xea   : > { %vm3733_vm11 = vmpackc.low %vm1615_vm7, %vm1614_vm6 }
  0xeb   : > { %vm3115_vm2 = vmpackc.low %vm1386_vm12, %vm1385_vm10  ;;  %vm1634_vm10 = vcmp.eq.s32.totalorder %v3578_v45, %v3659_v63  ;;  %vm1635_vm12 = vcmp.eq.s32.totalorder %v3581_v46, %v3659_v63 }
  0xec   : > { %3110 = vmatpush3.bf16.msk.msra.mxu0 %vm3109_vm9, %v4371_v36  ;;  %vm3727_vm9 = vmpackc.low %vm1631_vm5, %vm1630_vm3  ;;  %vm1633_vm3 = vcmp.eq.s32.totalorder %v3559_v42, %v3659_v63  ;;  %vm1617_vm5 = vcmp.eq.s32.totalorder %v3566_v44, %v3659_v63 }
  0xed   : > { %3112 = vmatprep.subr.msk.bf16.mxu0 %vm3111_vm4, %v4371_v36  ;;  %vm1616_vm4 = vcmp.eq.s32.totalorder %v3563_v43, %v3659_v63  ;;  %vm3117_vm6 = vmpackc.low %vm1370_vm15, %vm1369_vm14  ;;  %vm1644_vm14 = vcmp.eq.s32.totalorder %v3595_v49, %v3659_v63  ;;  %vm1645_vm15 = vcmp.eq.s32.totalorder %v3603_v51, %v3659_v63 }
  0xee   : > { %vm3753_vm7 = vmpackc.low %vm1633_vm3, %vm1632_vm1  ;;  %vm1619_vm3 = vcmp.eq.s32.totalorder %v3588_v48, %v3659_v63 }
  0xef   : > { %vm3770_vm1 = vmpackc.low %vm1635_vm12, %vm1634_vm10  ;;  %vm1637_vm10 = vcmp.eq.s32.totalorder %v3612_v53, %v3659_v63 }
  0xf0   : > { %3114 = vmatpush3.bf16.msk.msra.mxu0 %vm3113_vm8, %v4371_v36  ;;  %vm3757_vm8 = vmpackc.low %vm1617_vm5, %vm1616_vm4 }
  0xf1   : > { %3116 = vmatprep.subr.msk.bf16.mxu0 %vm3115_vm2, %v4371_v36  ;;  %vm1618_vm2 = vcmp.eq.s32.totalorder %v3585_v47, %v3659_v63  ;;  %vm3778_vm4 = vmpackc.low %vm1645_vm15, %vm1644_vm14  ;;  %vm1646_vm14 = vcmp.eq.s32.totalorder %v3628_v56, %v3659_v63  ;;  %vm1647_vm15 = vcmp.eq.s32.totalorder %v3631_v57, %v3659_v63 }
  0xf2   : > { %v4402_v16 = vsel %vm3778_vm4, 4294967295, %v4401_v16  ;;  %vm3782_vm5 = vmpackc.low %vm1619_vm3, %vm1618_vm2  ;;  %vm1620_vm3 = vcmp.eq.s32.totalorder %v3618_v54, %v3659_v63  ;;  %vm1641_vm4 = vcmp.eq.s32.totalorder %v3684_v2, %v3659_v63 }
  0xf3   : > { %v4404_v17 = vsel %vm3782_vm5, 4294967295, %v4403_v17  ;;  %vm3799_vm2 = vmpackc.low %vm1647_vm15, %vm1646_vm14  ;;  %vm1882_vm14 = vcmp.eq.s32.totalorder %v3515_v34, %v3808_v21 }
  0xf4   : > { %3118 = vmatpush3.bf16.msk.msra.mxu0 %vm3117_vm6, %v4371_v36  ;;  %vm1636_vm6 = vcmp.eq.s32.totalorder %v3609_v52, %v3659_v63  ;;  %v4408_v20 = vsel %vm3799_vm2, 4294967295, %v4407_v20  ;;  %vm1638_vm2 = vcmp.eq.s32.totalorder %v3646_v59, %v3659_v63  ;;  %v4438_v36 = vmov 0 }
  0xf5   : > { %3157 = vmatprep.subr.bf16.mxu0 %v4367_v50  ;;  %vm3791_vm12 = vmpackc.low %vm1637_vm10, %vm1636_vm6  ;;  %vm1881_vm10 = vcmp.eq.s32.totalorder %v3512_v33, %v3808_v21  ;;  %v4432_v50 = vmov 0 }
  0xf6   : > { %v4406_v19 = vsel %vm3791_vm12, 4294967295, %v4405_v19  ;;  %vm3810_vm6 = vmpackc.low %vm1621_vm0, %vm1620_vm3  ;;  %vm1639_vm12 = vcmp.eq.s32.totalorder %v3649_v60, %v3659_v63  ;;  %vm1865_vm0 = vcmp.eq.s32.totalorder %v3501_v30, %v3808_v21  ;;  %vm1866_vm3 = vcmp.eq.s32.totalorder %v3522_v35, %v3808_v21 }
  0xf7   : > { %v4410_v22 = vsel %vm3810_vm6, 4294967295, %v4409_v22  ;;  %vm3818_vm15 = vmpackc.low %vm1882_vm14, %vm1881_vm10  ;;  %vm1622_vm10 = vcmp.eq.s32.totalorder %v3653_v61, %v3659_v63  ;;  %vm1623_vm14 = vcmp.eq.s32.totalorder %v3656_v62, %v3659_v63 }
  0xf8   : > { %v4412_v23 = vsel %vm3818_vm15, 4294967295, %v4411_v23  ;;  %vm3830_vm6 = vmpackc.low %vm1639_vm12, %vm1638_vm2  ;;  %vm1883_vm12 = vcmp.eq.s32.totalorder %v3534_v37, %v3808_v21  ;;  %vm1884_vm2 = vcmp.eq.s32.totalorder %v3537_v38, %v3808_v21 }
  0xf9   : > { %v4414_v24 = vsel %vm3830_vm6, 4294967295, %v4413_v24  ;;  %vm3838_vm15 = vmpackc.low %vm1866_vm3, %vm1865_vm0  ;;  %vm1640_vm6 = vcmp.eq.s32.totalorder %v3680_v1, %v3659_v63  ;;  %vm1867_vm3 = vcmp.eq.s32.totalorder %v3541_v39, %v3808_v21 }
  0xfa   : > { %v4416_v25 = vsel %vm3838_vm15, 4294967295, %v4415_v25  ;;  %vm3842_vm5 = vmpackc.low %vm1623_vm14, %vm1622_vm10  ;;  %vm1868_vm10 = vcmp.eq.s32.totalorder %v3544_v40, %v3808_v21  ;;  %vm1625_vm15 = vcmp.eq.s32.totalorder %v3690_v4, %v3659_v63 }
  0xfb   : > { %v4418_v26 = vsel %vm3842_vm5, 4294967295, %v4417_v26  ;;  %vm3854_vm0 = vmpackc.low %vm1884_vm2, %vm1883_vm12  ;;  %vm1624_vm5 = vcmp.eq.s32.totalorder %v3687_v3, %v3659_v63 }
  0xfc   : > { %v4420_v27 = vsel %vm3854_vm0, 4294967295, %v4419_v27  ;;  %vm3862_vm14 = vmpackc.low %vm1641_vm4, %vm1640_vm6  ;;  %vm1885_vm4 = vcmp.eq.s32.totalorder %v3556_v41, %v3808_v21  ;;  %vm1886_vm6 = vcmp.eq.s32.totalorder %v3559_v42, %v3808_v21  ;;  %vm1643_vm0 = vcmp.eq.s32.totalorder %v3718_v7, %v3659_v63 }
  0xfd   : > { %v4422_v28 = vsel %vm3862_vm14, 4294967295, %v4421_v28  ;;  %vm3870_vm12 = vmpackc.low %vm1868_vm10, %vm1867_vm3  ;;  %vm1642_vm14 = vcmp.eq.s32.totalorder %v3714_v6, %v3659_v63 }
  0xfe   : > { %v4424_v29 = vsel %vm3870_vm12, 4294967295, %v4423_v29  ;;  %vm3874_vm2 = vmpackc.low %vm1625_vm15, %vm1624_vm5  ;;  %vm1869_vm5 = vcmp.eq.s32.totalorder %v3563_v43, %v3808_v21  ;;  %vm1870_vm15 = vcmp.eq.s32.totalorder %v3566_v44, %v3808_v21  ;;  %vm1627_vm12 = vcmp.eq.s32.totalorder %v3724_v10, %v3659_v63 }
  0xff   : > { %v4426_v9 = vsel %vm3874_vm2, 4294967295, %v4425_v9  ;;  %vm3886_vm3 = vmpackc.low %vm1886_vm6, %vm1885_vm4  ;;  %vm1626_vm2 = vcmp.eq.s32.totalorder %v3721_v8, %v3659_v63  ;;  %v4441_v63 = vmov 0 }
 0x100   : > { %v4428_v58 = vsel %vm3886_vm3, 4294967295, %v4427_v58  ;;  %vm3894_vm10 = vmpackc.low %vm1643_vm0, %vm1642_vm14  ;;  %vm1887_vm0 = vcmp.eq.s32.totalorder %v3578_v45, %v3808_v21  ;;  %vm1888_vm14 = vcmp.eq.s32.totalorder %v3581_v46, %v3808_v21 }
 0x101   : > { %v4430_v18 = vsel %vm3894_vm10, 4294967295, %v4429_v18  ;;  %vm3902_vm4 = vmpackc.low %vm1870_vm15, %vm1869_vm5  ;;  %vm1871_vm5 = vcmp.eq.s32.totalorder %v3585_v47, %v3808_v21  ;;  %vm1872_vm15 = vcmp.eq.s32.totalorder %v3588_v48, %v3808_v21 }
 0x102   : > { %4431 = vst [vmem:[#allocation3_spill] sm:$0xff] %v4430_v18  ;;  %v4433_v50 = vsel %vm3902_vm4, 4294967295, %v4432_v50  ;;  %vm3906_vm6 = vmpackc.low %vm1627_vm12, %vm1626_vm2  ;;  %vm1897_vm2 = vcmp.eq.s32.totalorder %v3595_v49, %v3808_v21 }
 0x103   : > { %4434 = vst [vmem:[#allocation4_spill] sm:$0xff] %v4433_v50  ;;  %v4436_v0 = vsel %vm3906_vm6, 4294967295, %v4435_v0  ;;  %vm3914_vm10 = vmpackc.low %vm1888_vm14, %vm1887_vm0  ;;  %vm1898_vm6 = vcmp.eq.s32.totalorder %v3603_v51, %v3808_v21  ;;  %vm1889_vm14 = vcmp.eq.s32.totalorder %v3609_v52, %v3808_v21  ;;  %v4451_v50 = vmov 0 }
 0x104   : > { %4437 = vst [vmem:[#allocation5_spill] sm:$0xff] %v4436_v0  ;;  %v4439_v36 = vsel %vm3914_vm10, 4294967295, %v4438_v36  ;;  %vm3922_vm12 = vmpackc.low %vm1872_vm15, %vm1871_vm5  ;;  %v4444_v0 = vmov 0  ;;  %vm1890_vm10 = vcmp.eq.s32.totalorder %v3612_v53, %v3808_v21  ;;  %vm1873_vm5 = vcmp.eq.s32.totalorder %v3618_v54, %v3808_v21 }
 0x105   : > { %4440 = vst [vmem:[#allocation6_spill] sm:$0xff] %v4439_v36  ;;  %v4442_v63 = vsel %vm3922_vm12, 4294967295, %v4441_v63  ;;  %vm3930_vm0 = vmpackc.low %vm1898_vm6, %vm1897_vm2  ;;  %vm1874_vm15 = vcmp.eq.s32.totalorder %v3621_v55, %v3808_v21  ;;  %v2113_v36 = vadd.s32 19, %v3509_v32  ;;  %vm1899_vm2 = vcmp.eq.s32.totalorder %v3628_v56, %v3808_v21 }
 0x106   : > { %4443 = vst [vmem:[#allocation7_spill] sm:$0xff] %v4442_v63  ;;  %v4445_v0 = vsel %vm3930_vm0, 4294967295, %v4444_v0  ;;  %vm3942_vm12 = vmpackc.low %vm1890_vm10, %vm1889_vm14  ;;  %v4447_v63 = vmov 0  ;;  %vm1900_vm0 = vcmp.eq.s32.totalorder %v3631_v57, %v3808_v21  ;;  %vm1891_vm10 = vcmp.eq.s32.totalorder %v3646_v59, %v3808_v21 }
 0x107   : > { %4446 = vst [vmem:[#allocation8_spill] sm:$0xff] %v4445_v0  ;;  %v4448_v63 = vsel %vm3942_vm12, 4294967295, %v4447_v63  ;;  %vm3947_vm6 = vmpackc.low %vm1874_vm15, %vm1873_vm5  ;;  %v4449_v0 = vmov 0  ;;  %v3960_v18 = vrot.slane %v2113_v36, %v3504_v31  ;;  %vm1892_vm14 = vcmp.eq.s32.totalorder %v3649_v60, %v3808_v21 }
 0x108   : > { %v4450_v0 = vsel %vm3947_vm6, 4294967295, %v4449_v0  ;;  %vm3955_vm4 = vmpackc.low %vm1900_vm0, %vm1899_vm2  ;;  %vm1875_vm5 = vcmp.eq.s32.totalorder %v3653_v61, %v3808_v21  ;;  %vm1876_vm15 = vcmp.eq.s32.totalorder %v3656_v62, %v3808_v21  ;;  %v4453_v32 = vmov 0 }
 0x109   : > { %v4452_v50 = vsel %vm3955_vm4, 4294967295, %v4451_v50  ;;  %vm3970_vm6 = vmpackc.low %vm1892_vm14, %vm1891_vm10  ;;  %vm2134_vm0 = vcmp.eq.s32.totalorder %v3512_v33, %v3960_v18  ;;  %vm2135_vm2 = vcmp.eq.s32.totalorder %v3515_v34, %v3960_v18  ;;  %v4456_v36 = vmov 0  ;;  %v4526_v13 = vld [vmem:[#allocation3_spill] sm:$0xff] }
 0x10a   : > { %v4454_v32 = vsel %vm3970_vm6, 4294967295, %v4453_v32  ;;  %vm3978_vm4 = vmpackc.low %vm1876_vm15, %vm1875_vm5  ;;  %vm2118_vm12 = vcmp.eq.s32.totalorder %v3501_v30, %v3960_v18  ;;  %vm2119_vm3 = vcmp.eq.s32.totalorder %v3522_v35, %v3960_v18  ;;  %v4458_v31 = vmov 0  ;;  %v4528_v14 = vld [vmem:[#allocation4_spill] sm:$0xff] }
 0x10b   : > { %4455 = vst [vmem:[#allocation9_spill] sm:$0xff] %v4454_v32  ;;  %v4457_v36 = vsel %vm3978_vm4, 4294967295, %v4456_v36  ;;  %vm3986_vm10 = vmpackc.low %vm2135_vm2, %vm2134_vm0  ;;  %v4460_v32 = vmov 0  ;;  %vm1893_vm5 = vcmp.eq.s32.totalorder %v3680_v1, %v3808_v21  ;;  %vm1894_vm15 = vcmp.eq.s32.totalorder %v3684_v2, %v3808_v21  ;;  %v4530_v15 = vld [vmem:[#allocation5_spill] sm:$0xff] }
 0x10c   : > { %v4459_v31 = vsel %vm3986_vm10, 4294967295, %v4458_v31  ;;  %vm3990_vm14 = vmpackc.low %vm2119_vm3, %vm2118_vm12  ;;  %v4462_v33 = vmov 0  ;;  %vm1877_vm0 = vcmp.eq.s32.totalorder %v3687_v3, %v3808_v21  ;;  %vm1878_vm2 = vcmp.eq.s32.totalorder %v3690_v4, %v3808_v21 }
 0x10d   : > { %v4461_v32 = vsel %vm3990_vm14, 4294967295, %v4460_v32  ;;  %vm3998_vm4 = vmpackc.low %vm1894_vm15, %vm1893_vm5  ;;  %vm2136_vm3 = vcmp.eq.s32.totalorder %v3534_v37, %v3960_v18  ;;  %vm2137_vm12 = vcmp.eq.s32.totalorder %v3537_v38, %v3960_v18  ;;  %v4464_v30 = vmov 0 }
 0x10e   : > { %v4463_v33 = vsel %vm3998_vm4, 4294967295, %v4462_v33  ;;  %vm4010_vm14 = vmpackc.low %vm1878_vm2, %vm1877_vm0  ;;  %vm2120_vm5 = vcmp.eq.s32.totalorder %v3541_v39, %v3960_v18  ;;  %vm2121_vm15 = vcmp.eq.s32.totalorder %v3544_v40, %v3960_v18  ;;  %v4466_v34 = vmov 0 }
 0x10f   : > { %v4465_v30 = vsel %vm4010_vm14, 4294967295, %v4464_v30  ;;  %vm4018_vm4 = vmpackc.low %vm2137_vm12, %vm2136_vm3  ;;  %v4468_v35 = vmov 0  ;;  %vm1895_vm0 = vcmp.eq.s32.totalorder %v3714_v6, %v3808_v21  ;;  %vm1896_vm2 = vcmp.eq.s32.totalorder %v3718_v7, %v3808_v21 }
 0x110   : > { %v4467_v34 = vsel %vm4018_vm4, 4294967295, %v4466_v34  ;;  %vm4022_vm10 = vmpackc.low %vm2121_vm15, %vm2120_vm5  ;;  %vm1879_vm14 = vcmp.eq.s32.totalorder %v3721_v8, %v3808_v21  ;;  %vm1880_vm6 = vcmp.eq.s32.totalorder %v3724_v10, %v3808_v21  ;;  %v4470_v37 = vmov 0 }
 0x111   : > { %v4469_v35 = vsel %vm4022_vm10, 4294967295, %v4468_v35  ;;  %vm4034_vm3 = vmpackc.low %vm1896_vm2, %vm1895_vm0  ;;  %vm2138_vm12 = vcmp.eq.s32.totalorder %v3556_v41, %v3960_v18  ;;  %vm2139_vm5 = vcmp.eq.s32.totalorder %v3559_v42, %v3960_v18  ;;  %v4472_v38 = vmov 0 }
 0x112   : > { %v4471_v37 = vsel %vm4034_vm3, 4294967295, %v4470_v37  ;;  %vm4042_vm15 = vmpackc.low %vm1880_vm6, %vm1879_vm14  ;;  %vm2122_vm10 = vcmp.eq.s32.totalorder %v3563_v43, %v3960_v18  ;;  %vm2123_vm4 = vcmp.eq.s32.totalorder %v3566_v44, %v3960_v18  ;;  %v4476_v40 = vmov 0 }
 0x113   : > { %v4473_v38 = vsel %vm4042_vm15, 4294967295, %v4472_v38  ;;  %vm4050_vm0 = vmpackc.low %vm2139_vm5, %vm2138_vm12  ;;  %vm2140_vm6 = vcmp.eq.s32.totalorder %v3578_v45, %v3960_v18  ;;  %vm2141_vm14 = vcmp.eq.s32.totalorder %v3581_v46, %v3960_v18  ;;  %vm2150_vm15 = vcmp.eq.s32.totalorder %v3595_v49, %v3960_v18 }
 0x114   : > { %vm4054_vm2 = vmpackc.low %vm2123_vm4, %vm2122_vm10  ;;  %vm2151_vm3 = vcmp.eq.s32.totalorder %v3603_v51, %v3960_v18  ;;  %v4478_v41 = vmov 0  ;;  %vm2124_vm4 = vcmp.eq.s32.totalorder %v3585_v47, %v3960_v18  ;;  %vm2125_vm10 = vcmp.eq.s32.totalorder %v3588_v48, %v3960_v18 }
 0x115   : > { %v4477_v40 = vsel %vm4054_vm2, 4294967295, %v4476_v40  ;;  %vm4066_vm12 = vmpackc.low %vm2141_vm14, %vm2140_vm6  ;;  %v4482_v43 = vmov 0  ;;  %vm2142_vm6 = vcmp.eq.s32.totalorder %v3609_v52, %v3960_v18  ;;  %vm2143_vm14 = vcmp.eq.s32.totalorder %v3612_v53, %v3960_v18 }
 0x116   : > { %v4479_v41 = vsel %vm4066_vm12, 4294967295, %v4478_v41  ;;  %vm4074_vm5 = vmpackc.low %vm2151_vm3, %vm2150_vm15  ;;  %v4484_v44 = vmov 0  ;;  %vm2152_vm3 = vcmp.eq.s32.totalorder %v3628_v56, %v3960_v18  ;;  %vm2153_vm15 = vcmp.eq.s32.totalorder %v3631_v57, %v3960_v18 }
 0x117   : > { %vm4078_vm2 = vmpackc.low %vm2125_vm10, %vm2124_vm4  ;;  %v4486_v45 = vmov 0  ;;  %vm2126_vm10 = vcmp.eq.s32.totalorder %v3618_v54, %v3960_v18  ;;  %v4488_v46 = vmov 0  ;;  %v4490_v51 = vmov 0 }
 0x118   : > { %v4483_v43 = vsel %vm4078_vm2, 4294967295, %v4482_v43  ;;  %vm4086_vm12 = vmpackc.low %vm2143_vm14, %vm2142_vm6  ;;  %vm2127_vm2 = vcmp.eq.s32.totalorder %v3621_v55, %v3960_v18  ;;  %vm2144_vm14 = vcmp.eq.s32.totalorder %v3646_v59, %v3960_v18  ;;  %v4493_v53 = vmov 0 }
 0x119   : > { %v4485_v44 = vsel %vm4086_vm12, 4294967295, %v4484_v44  ;;  %vm4094_vm4 = vmpackc.low %vm2153_vm15, %vm2152_vm3  ;;  %vm2145_vm3 = vcmp.eq.s32.totalorder %v3649_v60, %v3960_v18  ;;  %v4496_v54 = vmov 0  ;;  %vm2131_vm12 = vcmp.eq.s32.totalorder %v3690_v4, %v3960_v18 }
 0x11a   : > { %v4487_v45 = vsel %vm4094_vm4, 4294967295, %v4486_v45  ;;  %vm4102_vm6 = vmpackc.low %vm2127_vm2, %vm2126_vm10  ;;  %vm2128_vm4 = vcmp.eq.s32.totalorder %v3653_v61, %v3960_v18  ;;  %vm2129_vm2 = vcmp.eq.s32.totalorder %v3656_v62, %v3960_v18  ;;  %v4499_v55 = vmov 0 }
 0x11b   : > { %v4489_v46 = vsel %vm4102_vm6, 4294967295, %v4488_v46  ;;  %vm4110_vm15 = vmpackc.low %vm2145_vm3, %vm2144_vm14  ;;  %vm2146_vm6 = vcmp.eq.s32.totalorder %v3680_v1, %v3960_v18  ;;  %vm2147_vm14 = vcmp.eq.s32.totalorder %v3684_v2, %v3960_v18  ;;  %v4502_v61 = vmov 0 }
 0x11c   : > { %v4491_v51 = vsel %vm4110_vm15, 4294967295, %v4490_v51  ;;  %vm4118_vm10 = vmpackc.low %vm2129_vm2, %vm2128_vm4  ;;  %vm2130_vm15 = vcmp.eq.s32.totalorder %v3687_v3, %v3960_v18  ;;  %vm2148_vm2 = vcmp.eq.s32.totalorder %v3714_v6, %v3960_v18  ;;  %v4505_v2 = vmov 0 }
 0x11d   : > { %4492 = vst [vmem:[#allocation10_spill] sm:$0xff] %v4491_v51  ;;  %v4494_v53 = vsel %vm4118_vm10, 4294967295, %v4493_v53  ;;  %vm4126_vm3 = vmpackc.low %vm2147_vm14, %vm2146_vm6  ;;  %vm2149_vm6 = vcmp.eq.s32.totalorder %v3718_v7, %v3960_v18 }
 0x11e   : > { %4495 = vst [vmem:[#allocation11_spill] sm:$0xff] %v4494_v53  ;;  %v4497_v54 = vsel %vm4126_vm3, 4294967295, %v4496_v54  ;;  %vm4134_vm4 = vmpackc.low %vm2131_vm12, %vm2130_vm15  ;;  %vm2132_vm12 = vcmp.eq.s32.totalorder %v3721_v8, %v3960_v18  ;;  %vm2133_vm15 = vcmp.eq.s32.totalorder %v3724_v10, %v3960_v18 }
 0x11f   : > { %4498 = vst [vmem:[#allocation12_spill] sm:$0xff] %v4497_v54  ;;  %v4500_v55 = vsel %vm4134_vm4, 4294967295, %v4499_v55  ;;  %vm4142_vm14 = vmpackc.low %vm2149_vm6, %vm2148_vm2  ;;  %vm1463_vm2 = vcmask 261120   ;;  %vm4517_vm6 = vnez %v4412_v23 }
 0x120   : > { %4501 = vst [vmem:[#allocation13_spill] sm:$0xff] %v4500_v55  ;;  %v4503_v61 = vsel %vm4142_vm14, 4294967295, %v4502_v61  ;;  %vm4150_vm4 = vmpackc.low %vm2133_vm15, %vm2132_vm12  ;;  %vm4518_vm12 = vnez %v4414_v24  ;;  %vm4519_vm15 = vnez %v4416_v25 }
 0x121   : > { %4504 = vst [vmem:[#allocation14_spill] sm:$0xff] %v4503_v61  ;;  %v4506_v2 = vsel %vm4150_vm4, 4294967295, %v4505_v2 }
 0x122   : > { %4507 = vst [vmem:[#allocation15_spill] sm:$0xff] %v4506_v2 }
 0x161   : > { %v376_v47 = vpop.f32.mrb[0].mxu1 }
 0x162   : > { %v2993_v48 = vpop.f32.mrb[1].mxu1 }
 0x163   : > { %v379_v49 = vpop.f32.mrb[2].mxu1 }
 0x164   : > { %v2994_v52 = vpop.f32.mrb[3].mxu1 }
 0x169   : > { %v469_v56 = vpop.f32.mrb[4].mxu1 }
 0x16a   : > { %v470_v57 = vadd.f32 %v469_v56, %v376_v47  ;;  %v335_v59 = vpop.f32.mrb[0].mxu0  ;;  %v2999_v60 = vpop.f32.mrb[5].mxu1 }
 0x16b   : > { %v337_v62 = vpop.f32.mrb[1].mxu0  ;;  %v472_v1 = vpop.f32.mrb[6].mxu1 }
 0x16c   : > { %v339_v3 = vpop.f32.mrb[2].mxu0  ;;  %v3000_v4 = vpop.f32.mrb[7].mxu1 }
 0x16d   : > { %v340_v6 = vpop.f32.mrb[3].mxu0 }
 0x171   : > { %v584_v7 = vpop.f32.mrb[8].mxu1 }
 0x172   : > { %v592_v21 = vadd.f32 %v584_v7, %v470_v57  ;;  %v428_v47 = vpop.f32.mrb[4].mxu0  ;;  %v3005_v48 = vpop.f32.mrb[9].mxu1 }
 0x173   : > { %v429_v49 = vadd.f32 %v428_v47, %v335_v59  ;;  %v430_v52 = vpop.f32.mrb[5].mxu0  ;;  %v587_v56 = vpop.f32.mrb[10].mxu1 }
 0x174   : > { %v431_v8 = vadd.f32 %v430_v52, %v337_v62  ;;  %v3006_v60 = vpop.f32.mrb[11].mxu1  ;;  %v432_v61 = vpop.f32.mrb[6].mxu0 }
 0x175   : > { %v433_v10 = vpop.f32.mrb[7].mxu0 }
 0x179   : > { %v702_v18 = vpop.f32.mrb[12].mxu1 }
 0x17a   : > { %v710_v1 = vadd.f32 %v702_v18, %v592_v21  ;;  %v543_v55 = vpop.f32.mrb[8].mxu0  ;;  %v3011_v54 = vpop.f32.mrb[13].mxu1 }
 0x17b   : > { %v590_v53 = vadd.f32 %v543_v55, %v429_v49  ;;  %v545_v2 = vpop.f32.mrb[9].mxu0  ;;  %v705_v3 = vpop.f32.mrb[14].mxu1 }
 0x17c   : > { %v591_v4 = vadd.f32 %v545_v2, %v431_v8  ;;  %v547_v6 = vpop.f32.mrb[10].mxu0  ;;  %v3012_v51 = vpop.f32.mrb[15].mxu1 }
 0x17d   : > { %v548_v57 = vpop.f32.mrb[11].mxu0 }
 0x181   : > { %v820_v7 = vpop.f32.mrb[16].mxu1 }
 0x182   : > { %v828_v48 = vadd.f32 %v820_v7, %v710_v1  ;;  %v661_v59 = vpop.f32.mrb[12].mxu0  ;;  %v3017_v47 = vpop.f32.mrb[17].mxu1 }
 0x183   : > { %v708_v56 = vadd.f32 %v661_v59, %v590_v53  ;;  %v663_v62 = vpop.f32.mrb[13].mxu0  ;;  %v823_v52 = vpop.f32.mrb[18].mxu1 }
 0x184   : > { %v709_v61 = vadd.f32 %v663_v62, %v591_v4  ;;  %v665_v60 = vpop.f32.mrb[14].mxu0  ;;  %v3018_v10 = vpop.f32.mrb[19].mxu1 }
 0x185   : > { %v666_v21 = vpop.f32.mrb[15].mxu0 }
 0x189   : > { %v938_v18 = vpop.f32.mrb[20].mxu1 }
 0x18a   : > { %v946_v54 = vadd.f32 %v938_v18, %v828_v48  ;;  %v779_v55 = vpop.f32.mrb[16].mxu0  ;;  %v3023_v49 = vpop.f32.mrb[21].mxu1 }
 0x18b   : > { %v826_v3 = vadd.f32 %v779_v55, %v708_v56  ;;  %v781_v2 = vpop.f32.mrb[17].mxu0  ;;  %v941_v8 = vpop.f32.mrb[22].mxu1 }
 0x18c   : > { %v827_v51 = vadd.f32 %v781_v2, %v709_v61  ;;  %v783_v6 = vpop.f32.mrb[18].mxu0  ;;  %v3024_v57 = vpop.f32.mrb[23].mxu1 }
 0x18d   : > { %v784_v1 = vpop.f32.mrb[19].mxu0 }
 0x191   : > { %v1056_v7 = vpop.f32.mrb[24].mxu1 }
 0x192   : > { %v1064_v47 = vadd.f32 %v1056_v7, %v946_v54  ;;  %v897_v53 = vpop.f32.mrb[20].mxu0  ;;  %v3029_v59 = vpop.f32.mrb[25].mxu1 }
 0x193   : > { %v944_v52 = vadd.f32 %v897_v53, %v826_v3  ;;  %v899_v4 = vpop.f32.mrb[21].mxu0  ;;  %v1059_v62 = vpop.f32.mrb[26].mxu1 }
 0x194   : > { %v945_v60 = vadd.f32 %v899_v4, %v827_v51  ;;  %v901_v10 = vpop.f32.mrb[22].mxu0  ;;  %v3030_v21 = vpop.f32.mrb[27].mxu1 }
 0x195   : > { %v902_v48 = vpop.f32.mrb[23].mxu0  ;;  %v1305_v59 = vpop.permute.xlu0 %1304 }
 0x199   : > { %v1174_v18 = vpop.f32.mrb[28].mxu1 }
 0x19a   : > { %v1182_v49 = vadd.f32 %v1174_v18, %v1064_v47  ;;  %v1015_v56 = vpop.f32.mrb[24].mxu0  ;;  %v3035_v55 = vpop.f32.mrb[29].mxu1 }
 0x19b   : > { %v1062_v8 = vadd.f32 %v1015_v56, %v944_v52  ;;  %v1017_v61 = vpop.f32.mrb[25].mxu0  ;;  %v1177_v2 = vpop.f32.mrb[30].mxu1 }
 0x19c   : > { %v1063_v6 = vadd.f32 %v1017_v61, %v945_v60  ;;  %v1019_v57 = vpop.f32.mrb[26].mxu0  ;;  %v3036_v1 = vpop.f32.mrb[31].mxu1  ;;  %v4508_v60 = vmov 1.0|1.0  }
 0x19d   : > { %v1020_v54 = vpop.f32.mrb[27].mxu0 }
 0x1a1   : > { %v1292_v7 = vpop.f32.mrb[32].mxu1 }
 0x1a2   : > { %v1300_v3 = vadd.f32 %v1292_v7, %v1182_v49  ;;  %v1133_v53 = vpop.f32.mrb[28].mxu0  ;;  %v3041_v62 = vpop.f32.mrb[33].mxu1 }
 0x1a3   : > { %v1180_v51 = vadd.f32 %v1133_v53, %v1062_v8  ;;  %v1135_v4 = vpop.f32.mrb[29].mxu0  ;;  %v1295_v10 = vpop.f32.mrb[34].mxu1  ;;  %v4566_v62 = vld [vmem:[#allocation2_spill] sm:$0xff] }
 0x1a4   : > { %v1309_v21 = vadd.f32 %v1305_v59, %v1300_v3  ;;  %v1181_v48 = vadd.f32 %v1135_v4, %v1063_v6  ;;  %v1137_v47 = vpop.f32.mrb[30].mxu0  ;;  %v3042_v18 = vpop.f32.mrb[35].mxu1 }
 0x1a5   : > { %v1138_v55 = vpop.f32.mrb[31].mxu0 }
 0x1a6   : > { %v4154_v52 = vmax.f32 %v1309_v21, 0.0 }
 0x1a8   : > { %3052 = vmatmul.mubr.msk.f32.vlgmr.msra.gmra.mrb[36].mxu1 %vm1463_vm2, %v4154_v52 }
 0x1a9   : > { %3128 = vmatpush3.bf16.msk.msra.mxu1 %vm3693_vm13, %v4508_v60  ;;  %vm4509_vm13 = vnez %v4402_v16  ;;  %v4532_v16 = vld [vmem:[#allocation6_spill] sm:$0xff] }
 0x1aa   : > { %v1251_v49 = vpop.f32.mrb[32].mxu0  ;;  %3130 = vmatprep.subr.msk.bf16.mxu1 %vm3727_vm9, %v4508_v60  ;;  %vm4511_vm9 = vmmov 0  }
 0x1ab   : > { %v1298_v56 = vadd.f32 %v1251_v49, %v1180_v51  ;;  %v1253_v8 = vpop.f32.mrb[33].mxu0 }
 0x1ac   : > { %v1299_v61 = vadd.f32 %v1253_v8, %v1181_v48  ;;  %v1255_v2 = vpop.f32.mrb[34].mxu0 }
 0x1ad   : > { %v1307_v6 = vadd.f32 %v1305_v59, %v1298_v56  ;;  %3132 = vmatpush3.bf16.msk.msra.mxu1 %vm3733_vm11, %v4508_v60  ;;  %v1256_v57 = vpop.f32.mrb[35].mxu0  ;;  %vm4512_vm11 = vnez %v4404_v17  ;;  %v4534_v17 = vld [vmem:[#allocation7_spill] sm:$0xff] }
 0x1ae   : > { %v1308_v1 = vadd.f32 %v1305_v59, %v1299_v61  ;;  %3134 = vmatprep.subr.msk.bf16.mxu1 %vm3753_vm7, %v4508_v60  ;;  %vm4514_vm7 = vnez %v4406_v19  ;;  %v4536_v19 = vld [vmem:[#allocation8_spill] sm:$0xff] }
 0x1af   : > { %v4170_v54 = vmax.f32 %v1307_v6, 0.0 }
 0x1b0   : > { %v1311_v5 = vmax.f32 %v1308_v1, 0.0 }
 0x1b1   : > { %3136 = vmatpush3.bf16.msk.msra.mxu1 %vm3757_vm8, %v4508_v60  ;;  %vm4515_vm8 = vnez %v4408_v20  ;;  %v4541_v20 = vld [vmem:[#allocation9_spill] sm:$0xff] }
 0x1b2   : > { %1531 = vmatprep.mubr.f32.mxu0 %v1311_v5  ;;  %1784 = vmatprep.mubr.f32.mxu1 %v1311_v5 }
 0x1b3   : > { %1532 = vmatmul.mubr.f32.vlgmr.msra.gmra.mrb[36].mxu0 %v4170_v54  ;;  %3138 = vmatprep.subr.msk.bf16.mxu1 %vm3770_vm1, %v4508_v60  ;;  %vm4516_vm1 = vnez %v4410_v22  ;;  %v4562_v22 = vld [vmem:[#allocation13_spill] sm:$0xff] }
 0x1b4   : > { %3159 = vmatpush3.bf16.msk.msra.mxu0 %vm4509_vm13, %v4508_v60  ;;  %3062 = vmatprep.mubr.msk.f32.mxu0 %vm4511_vm9, %v4510_v11  ;;  %vm4520_vm13 = vnez %v4418_v26 }
 0x1b5   : > { %3140 = vmatpush3.bf16.msk.msra.mxu1 %vm4512_vm11, %v4508_v60  ;;  %3160 = vmatprep.subr.bf16.mxu0 %v4513_v12  ;;  %vm4521_vm11 = vnez %v4420_v27 }
 0x1b6   : > { %3142 = vmatprep.subr.msk.bf16.mxu1 %vm4514_vm7, %v4508_v60  ;;  %vm4522_vm7 = vnez %v4422_v28 }
 0x1b8   : > { %3162 = vmatpush3.bf16.msk.msra.mxu0 %vm4515_vm8, %v4508_v60  ;;  %vm4523_vm8 = vnez %v4424_v29 }
 0x1b9   : > { %3144 = vmatpush3.bf16.msk.msra.mxu1 %vm4516_vm1, %v4508_v60  ;;  %3164 = vmatprep.subr.msk.bf16.mxu0 %vm4517_vm6, %v4508_v60  ;;  %vm4524_vm1 = vnez %v4426_v9  ;;  %vm4525_vm6 = vnez %v4428_v58 }
 0x1ba   : > { %3146 = vmatprep.subr.msk.bf16.mxu1 %vm4518_vm12, %v4508_v60  ;;  %vm4527_vm12 = vnez %v4526_v13 }
 0x1bb   : > { %3063 = vmatmul.mubr.msk.f32.vlgmr.msra.gmra.mrb[38].mxu0 %vm1463_vm2, %v4154_v52 }
 0x1bc   : > { %3166 = vmatpush3.bf16.msk.msra.mxu0 %vm4519_vm15, %v4508_v60  ;;  %2037 = vmatprep.mubr.f32.mxu0 %v1311_v5  ;;  %vm4529_vm15 = vnez %v4528_v14 }
 0x1bd   : > { %3148 = vmatpush3.bf16.msk.msra.mxu1 %vm4520_vm13, %v4508_v60  ;;  %3168 = vmatprep.subr.msk.bf16.mxu0 %vm4521_vm11, %v4508_v60  ;;  %vm4531_vm13 = vnez %v4530_v15  ;;  %vm4533_vm11 = vnez %v4532_v16 }
 0x1be   : > { %3150 = vmatprep.subr.msk.bf16.mxu1 %vm4522_vm7, %v4508_v60  ;;  %vm4535_vm7 = vnez %v4534_v17 }
 0x1c0   : > { %3170 = vmatpush3.bf16.msk.msra.mxu0 %vm4523_vm8, %v4508_v60  ;;  %vm4537_vm8 = vnez %v4536_v19 }
 0x1c1   : > { %3152 = vmatpush3.bf16.msk.msra.mxu1 %vm4524_vm1, %v4508_v60  ;;  %3172 = vmatprep.subr.msk.bf16.mxu0 %vm4525_vm6, %v4508_v60  ;;  %vm4538_vm1 = vnez %v4448_v63  ;;  %vm4539_vm6 = vnez %v4450_v0  ;;  %v4558_v0 = vld [vmem:[#allocation10_spill] sm:$0xff] }
 0x1c2   : > { %3154 = vmatprep.subr.msk.bf16.mxu1 %vm4527_vm12, %v4508_v60  ;;  %vm4540_vm12 = vnez %v4452_v50 }
 0x1c4   : > { %3174 = vmatpush3.bf16.msk.msra.mxu0 %vm4529_vm15, %v4508_v60  ;;  %vm4542_vm15 = vnez %v4541_v20 }
 0x1c5   : > { %3156 = vmatpush3.bf16.msk.msra.mxu1 %vm4531_vm13, %v4508_v60  ;;  %3176 = vmatprep.subr.msk.bf16.mxu0 %vm4533_vm11, %v4508_v60  ;;  %vm4543_vm13 = vnez %v4459_v31  ;;  %vm4544_vm11 = vnez %v4457_v36 }
 0x1c6   : > { %3195 = vmatprep.subr.bf16.mxu1 %v4513_v12 }
 0x1c8   : > { %1785 = vmatmul.mubr.f32.vlgmr.msra.gmra.mrb[38].mxu1 %v4170_v54  ;;  %3178 = vmatpush3.bf16.msk.msra.mxu0 %vm4535_vm7, %v4508_v60  ;;  %vm4545_vm7 = vnez %v4461_v32 }
 0x1c9   : > { %3197 = vmatpush3.bf16.msk.msra.mxu1 %vm4537_vm8, %v4508_v60  ;;  %3180 = vmatprep.subr.msk.bf16.mxu0 %vm4538_vm1, %v4508_v60  ;;  %vm4546_vm8 = vnez %v4463_v33  ;;  %vm4547_vm1 = vnez %v4467_v34 }
 0x1ca   : > { %3198 = vmatprep.subr.bf16.mxu1 %v4513_v12  ;;  %3073 = vmatprep.mubr.msk.f32.mxu1 %vm4511_vm9, %v4510_v11 }
 0x1cc   : > { %3182 = vmatpush3.bf16.msk.msra.mxu0 %vm4539_vm6, %v4508_v60  ;;  %vm4548_vm6 = vnez %v4465_v30 }
 0x1cd   : > { %3200 = vmatpush3.bf16.msk.msra.mxu1 %vm4540_vm12, %v4508_v60  ;;  %3184 = vmatprep.subr.msk.bf16.mxu0 %vm4542_vm15, %v4508_v60  ;;  %vm4549_vm12 = vnez %v4469_v35  ;;  %vm4550_vm15 = vnez %v4471_v37 }
 0x1ce   : > { %3202 = vmatprep.subr.msk.bf16.mxu1 %vm4543_vm13, %v4508_v60  ;;  %vm4551_vm13 = vnez %v4473_v38 }
 0x1d0   : > { %3186 = vmatpush3.bf16.msk.msra.mxu0 %vm4544_vm11, %v4508_v60  ;;  %3074 = vmatmul.mubr.msk.f32.vlgmr.msra.gmra.mrb[40].mxu1 %vm1463_vm2, %v4154_v52  ;;  %vm4552_vm11 = vnez %v4477_v40 }
 0x1d1   : > { %3204 = vmatpush3.bf16.msk.msra.mxu1 %vm4545_vm7, %v4508_v60  ;;  %2290 = vmatprep.mubr.f32.mxu1 %v1311_v5  ;;  %vm4553_vm7 = vnez %v4479_v41 }
 0x1d2   : > { %3188 = vmatprep.subr.msk.bf16.mxu0 %vm4546_vm8, %v4508_v60  ;;  %3206 = vmatprep.subr.msk.bf16.mxu1 %vm4547_vm1, %v4508_v60  ;;  %vm4555_vm8 = vnez %v4485_v44  ;;  %vm4556_vm1 = vnez %v4487_v45  ;;  %v2366_v44 = vld [vmem:[%s4362_s4] sm:$0x1] }
 0x1d3   : > { %v2381_v45 = vadd.s32 16, %v2366_v44  ;;  %v2369_v7 = vadd.s32 1, %v2366_v44  ;;  %v2373_v10 = vrot.slane %v2366_v44, %v4566_v62 }
 0x1d4   : > { %3190 = vmatpush3.bf16.msk.msra.mxu0 %vm4548_vm6, %v4508_v60  ;;  %vm4563_vm6 = vnez %v4562_v22 }
 0x1d5   : > { %3208 = vmatpush3.bf16.msk.msra.mxu1 %vm4549_vm12, %v4508_v60  ;;  %3192 = vmatprep.subr.msk.bf16.mxu0 %vm4550_vm15, %v4508_v60  ;;  %v2386_v51 = vrot.slane %v2381_v45, %v4566_v62  ;;  %v2377_v21 = vrot.slane %v2369_v7, %v4566_v62 }
 0x1d6   : > { %3210 = vmatprep.subr.msk.bf16.mxu1 %vm4050_vm0, %v4508_v60  ;;  %vm4554_vm0 = vnez %v4483_v43 }
 0x1d8   : > { %3194 = vmatpush3.bf16.msk.msra.mxu0 %vm4551_vm13, %v4508_v60 }
 0x1d9   : > { %3212 = vmatpush3.bf16.msk.msra.mxu1 %vm4552_vm11, %v4508_v60  ;;  %3233 = vmatprep.subr.bf16.mxu0 %v4513_v12 }
 0x1da   : > { %3214 = vmatprep.subr.msk.bf16.mxu1 %vm4553_vm7, %v4508_v60 }
 0x1db   : > { %2038 = vmatmul.mubr.f32.vlgmr.msra.gmra.mrb[40].mxu0 %v4170_v54 }
 0x1dc   : > { %3235 = vmatpush3.bf16.msk.msra.mxu0 %vm4074_vm5, %v4508_v60  ;;  %3084 = vmatprep.mubr.msk.f32.mxu0 %vm4511_vm9, %v4510_v11  ;;  %vm4557_vm5 = vnez %v4489_v46  ;;  %vm4559_vm9 = vnez %v4558_v0  ;;  %v2382_v46 = vadd.s32 1, %v2381_v45 }
 0x1dd   : > { %3216 = vmatpush3.bf16.msk.msra.mxu1 %vm4554_vm0, %v4508_v60  ;;  %3236 = vmatprep.subr.bf16.mxu0 %v4513_v12 }
 0x1de   : > { %3218 = vmatprep.subr.msk.bf16.mxu1 %vm4555_vm8, %v4508_v60  ;;  %v2390_v4 = vrot.slane %v2382_v46, %v4566_v62 }
 0x1e0   : > { %3238 = vmatpush3.bf16.msk.msra.mxu0 %vm4556_vm1, %v4508_v60 }
 0x1e1   : > { %3220 = vmatpush3.bf16.msk.msra.mxu1 %vm4557_vm5, %v4508_v60 }
 0x1e2   : > { %3222 = vmatprep.subr.msk.bf16.mxu1 %vm4559_vm9, %v4508_v60 }
 0x1e3   : > { %3085 = vmatmul.mubr.msk.f32.vlgmr.msra.gmra.mrb[42].mxu0 %vm1463_vm2, %v4154_v52 }
 0x1e5   : > { %3224 = vmatpush3.bf16.msk.msra.mxu1 %vm4118_vm10, %v4508_v60 }
 0x1e6   : > { %3226 = vmatprep.subr.msk.bf16.mxu1 %vm4126_vm3, %v4508_v60 }
 0x1e9   : > { %3228 = vmatpush3.bf16.msk.msra.mxu1 %vm4563_vm6, %v4508_v60 }
 0x1ea   : > { %3230 = vmatprep.subr.msk.bf16.mxu1 %vm4142_vm14, %v4508_v60 }
 0x1ed   : > { %3232 = vmatpush3.bf16.msk.msra.mxu1 %vm4150_vm4, %v4508_v60  ;;  %vm2394_vm4 = vcmask 523264  }
 0x1f0   : > { %2291 = vmatmul.mubr.f32.vlgmr.msra.gmra.mrb[42].mxu1 %v4170_v54 }
 0x27b   : > { %v1603_v25 = vpop.f32.mrb[36].mxu1 }
 0x27c   : > { %v3053_v26 = vpop.f32.mrb[37].mxu1 }
 0x286   : > { %v2861_v27 = vpop.f32.mrb[36].mxu0 }
 0x287   : > { %v2862_v28 = vpop.f32.mrb[37].mxu0 }
 0x288   : > { %v2863_v29 = vadd.f32 %v2862_v28, %v2861_v27 }
 0x28a   : > { %v1604_v9 = vadd.f32 %v2863_v29, %v1603_v25 }
 0x28e   : > { %v1856_v58 = vpop.f32.mrb[38].mxu0 }
 0x28f   : > { %v3064_v63 = vpop.f32.mrb[39].mxu0 }
 0x29b   : > { %v2901_v32 = vpop.f32.mrb[38].mxu1 }
 0x29c   : > { %v2902_v36 = vpop.f32.mrb[39].mxu1 }
 0x29d   : > { %v2903_v33 = vadd.f32 %v2902_v36, %v2901_v32 }
 0x29f   : > { %v1857_v30 = vadd.f32 %v2903_v33, %v1856_v58 }
 0x2a1   : > { %v2367_v34 = vmax.f32 %v1604_v9, %v1857_v30  ;;  %vm2368_vm10 = vcmp.ge.f32.partialorder %v1604_v9, %v1857_v30 }
 0x2a2   : > { %v2378_v55 = vsel %vm2368_vm10, %v2373_v10, %v2377_v21 }
 0x2a3   : > { %v2109_v35 = vpop.f32.mrb[40].mxu1 }
 0x2a4   : > { %v3075_v37 = vpop.f32.mrb[41].mxu1 }
 0x2ae   : > { %v2941_v38 = vpop.f32.mrb[40].mxu0 }
 0x2af   : > { %v2942_v39 = vpop.f32.mrb[41].mxu0 }
 0x2b0   : > { %v2943_v40 = vadd.f32 %v2942_v39, %v2941_v38 }
 0x2b2   : > { %v2110_v41 = vadd.f32 %v2943_v40, %v2109_v35 }
 0x2b6   : > { %v2362_v42 = vpop.f32.mrb[42].mxu0 }
 0x2b7   : > { %v3086_v43 = vpop.f32.mrb[43].mxu0 }
 0x2c3   : > { %v2981_v59 = vpop.f32.mrb[42].mxu1 }
 0x2c4   : > { %v2982_v3 = vpop.f32.mrb[43].mxu1 }
 0x2c5   : > { %v2983_v53 = vadd.f32 %v2982_v3, %v2981_v59 }
 0x2c7   : > { %v2363_v48 = vadd.f32 %v2983_v53, %v2362_v42 }
 0x2c9   : > { %v2379_v47 = vmax.f32 %v2110_v41, %v2363_v48  ;;  %vm2380_vm3 = vcmp.ge.f32.partialorder %v2110_v41, %v2363_v48 }
 0x2ca   : > { %v2391_v18 = vsel %vm2380_vm3, %v2386_v51, %v2390_v4 }
 0x2cb   : > { %vm2392_vm14 = vcmp.ge.f32.partialorder %v2367_v34, %v2379_v47 }
 0x2cc   : > { %v2393_v52 = vsel %vm2392_vm14, %v2367_v34, %v2379_v47  ;;  %v2396_v60 = vsel %vm2392_vm14, %v2378_v55, %v2391_v18 }
 0x2cd   : > { %2395 = vst.msk [vmem:[%s256_s7] sm:$0xff] %vm2394_vm4, %v2393_v52  ;;  %2397 = vst.msk [vmem:[%s260_s10] sm:$0xff] %vm2394_vm4, %v2396_v60 }
 0x2ce PF: > { %s17_s21 = sadd.s32 1, %s3276_s21  }
 0x2cf   : > { %p14_p4 = scmp.ge.s32.totalorder %s17_s21, 4  }
 0x2d1   :  { %16 = sbr.rel (!%p14_p4) target bundleno = 1 (0x1), region = 82 }

// kernel: forward.6
= control target key start
LH: loop header
LB: loop body
LE: loop exit
PB: predicated region body
PF: predicated region fallthrough
CT: control target
= control target key end

     0   :  { %s1842_s21 = smov 0   ;;  %s2115_s0 = inlined_call_operand.vmem [shape: f32[2,8,110], index: 0, kind: input, shape index: {}]   ;;  %s2116_s1 = inlined_call_operand.vmem [shape: f32[16,72], index: 1, kind: input, shape index: {}]   ;;  %s2117_s2 = inlined_call_operand.vmem [shape: f32[16,1], index: 2, kind: input, shape index: {}]   ;;  %s2118_s3 = inlined_call_operand.vmem [shape: s32[1,16], index: 3, kind: input, shape index: {}]   ;;  %s2119_s4 = inlined_call_operand.vmem [shape: s32[1,16], index: 4, kind: input, shape index: {}]   ;;  %s2120_s5 = inlined_call_operand.vmem [shape: f32[2,16,16], index: 5, kind: output, shape index: {0}]   ;;  %s2121_s6 = inlined_call_operand.vmem [shape: s32[2,16,16], index: 6, kind: output, shape index: {1}]  }
   0x1 LB: > { %s1346_s22 = sadd.s32 4294967295, %s1785_s21   ;;  %p1350_p0 = scmp.ge.s32.totalorder %s1785_s21, 1  ;;  %s1785_s21 = sphi %s1842_s21, %s17_s21  }
   0x2   : > { %p214_p1 = scmp.lt.s32.totalorder %s1785_s21, 3 }
   0x4   : > { %p215_p2 = pnand %p1350_p0, %p214_p1 }
   0x5   : > { %p248_p3 = scmp.lt.s32.totalorder (!%p215_p2), %s1346_s22, 1  ;;  %v1787_v0 = vmov (!%p215_p2), 0.0   ;;  %vm1788_vm0 = vmmov (!%p215_p2), 0   ;;  %v263_v2 = vld [vmem:[%s2116_s1] sm:$0xff] (!%p215_p2)  ;;  %v264_v3 = vld [vmem:[%s2116_s1 + $0x8] sm:$0xff] (!%p215_p2)  ;;  %vm278_vm1 = vcmask (!%p215_p2), 1043456   ;;  %v757_v34 = vlaneseq (!%p215_p2) }
   0x6   : > { %218 = sbr.rel (%p215_p2) target bundleno = 628 (0x274), region = 40  ;;  %1523 = vmatprep.subr.bf16.mxu0 (!%p215_p2), %v1787_v0  ;;  %1529 = vmatprep.subr.bf16.mxu1 (!%p215_p2), %v1787_v0  ;;  %s1789_s7 = smov (!%p215_p2), 127   ;;  %v267_v5 = vpack.c.bf16 (!%p215_p2), %v264_v3, %v263_v2  ;;  %vm274_vm2 = vcmask (!%p215_p2), 64512   ;;  %v1803_v7 = vmov (!%p215_p2), 0   ;;  %v741_v8 = vld [vmem:[%s2117_s2] sm:$0xff] (!%p215_p2)  ;;  %v742_v9 = vld [vmem:[%s2117_s2 + $0x8] sm:$0xff] (!%p215_p2) }
   0x7   : > { %1525 = vmatprep.mubr.msk.bf16.mxu0 (!%p215_p2), %vm1788_vm0, %v1787_v0  ;;  %1531 = vmatprep.mubr.msk.bf16.mxu1 (!%p215_p2), %vm1788_vm0, %v1787_v0  ;;  %s1790_s8 = smov (!%p215_p2), 126   ;;  %s1791_s9 = smov (!%p215_p2), 120   ;;  %v1913_v35 = vshrl.u32 (!%p215_p2), %v757_v34, 7  ;;  %v1918_v36 = vld [vmem:[%s2118_s3] sm:$0x1] (!%p215_p2)  ;;  %v2132_v63 = vmov (!%p215_p2), 0 }
   0x8   : > { %s1792_s10 = smov (!%p215_p2), 112   ;;  %s1793_s11 = smov (!%p215_p2), 118   ;;  %1777 = vset.pattern.permute.xlu0 (!%p215_p2), %v1803_v7  ;;  %1778 = vset.pattern.permute.xlu1 (!%p215_p2), %v1803_v7  ;;  %v885_v39 = vadd.s32 (!%p215_p2), 1, %v1918_v36  ;;  %v1806_v46 = vmov (!%p215_p2), 1.0|1.0   ;;  %v995_v55 = vadd.s32 (!%p215_p2), 10, %v1918_v36 }
   0x9   : > { %s1794_s12 = smov (!%p215_p2), 117   ;;  %s1795_s13 = smov (!%p215_p2), 104   ;;  %v1923_v38 = vsub.s32 (!%p215_p2), 0, %v1913_v35  ;;  %v1929_v42 = vadd.s32 (!%p215_p2), 8, %v1913_v35  ;;  %v1940_v47 = vadd.s32 (!%p215_p2), 16, %v1913_v35  ;;  %v1943_v48 = vadd.s32 (!%p215_p2), 24, %v1913_v35 }
   0xa   : > { %s1796_s14 = smov (!%p215_p2), 96   ;;  %s1797_s15 = smov (!%p215_p2), 116   ;;  %v762_v49 = vadd.s32 (!%p215_p2), 32, %v1913_v35  ;;  %v763_v50 = vadd.s32 (!%p215_p2), 40, %v1913_v35  ;;  %v764_v51 = vadd.s32 (!%p215_p2), 48, %v1913_v35  ;;  %v765_v52 = vadd.s32 (!%p215_p2), 56, %v1913_v35 }
   0xb   : > { %s1798_s16 = smov (!%p215_p2), 108   ;;  %s1799_s17 = smov (!%p215_p2), 88   ;;  %v772_v43 = vrot.slane (!%p215_p2), %v1918_v36, %v1923_v38  ;;  %v889_v44 = vrot.slane (!%p215_p2), %v885_v39, %v1923_v38  ;;  %v766_v53 = vadd.s32 (!%p215_p2), 64, %v1913_v35  ;;  %v767_v54 = vadd.s32 (!%p215_p2), 72, %v1913_v35 }
   0xc   : > { %s1800_s18 = smov (!%p215_p2), 80   ;;  %s1801_s19 = smov (!%p215_p2), 107   ;;  %v1105_v56 = vadd.s32 (!%p215_p2), 11, %v1918_v36  ;;  %v999_v57 = vrot.slane (!%p215_p2), %v995_v55, %v1923_v38 }
   0xd   : > { %s2147_s22 = smov (!%p248_p3, %s1346_s22), 1  ;;  %s1802_s20 = smov 106   ;;  %vm773_vm3 = vcmp.eq.s32.totalorder %v1913_v35, %v772_v43  ;;  %vm774_vm4 = vcmp.eq.s32.totalorder %v1929_v42, %v772_v43  ;;  %vm890_vm5 = vcmp.eq.s32.totalorder %v1913_v35, %v889_v44  ;;  %vm891_vm6 = vcmp.eq.s32.totalorder %v1929_v42, %v889_v44 }
   0xe   : > { %s1351_s23 = sshll.u32 %s2147_s22, 3  ;;  %s1805_s24 = smov 64   ;;  %vm1669_vm7 = vmpackc.low %vm774_vm4, %vm773_vm3  ;;  %vm775_vm9 = vcmp.eq.s32.totalorder %v1940_v47, %v772_v43  ;;  %vm776_vm10 = vcmp.eq.s32.totalorder %v1943_v48, %v772_v43  ;;  %vm892_vm11 = vcmp.eq.s32.totalorder %v1940_v47, %v889_v44  ;;  %vm893_vm12 = vcmp.eq.s32.totalorder %v1943_v48, %v889_v44 }
   0xf   : > { %s251_s26 = scalar_lea.vmem %s2115_s0, %s1351_s23  ;;  %s1804_s23 = smov 72   ;;  %vm1689_vm8 = vmpackc.low %vm891_vm6, %vm890_vm5  ;;  %vm777_vm15 = vcmp.eq.s32.totalorder %v762_v49, %v772_v43  ;;  %vm779_vm5 = vcmp.eq.s32.totalorder %v764_v51, %v772_v43  ;;  %vm780_vm6 = vcmp.eq.s32.totalorder %v765_v52, %v772_v43  ;;  %v1109_v58 = vrot.slane %v1105_v56, %v1923_v38 }
  0x10   : > { %v265_v1 = vld [vmem:[%s251_s26] sm:$0xff]  ;;  %vm1673_vm13 = vmpackc.low %vm776_vm10, %vm775_vm9 }
  0x11   : > { %v266_v4 = vpack.c.bf16 %v265_v1, %v265_v1  ;;  %vm1693_vm14 = vmpackc.low %vm893_vm12, %vm892_vm11  ;;  %vm781_vm11 = vcmp.eq.s32.totalorder %v766_v53, %v772_v43  ;;  %vm782_vm12 = vcmp.eq.s32.totalorder %v767_v54, %v772_v43  ;;  %v1215_v1 = vld [vmem:[%s2119_s4] sm:$0x1] }
  0x12   : > { %vm1681_vm9 = vmpackc.low %vm780_vm6, %vm779_vm5  ;;  %v1235_v2 = vadd.s32 8, %v1215_v1 }
  0x13   : > { %272 = vrot.lane.b32.xlu0 %v266_v4, %s1789_s7  ;;  %372 = vrot.lane.b32.xlu1 %v266_v4, %s1790_s8  ;;  %v327_v6 = vsel %vm278_vm1, %v266_v4, 0 }
  0x14   : > { %1530 = vmatpush3.bf16.msra.mxu1 %v327_v6  ;;  %v1236_v3 = vadd.s32 1, %v1235_v2 }
  0x15   : > { %1541 = vmatprep.subr.bf16.mxu1 %v1787_v0 }
  0x17   : > { %269 = vrot.lane.b32.xlu0 %v267_v5, %s1791_s9  ;;  %370 = vrot.lane.b32.xlu1 %v267_v5, %s1792_s10  ;;  %s1455_s9 = sshll.u32 %s2147_s22, 4 }
  0x18   : > { %1532 = vmatmul.mubr.msk.bf16.vlgmr.msra.gmra.mrb[0].mxu1 %vm274_vm2, %v267_v5 }
  0x19   : > { %1543 = vmatprep.mubr.msk.bf16.mxu1 %vm1788_vm0, %v1787_v0 }
  0x1b   : > { %425 = vrot.lane.b32.xlu0 %v266_v4, %s1793_s11  ;;  %478 = vrot.lane.b32.xlu1 %v266_v4, %s1794_s12  ;;  %s256_s12 = scalar_lea.vmem %s2120_s5, %s1455_s9 }
  0x1f   : > { %423 = vrot.lane.b32.xlu0 %v267_v5, %s1795_s13  ;;  %476 = vrot.lane.b32.xlu1 %v267_v5, %s1796_s14 }
  0x23   : > { %531 = vrot.lane.b32.xlu0 %v266_v4, %s1797_s15  ;;  %584 = vrot.lane.b32.xlu1 %v266_v4, %s1798_s16  ;;  %s261_s15 = scalar_lea.vmem %s2121_s6, %s1455_s9 }
  0x27   : > { %529 = vrot.lane.b32.xlu0 %v267_v5, %s1799_s17  ;;  %582 = vrot.lane.b32.xlu1 %v267_v5, %s1800_s18 }
  0x2b   : > { %637 = vrot.lane.b32.xlu0 %v266_v4, %s1801_s19  ;;  %690 = vrot.lane.b32.xlu1 %v266_v4, %s1802_s20  ;;  %v1240_v4 = vrot.slane %v1235_v2, %v1923_v38 }
  0x2f   : > { %635 = vrot.lane.b32.xlu0 %v267_v5, %s1804_s23  ;;  %688 = vrot.lane.b32.xlu1 %v267_v5, %s1805_s24 }
  0x33   : > { %745 = vperm.xlu0 %1777, %v741_v8   ;;  %750 = vperm.xlu1 %1778, %v742_v9  }
  0x85   : > { %v273_v10 = vpop.permute.xlu0 %272  ;;  %v373_v11 = vpop.permute.xlu1 %372 }
  0x86   : > { %v280_v12 = vsel %vm278_vm1, %v273_v10, 0  ;;  %v378_v13 = vsel %vm278_vm1, %v373_v11, 0 }
  0x87   : > { %1524 = vmatpush3.bf16.msra.mxu0 %v280_v12 }
  0x88   : > { %1535 = vmatprep.subr.bf16.mxu0 %v1787_v0 }
  0x89   : > { %v270_v14 = vpop.permute.xlu0 %269  ;;  %v371_v15 = vpop.permute.xlu1 %370 }
  0x8a   : > { %1526 = vmatmul.mubr.msk.bf16.vlgmr.msra.gmra.mrb[0].mxu0 %vm274_vm2, %v270_v14 }
  0x8b   : > { %1536 = vmatpush3.bf16.msra.mxu0 %v378_v13  ;;  %1537 = vmatprep.mubr.msk.bf16.mxu0 %vm1788_vm0, %v1787_v0 }
  0x8c   : > { %1547 = vmatprep.subr.bf16.mxu0 %v1787_v0 }
  0x8d   : > { %v426_v16 = vpop.permute.xlu0 %425  ;;  %v479_v17 = vpop.permute.xlu1 %478 }
  0x8e   : > { %v431_v18 = vsel %vm278_vm1, %v426_v16, 0  ;;  %v484_v19 = vsel %vm278_vm1, %v479_v17, 0 }
  0x8f   : > { %1542 = vmatpush3.bf16.msra.mxu1 %v431_v18 }
  0x90   : > { %1553 = vmatprep.subr.bf16.mxu1 %v1787_v0 }
  0x91   : > { %v424_v20 = vpop.permute.xlu0 %423  ;;  %v477_v21 = vpop.permute.xlu1 %476 }
  0x92   : > { %1538 = vmatmul.mubr.msk.bf16.vlgmr.msra.gmra.mrb[4].mxu0 %vm274_vm2, %v371_v15  ;;  %1544 = vmatmul.mubr.msk.bf16.vlgmr.msra.gmra.mrb[4].mxu1 %vm274_vm2, %v424_v20 }
  0x93   : > { %1548 = vmatpush3.bf16.msra.mxu0 %v484_v19  ;;  %1549 = vmatprep.mubr.msk.bf16.mxu0 %vm1788_vm0, %v1787_v0 }
  0x94   : > { %1555 = vmatprep.mubr.msk.bf16.mxu1 %vm1788_vm0, %v1787_v0  ;;  %1559 = vmatprep.subr.bf16.mxu0 %v1787_v0 }
  0x95   : > { %v532_v22 = vpop.permute.xlu0 %531  ;;  %v585_v23 = vpop.permute.xlu1 %584 }
  0x96   : > { %v537_v24 = vsel %vm278_vm1, %v532_v22, 0  ;;  %v590_v25 = vsel %vm278_vm1, %v585_v23, 0 }
  0x97   : > { %1554 = vmatpush3.bf16.msra.mxu1 %v537_v24 }
  0x98   : > { %1565 = vmatprep.subr.bf16.mxu1 %v1787_v0 }
  0x99   : > { %v530_v26 = vpop.permute.xlu0 %529  ;;  %v583_v27 = vpop.permute.xlu1 %582 }
  0x9a   : > { %1550 = vmatmul.mubr.msk.bf16.vlgmr.msra.gmra.mrb[8].mxu0 %vm274_vm2, %v477_v21  ;;  %1556 = vmatmul.mubr.msk.bf16.vlgmr.msra.gmra.mrb[8].mxu1 %vm274_vm2, %v530_v26 }
  0x9b   : > { %1560 = vmatpush3.bf16.msra.mxu0 %v590_v25  ;;  %1561 = vmatprep.mubr.msk.bf16.mxu0 %vm1788_vm0, %v1787_v0 }
  0x9c   : > { %1571 = vmatprep.subr.bf16.mxu0 %v1787_v0  ;;  %1567 = vmatprep.mubr.msk.bf16.mxu1 %vm1788_vm0, %v1787_v0 }
  0x9d   : > { %v638_v28 = vpop.permute.xlu0 %637  ;;  %v691_v29 = vpop.permute.xlu1 %690 }
  0x9e   : > { %v643_v30 = vsel %vm278_vm1, %v638_v28, 0  ;;  %v696_v31 = vsel %vm278_vm1, %v691_v29, 0  ;;  %vm894_vm1 = vcmp.eq.s32.totalorder %v762_v49, %v889_v44 }
  0x9f   : > { %1566 = vmatpush3.bf16.msra.mxu1 %v643_v30 }
  0xa0   : > { %1670 = vmatprep.subr.msk.bf16.mxu1 %vm1669_vm7, %v1806_v46 }
  0xa1   : > { %v636_v32 = vpop.permute.xlu0 %635  ;;  %v689_v33 = vpop.permute.xlu1 %688 }
  0xa2   : > { %1562 = vmatmul.mubr.msk.bf16.vlgmr.msra.gmra.mrb[12].mxu0 %vm274_vm2, %v583_v27  ;;  %1568 = vmatmul.mubr.msk.bf16.vlgmr.msra.gmra.mrb[12].mxu1 %vm274_vm2, %v636_v32 }
  0xa3   : > { %1572 = vmatpush3.bf16.msra.mxu0 %v696_v31  ;;  %1573 = vmatprep.mubr.msk.bf16.mxu0 %vm1788_vm0, %v1787_v0  ;;  %vm778_vm0 = vcmp.eq.s32.totalorder %v763_v50, %v772_v43  ;;  %v2134_v0 = vmov 0 }
  0xa4   : > { %1690 = vmatprep.subr.msk.bf16.mxu0 %vm1689_vm8, %v1806_v46  ;;  %1672 = vmatpush3.bf16.msk.msra.mxu1 %vm1669_vm7, %v1806_v46  ;;  %vm1677_vm3 = vmpackc.low %vm778_vm0, %vm777_vm15  ;;  %vm896_vm7 = vcmp.eq.s32.totalorder %v764_v51, %v889_v44 }
  0xa5   : > { %1674 = vmatprep.subr.msk.bf16.mxu1 %vm1673_vm13, %v1806_v46  ;;  %vm1685_vm15 = vmpackc.low %vm782_vm12, %vm781_vm11 }
  0xa8   : > { %1676 = vmatpush3.bf16.msk.msra.mxu1 %vm1673_vm13, %v1806_v46  ;;  %vm898_vm13 = vcmp.eq.s32.totalorder %v766_v53, %v889_v44 }
  0xa9   : > { %1678 = vmatprep.subr.msk.bf16.mxu1 %vm1677_vm3, %v1806_v46 }
  0xaa   : > { %1574 = vmatmul.mubr.msk.bf16.vlgmr.msra.gmra.mrb[16].mxu0 %vm274_vm2, %v689_v33  ;;  %vm895_vm2 = vcmp.eq.s32.totalorder %v763_v50, %v889_v44 }
  0xab   : > { %1692 = vmatpush3.bf16.msk.msra.mxu0 %vm1689_vm8, %v1806_v46  ;;  %vm1697_vm4 = vmpackc.low %vm895_vm2, %vm894_vm1  ;;  %vm897_vm8 = vcmp.eq.s32.totalorder %v765_v52, %v889_v44  ;;  %vm1000_vm1 = vcmp.eq.s32.totalorder %v1913_v35, %v999_v57  ;;  %vm1001_vm2 = vcmp.eq.s32.totalorder %v1929_v42, %v999_v57 }
  0xac   : > { %1694 = vmatprep.subr.msk.bf16.mxu0 %vm1693_vm14, %v1806_v46  ;;  %1680 = vmatpush3.bf16.msk.msra.mxu1 %vm1677_vm3, %v1806_v46  ;;  %vm1701_vm10 = vmpackc.low %vm897_vm8, %vm896_vm7  ;;  %vm1110_vm3 = vcmp.eq.s32.totalorder %v1913_v35, %v1109_v58  ;;  %vm1002_vm7 = vcmp.eq.s32.totalorder %v1940_v47, %v999_v57  ;;  %vm1003_vm8 = vcmp.eq.s32.totalorder %v1943_v48, %v999_v57 }
  0xad   : > { %1682 = vmatprep.subr.msk.bf16.mxu1 %vm1681_vm9, %v1806_v46  ;;  %vm1982_vm5 = vmpackc.low %vm1001_vm2, %vm1000_vm1  ;;  %vm1115_vm1 = vcmp.eq.s32.totalorder %v763_v50, %v1109_v58 }
  0xae   : > { %vm2000_vm11 = vmpackc.low %vm1003_vm8, %vm1002_vm7  ;;  %vm1116_vm8 = vcmp.eq.s32.totalorder %v764_v51, %v1109_v58 }
  0xaf   : > { %1696 = vmatpush3.bf16.msk.msra.mxu0 %vm1693_vm14, %v1806_v46  ;;  %vm899_vm14 = vcmp.eq.s32.totalorder %v767_v54, %v889_v44 }
  0xb0   : > { %1698 = vmatprep.subr.msk.bf16.mxu0 %vm1697_vm4, %v1806_v46  ;;  %1684 = vmatpush3.bf16.msk.msra.mxu1 %vm1681_vm9, %v1806_v46  ;;  %vm1705_vm0 = vmpackc.low %vm899_vm14, %vm898_vm13  ;;  %vm1112_vm9 = vcmp.eq.s32.totalorder %v1940_v47, %v1109_v58  ;;  %vm1004_vm13 = vcmp.eq.s32.totalorder %v762_v49, %v999_v57  ;;  %vm1005_vm14 = vcmp.eq.s32.totalorder %v763_v50, %v999_v57 }
  0xb1   : > { %1686 = vmatprep.subr.msk.bf16.mxu1 %vm1685_vm15, %v1806_v46 }
  0xb2   : > { %v746_v50 = vpop.permute.xlu0 %745 }
  0xb3   : > { %1700 = vmatpush3.bf16.msk.msra.mxu0 %vm1697_vm4, %v1806_v46  ;;  %vm1111_vm4 = vcmp.eq.s32.totalorder %v1929_v42, %v1109_v58 }
  0xb4   : > { %1702 = vmatprep.subr.msk.bf16.mxu0 %vm1701_vm10, %v1806_v46  ;;  %1688 = vmatpush3.bf16.msk.msra.mxu1 %vm1685_vm15, %v1806_v46  ;;  %vm1989_vm6 = vmpackc.low %vm1111_vm4, %vm1110_vm3  ;;  %vm1006_vm3 = vcmp.eq.s32.totalorder %v764_v51, %v999_v57  ;;  %vm1007_vm4 = vcmp.eq.s32.totalorder %v765_v52, %v999_v57 }
  0xb5   : > { %1710 = vmatprep.subr.msk.bf16.mxu1 %vm1982_vm5, %v1806_v46  ;;  %vm2008_vm15 = vmpackc.low %vm1005_vm14, %vm1004_vm13  ;;  %vm1008_vm13 = vcmp.eq.s32.totalorder %v766_v53, %v999_v57  ;;  %vm1009_vm14 = vcmp.eq.s32.totalorder %v767_v54, %v999_v57 }
  0xb6   : > { %v2133_v63 = vsel %vm2008_vm15, 4294967295, %v2132_v63  ;;  %vm2016_vm7 = vmpackc.low %vm1007_vm4, %vm1006_vm3  ;;  %vm803_vm3 = vcmask 654336  }
  0xb7   : > { %1704 = vmatpush3.bf16.msk.msra.mxu0 %vm1701_vm10, %v1806_v46  ;;  %vm1113_vm10 = vcmp.eq.s32.totalorder %v1943_v48, %v1109_v58  ;;  %vm2024_vm15 = vmpackc.low %vm1009_vm14, %vm1008_vm13 }
  0xb8   : > { %1706 = vmatprep.subr.msk.bf16.mxu0 %vm1705_vm0, %v1806_v46  ;;  %vm2004_vm12 = vmpackc.low %vm1113_vm10, %vm1112_vm9  ;;  %vm1117_vm9 = vcmp.eq.s32.totalorder %v765_v52, %v1109_v58 }
  0xb9   : > { %vm2020_vm10 = vmpackc.low %vm1117_vm9, %vm1116_vm8 }
  0xbb   : > { %1708 = vmatpush3.bf16.msk.msra.mxu0 %vm1705_vm0, %v1806_v46  ;;  %vm1114_vm0 = vcmp.eq.s32.totalorder %v762_v49, %v1109_v58 }
  0xbc   : > { %1730 = vmatprep.subr.msk.bf16.mxu0 %vm1989_vm6, %v1806_v46  ;;  %vm2012_vm2 = vmpackc.low %vm1115_vm1, %vm1114_vm0  ;;  %vm1118_vm0 = vcmp.eq.s32.totalorder %v766_v53, %v1109_v58  ;;  %vm1119_vm1 = vcmp.eq.s32.totalorder %v767_v54, %v1109_v58  ;;  %v751_v54 = vpop.permute.xlu1 %750 }
  0xbd   : > { %v2135_v0 = vsel %vm2012_vm2, 4294967295, %v2134_v0  ;;  %vm2028_vm2 = vmpackc.low %vm1119_vm1, %vm1118_vm0 }
  0xeb   : > { %v1920_v37 = vpop.f32.mrb[0].mxu1 }
  0xec   : > { %v1533_v40 = vpop.f32.mrb[1].mxu1 }
  0xed   : > { %v1926_v41 = vpop.f32.mrb[2].mxu1 }
  0xee   : > { %v1534_v45 = vpop.f32.mrb[3].mxu1 }
 0x15d   : > { %v316_v5 = vpop.f32.mrb[0].mxu0 }
 0x15e   : > { %v364_v6 = vadd.f32 %v1920_v37, %v316_v5  ;;  %v1527_v7 = vpop.f32.mrb[1].mxu0 }
 0x15f   : > { %v319_v8 = vpop.f32.mrb[2].mxu0  ;;  %v1244_v7 = vrot.slane %v1236_v3, %v1923_v38 }
 0x160   : > { %v367_v9 = vadd.f32 %v1926_v41, %v319_v8  ;;  %v1528_v10 = vpop.f32.mrb[3].mxu0  ;;  %v1224_v8 = vrot.slane %v1215_v1, %v1923_v38 }
 0x165   : > { %v414_v11 = vpop.f32.mrb[4].mxu0  ;;  %v467_v12 = vpop.f32.mrb[4].mxu1 }
 0x166   : > { %v421_v13 = vadd.f32 %v414_v11, %v364_v6  ;;  %v1539_v14 = vpop.f32.mrb[5].mxu0  ;;  %v1545_v15 = vpop.f32.mrb[5].mxu1 }
 0x167   : > { %v417_v16 = vpop.f32.mrb[6].mxu0  ;;  %v470_v17 = vpop.f32.mrb[6].mxu1 }
 0x168   : > { %v474_v18 = vadd.f32 %v467_v12, %v421_v13  ;;  %v422_v19 = vadd.f32 %v417_v16, %v367_v9  ;;  %v1540_v20 = vpop.f32.mrb[7].mxu0  ;;  %v1546_v21 = vpop.f32.mrb[7].mxu1 }
 0x16a   : > { %v475_v22 = vadd.f32 %v470_v17, %v422_v19 }
 0x16d   : > { %v520_v23 = vpop.f32.mrb[8].mxu0  ;;  %v573_v24 = vpop.f32.mrb[8].mxu1 }
 0x16e   : > { %v527_v25 = vadd.f32 %v520_v23, %v474_v18  ;;  %v1551_v26 = vpop.f32.mrb[9].mxu0  ;;  %v1557_v27 = vpop.f32.mrb[9].mxu1 }
 0x16f   : > { %v523_v28 = vpop.f32.mrb[10].mxu0  ;;  %v576_v29 = vpop.f32.mrb[10].mxu1 }
 0x170   : > { %v580_v30 = vadd.f32 %v573_v24, %v527_v25  ;;  %v528_v31 = vadd.f32 %v523_v28, %v475_v22  ;;  %v1552_v32 = vpop.f32.mrb[11].mxu0  ;;  %v1558_v33 = vpop.f32.mrb[11].mxu1 }
 0x172   : > { %v581_v34 = vadd.f32 %v576_v29, %v528_v31 }
 0x175   : > { %v626_v35 = vpop.f32.mrb[12].mxu0  ;;  %v679_v36 = vpop.f32.mrb[12].mxu1 }
 0x176   : > { %v633_v37 = vadd.f32 %v626_v35, %v580_v30  ;;  %v1563_v39 = vpop.f32.mrb[13].mxu0  ;;  %v1569_v40 = vpop.f32.mrb[13].mxu1 }
 0x177   : > { %v629_v41 = vpop.f32.mrb[14].mxu0  ;;  %v682_v42 = vpop.f32.mrb[14].mxu1 }
 0x178   : > { %v634_v43 = vadd.f32 %v629_v41, %v581_v34  ;;  %v686_v44 = vadd.f32 %v679_v36, %v633_v37  ;;  %v1564_v45 = vpop.f32.mrb[15].mxu0  ;;  %v1570_v47 = vpop.f32.mrb[15].mxu1 }
 0x17a   : > { %v687_v48 = vadd.f32 %v682_v42, %v634_v43 }
 0x17d   : > { %v732_v49 = vpop.f32.mrb[16].mxu0 }
 0x17e   : > { %v739_v51 = vadd.f32 %v732_v49, %v686_v44  ;;  %v1575_v52 = vpop.f32.mrb[17].mxu0 }
 0x17f   : > { %v735_v53 = vpop.f32.mrb[18].mxu0 }
 0x180   : > { %v740_v55 = vadd.f32 %v735_v53, %v687_v48  ;;  %v753_v56 = vadd.f32 %v746_v50, %v739_v51  ;;  %v1576_v57 = vpop.f32.mrb[19].mxu0 }
 0x182   : > { %v755_v58 = vmax.f32 %v753_v56, 0.0  ;;  %v754_v5 = vadd.f32 %v751_v54, %v740_v55 }
 0x184   : > { %v756_v6 = vmax.f32 %v754_v5, 0.0  ;;  %1597 = vmatprep.mubr.msk.f32.mxu1 %vm803_vm3, %v755_v58  ;;  %1620 = vmatprep.mubr.msk.f32.mxu0 %vm803_vm3, %v755_v58 }
 0x186   : > { %1598 = vmatmul.mubr.msk.f32.vlgmr.msra.gmra.mrb[16].mxu1 %vm803_vm3, %v756_v6  ;;  %1621 = vmatmul.mubr.msk.f32.vlgmr.msra.gmra.mrb[20].mxu0 %vm803_vm3, %v756_v6 }
 0x187   : > { %1712 = vmatpush3.bf16.msk.msra.mxu1 %vm1982_vm5, %v1806_v46  ;;  %1732 = vmatpush3.bf16.msk.msra.mxu0 %vm1989_vm6, %v1806_v46  ;;  %vm2144_vm5 = vnez %v2133_v63  ;;  %vm2145_vm6 = vnez %v2135_v0 }
 0x188   : > { %1643 = vmatprep.mubr.msk.f32.mxu1 %vm803_vm3, %v755_v58  ;;  %1666 = vmatprep.mubr.msk.f32.mxu0 %vm803_vm3, %v755_v58 }
 0x189   : > { %1714 = vmatprep.subr.msk.bf16.mxu1 %vm2000_vm11, %v1806_v46  ;;  %1734 = vmatprep.subr.msk.bf16.mxu0 %vm2004_vm12, %v1806_v46 }
 0x18b   : > { %1716 = vmatpush3.bf16.msk.msra.mxu1 %vm2000_vm11, %v1806_v46  ;;  %1736 = vmatpush3.bf16.msk.msra.mxu0 %vm2004_vm12, %v1806_v46 }
 0x18c   : > { %1718 = vmatprep.subr.msk.bf16.mxu1 %vm2144_vm5, %v1806_v46  ;;  %1738 = vmatprep.subr.msk.bf16.mxu0 %vm2145_vm6, %v1806_v46 }
 0x18f   : > { %1720 = vmatpush3.bf16.msk.msra.mxu1 %vm2144_vm5, %v1806_v46  ;;  %1740 = vmatpush3.bf16.msk.msra.mxu0 %vm2145_vm6, %v1806_v46 }
 0x190   : > { %1722 = vmatprep.subr.msk.bf16.mxu1 %vm2016_vm7, %v1806_v46  ;;  %1742 = vmatprep.subr.msk.bf16.mxu0 %vm2020_vm10, %v1806_v46 }
 0x193   : > { %1724 = vmatpush3.bf16.msk.msra.mxu1 %vm2016_vm7, %v1806_v46  ;;  %1744 = vmatpush3.bf16.msk.msra.mxu0 %vm2020_vm10, %v1806_v46 }
 0x194   : > { %1726 = vmatprep.subr.msk.bf16.mxu1 %vm2024_vm15, %v1806_v46  ;;  %1746 = vmatprep.subr.msk.bf16.mxu0 %vm2028_vm2, %v1806_v46 }
 0x197   : > { %1728 = vmatpush3.bf16.msk.msra.mxu1 %vm2024_vm15, %v1806_v46  ;;  %1748 = vmatpush3.bf16.msk.msra.mxu0 %vm2028_vm2, %v1806_v46  ;;  %v1220_v46 = vadd.s32 1, %v1215_v1  ;;  %vm1251_vm2 = vcmask 130048  }
 0x199   : > { %v1228_v9 = vrot.slane %v1220_v46, %v1923_v38 }
 0x19a   : > { %1644 = vmatmul.mubr.msk.f32.vlgmr.msra.gmra.mrb[18].mxu1 %vm803_vm3, %v756_v6  ;;  %1667 = vmatmul.mubr.msk.f32.vlgmr.msra.gmra.mrb[22].mxu0 %vm803_vm3, %v756_v6 }
 0x259   : > { %v1599_v59 = vpop.f32.mrb[16].mxu1  ;;  %v1622_v60 = vpop.f32.mrb[20].mxu0 }
 0x25a   : > { %v1217_v61 = vmax.f32 %v1599_v59, %v1622_v60  ;;  %vm1219_vm11 = vcmp.ge.f32.partialorder %v1599_v59, %v1622_v60  ;;  %v876_v62 = vpop.f32.mrb[17].mxu1  ;;  %v986_v63 = vpop.f32.mrb[21].mxu0 }
 0x25b   : > { %v1216_v0 = vmax.f32 %v876_v62, %v986_v63  ;;  %vm1218_vm12 = vcmp.ge.f32.partialorder %v876_v62, %v986_v63  ;;  %v1230_v38 = vsel %vm1219_vm11, %v1224_v8, %v1228_v9 }
 0x25c   : > { %v1229_v18 = vsel %vm1218_vm12, %v1224_v8, %v1228_v9 }
 0x26d   : > { %v1645_v10 = vpop.f32.mrb[18].mxu1  ;;  %v1668_v11 = vpop.f32.mrb[22].mxu0 }
 0x26e   : > { %v1232_v12 = vmax.f32 %v1645_v10, %v1668_v11  ;;  %vm1234_vm15 = vcmp.ge.f32.partialorder %v1645_v10, %v1668_v11  ;;  %v1096_v13 = vpop.f32.mrb[19].mxu1  ;;  %v1206_v14 = vpop.f32.mrb[23].mxu0 }
 0x26f   : > { %v1246_v15 = vsel %vm1234_vm15, %v1240_v4, %v1244_v7  ;;  %v1231_v16 = vmax.f32 %v1096_v13, %v1206_v14  ;;  %vm1233_vm4 = vcmp.ge.f32.partialorder %v1096_v13, %v1206_v14 }
 0x270   : > { %vm1248_vm7 = vcmp.ge.f32.partialorder %v1217_v61, %v1232_v12  ;;  %v1245_v17 = vsel %vm1233_vm4, %v1240_v4, %v1244_v7 }
 0x271   : > { %v1250_v19 = vsel %vm1248_vm7, %v1217_v61, %v1232_v12  ;;  %v1255_v20 = vsel %vm1248_vm7, %v1230_v38, %v1246_v15  ;;  %vm1247_vm8 = vcmp.ge.f32.partialorder %v1216_v0, %v1231_v16 }
 0x272   : > { %1253 = vst.msk [vmem:[%s256_s12 + $0x8] sm:$0xff] %vm1251_vm2, %v1250_v19  ;;  %1257 = vst.msk [vmem:[%s261_s15 + $0x8] sm:$0xff] %vm1251_vm2, %v1255_v20  ;;  %v1249_v21 = vsel %vm1247_vm8, %v1216_v0, %v1231_v16  ;;  %v1254_v22 = vsel %vm1247_vm8, %v1229_v18, %v1245_v17 }
 0x273   : > { %1252 = vst.msk [vmem:[%s256_s12] sm:$0xff] %vm1251_vm2, %v1249_v21  ;;  %1256 = vst.msk [vmem:[%s261_s15] sm:$0xff] %vm1251_vm2, %v1254_v22 }
 0x274 PF: > { %s17_s21 = sadd.s32 1, %s1785_s21  }
 0x275   : > { %p14_p4 = scmp.ge.s32.totalorder %s17_s21, 4  }
 0x277   :  { %16 = sbr.rel (!%p14_p4) target bundleno = 1 (0x1), region = 82 }

// kernel: forward.8
= control target key start
LH: loop header
LB: loop body
LE: loop exit
PB: predicated region body
PF: predicated region fallthrough
CT: control target
= control target key end

     0   :  { %s1258_s21 = smov 0   ;;  %s1353_s0 = inlined_call_operand.vmem [shape: f32[2,16,16], index: 0, kind: input, shape index: {}]   ;;  %s1354_s1 = inlined_call_operand.vmem [shape: s32[2,16,16], index: 1, kind: input, shape index: {}]   ;;  %s1355_s2 = inlined_call_operand.vmem [shape: s32[1,110], index: 2, kind: input, shape index: {}]   ;;  %s1356_s3 = inlined_call_operand.vmem [shape: s32[1,110], index: 3, kind: input, shape index: {}]   ;;  %s1357_s4 = inlined_call_operand.vmem [shape: f32[8,144], index: 4, kind: input, shape index: {}]   ;;  %s1358_s5 = inlined_call_operand.vmem [shape: f32[8,1], index: 5, kind: input, shape index: {}]   ;;  %s1359_s6 = inlined_call_operand.vmem [shape: f32[2,8,64], index: 6, kind: output, shape index: {}]  }
   0x1 LB: > { %s1015_s22 = sadd.s32 4294967295, %s1198_s21   ;;  %p1019_p0 = scmp.ge.s32.totalorder %s1198_s21, 1  ;;  %s1198_s21 = sphi %s1258_s21, %s16_s21  }
   0x2   : > { %p222_p1 = scmp.lt.s32.totalorder %s1198_s21, 3 }
   0x4   : > { %p223_p2 = pnand %p1019_p0, %p222_p1 }
   0x5   : > { %v279_v0 = vlaneseq (!%p223_p2)  ;;  %p256_p3 = scmp.lt.s32.totalorder (!%p223_p2), %s1015_s22, 1  ;;  %v1025_v1 = vld [vmem:[%s1355_s2] ss:$0 sm:$0xff] (!%p223_p2)  ;;  %vm292_vm1 = vcmask (!%p223_p2), 130048   ;;  %v1200_v6 = vmov (!%p223_p2), 1.0|1.0  }
   0x6   : > { %226 = sbr.rel (%p223_p2) target bundleno = 740 (0x2e4), region = 44  ;;  %v1201_v11 = vmov (!%p223_p2), 0.0   ;;  %vm1202_vm4 = vmmov (!%p223_p2), 0   ;;  %v1036_v18 = vld [vmem:[%s1356_s3] ss:$0 sm:$0xff] (!%p223_p2)  ;;  %s1203_s12 = smov (!%p223_p2), 126  }
   0x7   : > { %v280_v2 = vshrl.u32 (!%p223_p2), %v279_v0, 7  ;;  %1093 = vmatprep.subr.bf16.mxu0 (!%p223_p2), %v1201_v11  ;;  %1095 = vmatprep.mubr.msk.bf16.mxu0 (!%p223_p2), %vm1202_vm4, %v1201_v11  ;;  %v465_v23 = vld [vmem:[%s1357_s4] sm:$0xff] (!%p223_p2)  ;;  %s1204_s13 = smov (!%p223_p2), 127   ;;  %s1205_s14 = smov (!%p223_p2), 96   ;;  %v1217_v27 = vmov (!%p223_p2), 0   ;;  %v466_v44 = vld [vmem:[%s1357_s4 + $0x8] sm:$0xff] (!%p223_p2) }
   0x8   : > { %v468_v26 = vpack.c.bf16 (!%p223_p2), %v465_v23, %v465_v23  ;;  %s1206_s15 = smov (!%p223_p2), 112   ;;  %s1207_s16 = smov (!%p223_p2), 117   ;;  %1190 = vset.pattern.permute.xlu1 (!%p223_p2), %v1217_v27  ;;  %v904_v28 = vld [vmem:[%s1358_s5] sm:$0xff] (!%p223_p2)  ;;  %1191 = vset.pattern.permute.xlu0 (!%p223_p2), %v1217_v27  ;;  %v856_v45 = vpack.c.bf16 (!%p223_p2), %v466_v44, %v466_v44  ;;  %vm912_vm8 = vcmask (!%p223_p2), 64512   ;;  %vm918_vm9 = vcmask (!%p223_p2), 130112  }
   0x9   : > { %v281_v3 = vadd.s32 (!%p223_p2), 8, %v280_v2  ;;  %vm286_vm0 = vcmp.eq.s32.totalorder (!%p223_p2), %v280_v2, %v1025_v1  ;;  %s1208_s17 = smov (!%p223_p2), 118   ;;  %s1209_s18 = smov (!%p223_p2), 64   ;;  %vm923_vm10 = vcmask (!%p223_p2), 195712   ;;  %vm928_vm11 = vcmask (!%p223_p2), 261312  }
   0xa   : > { %s1210_s19 = smov (!%p223_p2), 80   ;;  %s1211_s20 = smov (!%p223_p2), 108   ;;  %vm933_vm12 = vcmask (!%p223_p2), 326912   ;;  %vm938_vm13 = vcmask (!%p223_p2), 392512   ;;  %vm943_vm14 = vcmask (!%p223_p2), 458112   ;;  %vm948_vm15 = vcmask (!%p223_p2), 523712  }
   0xb   : > { %vm287_vm2 = vcmp.eq.s32.totalorder (!%p223_p2), %v281_v3, %v1025_v1  ;;  %s1212_s23 = smov (!%p223_p2), 116   ;;  %s1213_s24 = smov (!%p223_p2), 32  }
   0xc   : > { %vm1147_vm3 = vmpackc.low (!%p223_p2), %vm287_vm2, %vm286_vm0  ;;  %s1215_s26 = smov (!%p223_p2), 106   ;;  %s1216_s27 = smov (!%p223_p2), 107  }
   0xd   : > { %s1361_s22 = smov (!%p256_p3, %s1015_s22), 1  ;;  %1148 = vmatprep.subr.msk.bf16.mxu1 %vm1147_vm3, %v1200_v6  ;;  %s1218_s30 = smov 16  }
   0xe   : > { %s1051_s25 = sshll.u32 %s1361_s22, 4  ;;  %1150 = vmatpush3.bf16.msk.msra.mxu1 %vm1147_vm3, %v1200_v6  ;;  %s1024_s9 = sshll.u32 %s1361_s22, 3 }
   0xf   : > { %s260_s28 = scalar_lea.vmem %s1353_s0, %s1051_s25  ;;  %s265_s7 = scalar_lea.vmem %s1354_s1, %s1051_s25  ;;  %1152 = vmatprep.subr.msk.bf16.mxu1 %vm1147_vm3, %v1200_v6 }
  0x10   : > { %v271_v4 = vld [vmem:[%s260_s28] sm:$0xff]  ;;  %v272_v7 = vld [vmem:[%s260_s28 + $0x8] sm:$0xff]  ;;  %s1214_s25 = smov 48   ;;  %s1220_s22 = smov 120  }
  0x11   : > { %v273_v5 = vld [vmem:[%s265_s7] sm:$0xff]  ;;  %1083 = vmatprep.mubr.msk.f32.mxu1 %vm292_vm1, %v271_v4  ;;  %v274_v8 = vld [vmem:[%s265_s7 + $0x8] sm:$0xff] }
  0x12   : > { %v275_v9 = vcvt.s32.f32 %v273_v5  ;;  %v276_v10 = vcvt.s32.f32 %v274_v8  ;;  %1084 = vmatmul.mubr.msk.f32.vlgmr.msra.gmra.mrb[0].mxu1 %vm292_vm1, %v272_v7 }
  0x13   : > { %1154 = vmatpush3.bf16.msk.msra.mxu1 %vm1147_vm3, %v1200_v6 }
  0x14   : > { %1090 = vmatprep.mubr.msk.f32.mxu1 %vm292_vm1, %v275_v9  ;;  %1099 = vmatprep.subr.bf16.mxu1 %v1201_v11 }
  0x16   : > { %1091 = vmatmul.mubr.msk.f32.vlgmr.msra.gmra.mrb[2].mxu1 %vm292_vm1, %v276_v10 }
  0x17   : > { %1101 = vmatprep.mubr.msk.bf16.mxu1 %vm1202_vm4, %v1201_v11 }
  0xe5   : > { %v1085_v12 = vpop.f32.mrb[0].mxu1 }
  0xe6   : > { %v365_v13 = vpop.f32.mrb[1].mxu1 }
  0xe7   : > { %v1039_v14 = vpack.c.bf16 %v1085_v12, %v365_v13 }
  0xe9   : > { %v1092_v15 = vpop.f32.mrb[2].mxu1 }
  0xea   : > { %v1157_v16 = vtrunc.f32 %v1092_v15  ;;  %v446_v17 = vpop.f32.mrb[3].mxu1 }
  0xeb   : > { %v1155_v19 = vtrunc.f32 %v446_v17 }
  0xec   : > { %v1158_v20 = vcvt.f32.s32 %v1157_v16 }
  0xed   : > { %v1156_v21 = vcvt.f32.s32 %v1155_v19 }
  0xee   : > { %vm462_vm5 = vcmp.eq.s32.totalorder %v1158_v20, %v1036_v18 }
  0xef   : > { %v464_v22 = vsel %vm462_vm5, %v1085_v12, 0.0  ;;  %vm461_vm6 = vcmp.eq.s32.totalorder %v1156_v21, %v1036_v18 }
  0xf0   : > { %v463_v24 = vsel %vm461_vm6, %v365_v13, 0.0  ;;  %vm1038_vm7 = vmpackc.low %vm462_vm5, %vm461_vm6 }
  0xf1   : > { %v467_v25 = vpack.c.bf16 %v464_v22, %v463_v24  ;;  %1100 = vmatpush3.bf16.msk.msra.mxu1 %vm1038_vm7, %v1039_v14 }
  0xf2   : > { %1111 = vmatprep.subr.bf16.mxu1 %v1201_v11 }
  0xf3   : > { %564 = vrot.lane.b32.xlu1 %v467_v25, %s1203_s12  ;;  %473 = vrot.lane.b32.xlu0 %v467_v25, %s1204_s13  ;;  %s1337_s13 = scalar_lea.vmem %s1359_s6, %s1024_s9 }
  0xf4   : > { %1102 = vmatmul.mubr.msk.bf16.vlgmr.msra.gmra.mrb[4].mxu1 %vm292_vm1, %v468_v26 }
  0xf5   : > { %1113 = vmatprep.mubr.msk.bf16.mxu1 %vm1202_vm4, %v1201_v11 }
  0xf7   : > { %562 = vrot.lane.b32.xlu1 %v468_v26, %s1205_s14  ;;  %470 = vrot.lane.b32.xlu0 %v468_v26, %s1206_s15  ;;  %s1219_s14 = smov 124   ;;  %s1221_s15 = smov 122  }
  0xfb   : > { %662 = vrot.lane.b32.xlu1 %v467_v25, %s1207_s16  ;;  %613 = vrot.lane.b32.xlu0 %v467_v25, %s1208_s17  ;;  %s1222_s16 = smov 114  }
  0xff   : > { %660 = vrot.lane.b32.xlu1 %v468_v26, %s1209_s18  ;;  %611 = vrot.lane.b32.xlu0 %v468_v26, %s1210_s19 }
 0x103   : > { %760 = vrot.lane.b32.xlu1 %v467_v25, %s1211_s20  ;;  %711 = vrot.lane.b32.xlu0 %v467_v25, %s1212_s23 }
 0x107   : > { %758 = vrot.lane.b32.xlu1 %v468_v26, %s1213_s24  ;;  %709 = vrot.lane.b32.xlu0 %v468_v26, %s1214_s25 }
 0x10b   : > { %857 = vrot.lane.b32.xlu1 %v467_v25, %s1215_s26  ;;  %809 = vrot.lane.b32.xlu0 %v467_v25, %s1216_s27 }
 0x10f   : > { %807 = vrot.lane.b32.xlu0 %v468_v26, %s1218_s30  ;;  %907 = vperm.xlu1 %1190, %v904_v28  }
 0x165   : > { %v565_v29 = vpop.permute.xlu1 %564  ;;  %v474_v30 = vpop.permute.xlu0 %473 }
 0x166   : > { %1094 = vmatpush3.bf16.msra.mxu0 %v474_v30 }
 0x167   : > { %1105 = vmatprep.subr.bf16.mxu0 %v1201_v11 }
 0x169   : > { %v563_v31 = vpop.permute.xlu1 %562  ;;  %v471_v32 = vpop.permute.xlu0 %470 }
 0x16a   : > { %1096 = vmatmul.mubr.msk.bf16.vlgmr.msra.gmra.mrb[0].mxu0 %vm292_vm1, %v471_v32 }
 0x16b   : > { %1106 = vmatpush3.bf16.msra.mxu0 %v565_v29  ;;  %1107 = vmatprep.mubr.msk.bf16.mxu0 %vm1202_vm4, %v1201_v11 }
 0x16c   : > { %1117 = vmatprep.subr.bf16.mxu0 %v1201_v11 }
 0x16d   : > { %v663_v33 = vpop.permute.xlu1 %662  ;;  %v614_v34 = vpop.permute.xlu0 %613 }
 0x16e   : > { %1112 = vmatpush3.bf16.msra.mxu1 %v614_v34 }
 0x16f   : > { %1123 = vmatprep.subr.bf16.mxu1 %v1201_v11 }
 0x171   : > { %v661_v35 = vpop.permute.xlu1 %660  ;;  %v612_v36 = vpop.permute.xlu0 %611 }
 0x172   : > { %1108 = vmatmul.mubr.msk.bf16.vlgmr.msra.gmra.mrb[4].mxu0 %vm292_vm1, %v563_v31  ;;  %1114 = vmatmul.mubr.msk.bf16.vlgmr.msra.gmra.mrb[8].mxu1 %vm292_vm1, %v612_v36 }
 0x173   : > { %1118 = vmatpush3.bf16.msra.mxu0 %v663_v33  ;;  %1119 = vmatprep.mubr.msk.bf16.mxu0 %vm1202_vm4, %v1201_v11 }
 0x174   : > { %1125 = vmatprep.mubr.msk.bf16.mxu1 %vm1202_vm4, %v1201_v11  ;;  %1129 = vmatprep.subr.bf16.mxu0 %v1201_v11 }
 0x175   : > { %v712_v37 = vpop.permute.xlu0 %711  ;;  %v761_v38 = vpop.permute.xlu1 %760 }
 0x176   : > { %1124 = vmatpush3.bf16.msra.mxu1 %v712_v37 }
 0x177   : > { %1135 = vmatprep.subr.bf16.mxu1 %v1201_v11 }
 0x179   : > { %v710_v39 = vpop.permute.xlu0 %709  ;;  %v759_v40 = vpop.permute.xlu1 %758 }
 0x17a   : > { %1120 = vmatmul.mubr.msk.bf16.vlgmr.msra.gmra.mrb[8].mxu0 %vm292_vm1, %v661_v35  ;;  %1126 = vmatmul.mubr.msk.bf16.vlgmr.msra.gmra.mrb[12].mxu1 %vm292_vm1, %v710_v39 }
 0x17b   : > { %1130 = vmatpush3.bf16.msra.mxu0 %v761_v38  ;;  %1131 = vmatprep.mubr.msk.bf16.mxu0 %vm1202_vm4, %v1201_v11 }
 0x17c   : > { %1141 = vmatprep.subr.bf16.mxu0 %v1201_v11  ;;  %1137 = vmatprep.mubr.msk.bf16.mxu1 %vm1202_vm4, %v1201_v11 }
 0x17d   : > { %v810_v41 = vpop.permute.xlu0 %809  ;;  %v858_v43 = vpop.permute.xlu1 %857 }
 0x17e   : > { %1136 = vmatpush3.bf16.msra.mxu1 %v810_v41 }
 0x181   : > { %v808_v42 = vpop.permute.xlu0 %807 }
 0x182   : > { %1132 = vmatmul.mubr.msk.bf16.vlgmr.msra.gmra.mrb[12].mxu0 %vm292_vm1, %v759_v40  ;;  %1138 = vmatmul.mubr.msk.bf16.vlgmr.msra.gmra.mrb[16].mxu1 %vm292_vm1, %v808_v42 }
 0x183   : > { %1142 = vmatpush3.bf16.msra.mxu0 %v858_v43  ;;  %1143 = vmatprep.mubr.msk.bf16.mxu0 %vm1202_vm4, %v1201_v11 }
 0x18a   : > { %1144 = vmatmul.mubr.msk.bf16.vlgmr.msra.gmra.mrb[16].mxu0 %vm292_vm1, %v856_v45 }
 0x18e   : > { %v908_v22 = vpop.permute.xlu1 %907 }
 0x1c7   : > { %v556_v46 = vpop.f32.mrb[4].mxu1 }
 0x1c8   : > { %v1103_v47 = vpop.f32.mrb[5].mxu1 }
 0x1c9   : > { %v559_v48 = vpop.f32.mrb[6].mxu1 }
 0x1ca   : > { %v1104_v49 = vpop.f32.mrb[7].mxu1 }
 0x23d   : > { %v513_v50 = vpop.f32.mrb[0].mxu0 }
 0x23e   : > { %v1097_v51 = vpop.f32.mrb[1].mxu0  ;;  %v557_v52 = vadd.f32 %v556_v46, %v513_v50 }
 0x23f   : > { %v516_v53 = vpop.f32.mrb[2].mxu0 }
 0x240   : > { %v1098_v54 = vpop.f32.mrb[3].mxu0 }
 0x245   : > { %v604_v55 = vpop.f32.mrb[4].mxu0  ;;  %v653_v56 = vpop.f32.mrb[8].mxu1 }
 0x246   : > { %v610_v57 = vadd.f32 %v604_v55, %v557_v52  ;;  %v1109_v58 = vpop.f32.mrb[5].mxu0  ;;  %v1115_v59 = vpop.f32.mrb[9].mxu1 }
 0x247   : > { %v607_v60 = vpop.f32.mrb[6].mxu0  ;;  %v656_v61 = vpop.f32.mrb[10].mxu1 }
 0x248   : > { %v659_v62 = vadd.f32 %v653_v56, %v610_v57  ;;  %v1110_v63 = vpop.f32.mrb[7].mxu0  ;;  %v1116_v0 = vpop.f32.mrb[11].mxu1 }
 0x24d   : > { %v702_v1 = vpop.f32.mrb[8].mxu0  ;;  %v751_v2 = vpop.f32.mrb[12].mxu1 }
 0x24e   : > { %v708_v3 = vadd.f32 %v702_v1, %v659_v62  ;;  %v1121_v4 = vpop.f32.mrb[9].mxu0  ;;  %v1127_v5 = vpop.f32.mrb[13].mxu1 }
 0x24f   : > { %v705_v6 = vpop.f32.mrb[10].mxu0  ;;  %v754_v7 = vpop.f32.mrb[14].mxu1 }
 0x250   : > { %v757_v8 = vadd.f32 %v751_v2, %v708_v3  ;;  %v1122_v9 = vpop.f32.mrb[11].mxu0  ;;  %v1128_v10 = vpop.f32.mrb[15].mxu1 }
 0x255   : > { %v800_v11 = vpop.f32.mrb[12].mxu0  ;;  %v849_v12 = vpop.f32.mrb[16].mxu1 }
 0x256   : > { %v806_v13 = vadd.f32 %v800_v11, %v757_v8  ;;  %v1133_v14 = vpop.f32.mrb[13].mxu0  ;;  %v1139_v15 = vpop.f32.mrb[17].mxu1 }
 0x257   : > { %v803_v16 = vpop.f32.mrb[14].mxu0  ;;  %v852_v17 = vpop.f32.mrb[18].mxu1 }
 0x258   : > { %v855_v18 = vadd.f32 %v849_v12, %v806_v13  ;;  %v1134_v19 = vpop.f32.mrb[15].mxu0  ;;  %v1140_v20 = vpop.f32.mrb[19].mxu1 }
 0x25d   : > { %v897_v21 = vpop.f32.mrb[16].mxu0 }
 0x25e   : > { %v903_v23 = vadd.f32 %v897_v21, %v855_v18  ;;  %v1145_v24 = vpop.f32.mrb[17].mxu0 }
 0x25f   : > { %v900_v25 = vpop.f32.mrb[18].mxu0 }
 0x260   : > { %v910_v26 = vadd.f32 %v908_v22, %v903_v23  ;;  %v1146_v27 = vpop.f32.mrb[19].mxu0 }
 0x262   : > { %v911_v28 = vmax.f32 %v910_v26, 0.0 }
 0x264   : > { %920 = vrot.lane.b32.xlu1 %v911_v28, %s1219_s14  ;;  %915 = vrot.lane.b32.xlu0 %v911_v28, %s1203_s12  ;;  %913 = vst.msk [vmem:[%s1337_s13] sm:$0xff] %vm912_vm8, %v911_v28 }
 0x268   : > { %930 = vrot.lane.b32.xlu1 %v911_v28, %s1220_s22  ;;  %925 = vrot.lane.b32.xlu0 %v911_v28, %s1221_s15 }
 0x26c   : > { %940 = vrot.lane.b32.xlu1 %v911_v28, %s1212_s23  ;;  %935 = vrot.lane.b32.xlu0 %v911_v28, %s1208_s17 }
 0x270   : > { %945 = vrot.lane.b32.xlu0 %v911_v28, %s1222_s16 }
 0x2d6   : > { %v921_v29 = vpop.permute.xlu1 %920  ;;  %v916_v30 = vpop.permute.xlu0 %915 }
 0x2d7   : > { %919 = vst.msk [vmem:[%s1337_s13] sm:$0xff] %vm918_vm9, %v916_v30 }
 0x2d8   : > { %924 = vst.msk [vmem:[%s1337_s13] sm:$0xff] %vm923_vm10, %v921_v29 }
 0x2da   : > { %v931_v31 = vpop.permute.xlu1 %930  ;;  %v926_v32 = vpop.permute.xlu0 %925 }
 0x2db   : > { %929 = vst.msk [vmem:[%s1337_s13] sm:$0xff] %vm928_vm11, %v926_v32 }
 0x2dc   : > { %934 = vst.msk [vmem:[%s1337_s13] sm:$0xff] %vm933_vm12, %v931_v31 }
 0x2de   : > { %v941_v33 = vpop.permute.xlu1 %940  ;;  %v936_v34 = vpop.permute.xlu0 %935 }
 0x2df   : > { %939 = vst.msk [vmem:[%s1337_s13] sm:$0xff] %vm938_vm13, %v936_v34 }
 0x2e0   : > { %944 = vst.msk [vmem:[%s1337_s13] sm:$0xff] %vm943_vm14, %v941_v33 }
 0x2e2   : > { %v946_v35 = vpop.permute.xlu0 %945 }
 0x2e3   : > { %949 = vst.msk [vmem:[%s1337_s13] sm:$0xff] %vm948_vm15, %v946_v35 }
 0x2e4 PF: > { %s16_s21 = sadd.s32 1, %s1198_s21  }
 0x2e5   : > { %p13_p4 = scmp.ge.s32.totalorder %s16_s21, 4  }
 0x2e7   :  { %15 = sbr.rel (!%p13_p4) target bundleno = 1 (0x1), region = 77 }

// kernel: forward.9
= control target key start
LH: loop header
LB: loop body
LE: loop exit
PB: predicated region body
PF: predicated region fallthrough
CT: control target
= control target key end

     0   :  { %s2205_s21 = smov 0   ;;  %s2592_s0 = inlined_call_operand.vmem [shape: f32[2,8,64], index: 0, kind: input, shape index: {}]   ;;  %s2593_s1 = inlined_call_operand.vmem [shape: s32[2,8,64], index: 1, kind: input, shape index: {}]   ;;  %s2594_s2 = inlined_call_operand.vmem [shape: s32[1,342], index: 2, kind: input, shape index: {}]   ;;  %s2595_s3 = inlined_call_operand.vmem [shape: s32[1,342], index: 3, kind: input, shape index: {}]   ;;  %s2596_s4 = inlined_call_operand.vmem [shape: f32[4,72], index: 4, kind: input, shape index: {}]   ;;  %s2597_s5 = inlined_call_operand.vmem [shape: f32[4,1], index: 5, kind: input, shape index: {}]   ;;  %s2598_s6 = inlined_call_operand.vmem [shape: f32[2,4,256], index: 6, kind: output, shape index: {}]  }
   0x1 LB: > { %s1788_s22 = sadd.s32 4294967295, %s2138_s21   ;;  %p1792_p0 = scmp.ge.s32.totalorder %s2138_s21, 1  ;;  %s2138_s21 = sphi %s2205_s21, %s16_s21  }
   0x2   : > { %p220_p1 = scmp.lt.s32.totalorder %s2138_s21, 3 }
   0x4   : > { %p221_p2 = pnand %p1792_p0, %p220_p1 }
   0x5   : > { %v272_v0 = vlaneseq (!%p221_p2)  ;;  %v2140_v1 = vmov (!%p221_p2), 0.0|0.0   ;;  %v2141_v2 = vmov (!%p221_p2), 0.0   ;;  %vm2599_vm0 = vmmov (!%p221_p2), 0   ;;  %v270_v4 = vld [vmem:[%s2594_s2] sm:$0x7] (!%p221_p2)  ;;  %p2245_p3 = scmp.lt.s32.totalorder (!%p221_p2), %s1788_s22, 1 }
   0x6   : > { %224 = sbr.rel (%p221_p2) target bundleno = 817 (0x331), region = 44  ;;  %2047 = vmatprep.subr.bf16.mxu1 (!%p221_p2), %v2140_v1  ;;  %433 = vmatprep.mubr.f32.mxu0 (!%p221_p2), %v2141_v2  ;;  %v2143_v17 = vmov (!%p221_p2), 1.0|1.0   ;;  %v2610_v22 = vmov (!%p221_p2), 0  ;;  %v2614_v24 = vmov (!%p221_p2), 0  ;;  %v2144_v52 = vmov (!%p221_p2), 0  }
   0x7   : > { %v2215_v3 = vshrl.u32 (!%p221_p2), %v272_v0, 7  ;;  %1955 = vmatprep.mubr.msk.f32.mxu1 (!%p221_p2), %vm2599_vm0, %v2141_v2  ;;  %v271_v38 = vld [vmem:[%s2595_s3] sm:$0x7] (!%p221_p2)  ;;  %2131 = vset.pattern.permute.xlu0 (!%p221_p2), %v2144_v52  ;;  %s2145_s13 = smov (!%p221_p2), 127   ;;  %s2146_s14 = smov (!%p221_p2), 120  }
   0x8   : > { %v675_v54 = vld [vmem:[%s2596_s4] sm:$0xf] (!%p221_p2)  ;;  %s2147_s15 = smov (!%p221_p2), 126   ;;  %s2148_s16 = smov (!%p221_p2), 112  }
   0x9   : > { %v274_v5 = vadd.s32 (!%p221_p2), 8, %v2215_v3  ;;  %v287_v6 = vsub.s32 (!%p221_p2), 1, %v2215_v3  ;;  %v291_v7 = vsub.s32 (!%p221_p2), 2, %v2215_v3  ;;  %v283_v8 = vsub.s32 (!%p221_p2), 0, %v2215_v3  ;;  %s2149_s17 = smov (!%p221_p2), 110   ;;  %s2150_s18 = smov (!%p221_p2), 104  }
   0xa   : > { %v275_v9 = vadd.s32 (!%p221_p2), 16, %v2215_v3  ;;  %v276_v10 = vadd.s32 (!%p221_p2), 24, %v2215_v3  ;;  %v277_v14 = vadd.s32 (!%p221_p2), 32, %v2215_v3  ;;  %v278_v15 = vadd.s32 (!%p221_p2), 40, %v2215_v3  ;;  %s2151_s19 = smov (!%p221_p2), 109   ;;  %s2152_s20 = smov (!%p221_p2), 96  }
   0xb   : > { %v288_v11 = vrot.slane (!%p221_p2), %v270_v4, %v287_v6  ;;  %v292_v12 = vrot.slane (!%p221_p2), %v270_v4, %v291_v7  ;;  %v284_v13 = vrot.slane (!%p221_p2), %v270_v4, %v283_v8  ;;  %v279_v20 = vadd.s32 (!%p221_p2), 48, %v2215_v3  ;;  %s2154_s23 = smov (!%p221_p2), 88   ;;  %s2155_s24 = smov (!%p221_p2), 92   ;;  %v1632_v61 = vld [vmem:[%s2597_s5] sm:$0xf] (!%p221_p2) }
   0xc   : > { %v280_v21 = vadd.s32 (!%p221_p2), 56, %v2215_v3  ;;  %v668_v41 = vrot.slane (!%p221_p2), %v271_v38, %v291_v7  ;;  %v660_v45 = vrot.slane (!%p221_p2), %v271_v38, %v283_v8  ;;  %v664_v49 = vrot.slane (!%p221_p2), %v271_v38, %v287_v6  ;;  %s2156_s25 = smov (!%p221_p2), 80   ;;  %s2157_s27 = smov (!%p221_p2), 91  }
   0xd   : > { %vm294_vm1 = vcmp.eq.s32.totalorder %v2215_v3, %v288_v11  ;;  %vm297_vm2 = vcmp.eq.s32.totalorder %v274_v5, %v288_v11  ;;  %vm295_vm3 = vcmp.eq.s32.totalorder %v2215_v3, %v292_v12  ;;  %vm298_vm4 = vcmp.eq.s32.totalorder %v274_v5, %v292_v12  ;;  %s2632_s22 = smov (!%p2245_p3, %s1788_s22), 1  ;;  %s2158_s28 = smov 72  }
   0xe   : > { %vm2238_vm5 = vmpackc.low %vm297_vm2, %vm294_vm1  ;;  %vm293_vm6 = vcmp.eq.s32.totalorder %v2215_v3, %v284_v13  ;;  %vm296_vm7 = vcmp.eq.s32.totalorder %v274_v5, %v284_v13  ;;  %vm300_vm8 = vcmp.eq.s32.totalorder %v275_v9, %v288_v11  ;;  %vm303_vm9 = vcmp.eq.s32.totalorder %v276_v10, %v288_v11  ;;  %s2312_s26 = sshll.u32 %s2632_s22, 3  ;;  %s2153_s22 = smov 108  }
   0xf   : > { %2032 = vmatprep.subr.msk.bf16.mxu0 %vm2238_vm5, %v2143_v17  ;;  %vm2252_vm10 = vmpackc.low %vm298_vm4, %vm295_vm3  ;;  %vm301_vm11 = vcmp.eq.s32.totalorder %v275_v9, %v292_v12  ;;  %vm304_vm12 = vcmp.eq.s32.totalorder %v276_v10, %v292_v12  ;;  %vm299_vm14 = vcmp.eq.s32.totalorder %v275_v9, %v284_v13  ;;  %vm302_vm15 = vcmp.eq.s32.totalorder %v276_v10, %v284_v13  ;;  %s256_s29 = scalar_lea.vmem %s2592_s0, %s2312_s26  ;;  %s260_s8 = scalar_lea.vmem %s2593_s1, %s2312_s26 }
  0x10   : > { %2049 = vmatpush3.bf16.msk.msra.mxu1 %vm2252_vm10, %v2143_v17  ;;  %vm2259_vm13 = vmpackc.low %vm296_vm7, %vm293_vm6  ;;  %vm306_vm2 = vcmp.eq.s32.totalorder %v277_v14, %v288_v11  ;;  %vm309_vm3 = vcmp.eq.s32.totalorder %v278_v15, %v288_v11  ;;  %vm307_vm6 = vcmp.eq.s32.totalorder %v277_v14, %v292_v12  ;;  %vm310_vm7 = vcmp.eq.s32.totalorder %v278_v15, %v292_v12  ;;  %v267_v31 = vld [vmem:[%s256_s29] sm:$0xff]  ;;  %s2159_s29 = smov 90   ;;  %s2160_s30 = smov 64  }
  0x11   : > { %2034 = vmatpush1.bf16.msk.msra.mxu0 %vm2259_vm13, %v2143_v17  ;;  %2050 = vmatprep.subr.bf16.mxu1 %v2140_v1  ;;  %vm2271_vm1 = vmpackc.low %vm303_vm9, %vm300_vm8  ;;  %vm305_vm8 = vcmp.eq.s32.totalorder %v277_v14, %v284_v13  ;;  %vm308_vm9 = vcmp.eq.s32.totalorder %v278_v15, %v284_v13  ;;  %v268_v32 = vld [vmem:[%s260_s8] sm:$0xff]  ;;  %v2419_v59 = vpack.c.bf16 %v675_v54, %v675_v54  ;;  %s2555_s11 = scalar_lea.vmem %s2598_s6, %s2312_s26  ;;  %s2161_s26 = smov 124  }
  0x12   : > { %v2611_v22 = vsel %vm2271_vm1, 4294967295, %v2610_v22  ;;  %2036 = vmatprep.subr.msk.bf16.mxu0 %vm2271_vm1, %v2143_v17  ;;  %vm2278_vm4 = vmpackc.low %vm304_vm12, %vm301_vm11  ;;  %vm312_vm11 = vcmp.eq.s32.totalorder %v279_v20, %v288_v11  ;;  %vm315_vm12 = vcmp.eq.s32.totalorder %v280_v21, %v288_v11  ;;  %v269_v33 = vcvt.s32.f32 %v268_v32  ;;  %s2162_s12 = smov 122  }
  0x13   : > { %vm2286_vm0 = vmpackc.low %vm302_vm15, %vm299_vm14 }
  0x14   : > { %v2615_v24 = vsel %vm2286_vm0, 4294967295, %v2614_v24  ;;  %2052 = vmatpush3.bf16.msk.msra.mxu1 %vm2278_vm4, %v2143_v17  ;;  %vm2293_vm1 = vmpackc.low %vm309_vm3, %vm306_vm2  ;;  %vm313_vm2 = vcmp.eq.s32.totalorder %v279_v20, %v292_v12  ;;  %vm316_vm3 = vcmp.eq.s32.totalorder %v280_v21, %v292_v12 }
  0x15   : > { %2038 = vmatpush1.bf16.msk.msra.mxu0 %vm2286_vm0, %v2143_v17  ;;  %2053 = vmatprep.subr.bf16.mxu1 %v2140_v1  ;;  %vm2301_vm14 = vmpackc.low %vm310_vm7, %vm307_vm6  ;;  %vm311_vm6 = vcmp.eq.s32.totalorder %v279_v20, %v284_v13  ;;  %vm314_vm7 = vcmp.eq.s32.totalorder %v280_v21, %v284_v13 }
  0x16   : > { %2040 = vmatprep.subr.msk.bf16.mxu0 %vm2293_vm1, %v2143_v17  ;;  %vm2308_vm15 = vmpackc.low %vm308_vm9, %vm305_vm8 }
  0x17   : > { %vm2314_vm0 = vmpackc.low %vm315_vm12, %vm312_vm11  ;;  %vm365_vm11 = vcmask 523264   ;;  %vm2628_vm12 = vnez %v2611_v22 }
  0x18   : > { %2055 = vmatpush3.bf16.msk.msra.mxu1 %vm2301_vm14, %v2143_v17  ;;  %vm2325_vm8 = vmpackc.low %vm316_vm3, %vm313_vm2  ;;  %vm891_vm2 = vcmask 1031168   ;;  %vm998_vm3 = vcmask 900096  }
  0x19   : > { %2042 = vmatpush1.bf16.msk.msra.mxu0 %vm2308_vm15, %v2143_v17  ;;  %2056 = vmatprep.subr.bf16.mxu1 %v2140_v1  ;;  %vm2336_vm9 = vmpackc.low %vm314_vm7, %vm311_vm6  ;;  %vm1105_vm6 = vcmask 891904   ;;  %vm1212_vm7 = vcmask 883712  }
  0x1a   : > { %2044 = vmatprep.subr.msk.bf16.mxu0 %vm2314_vm0, %v2143_v17 }
  0x1c   : > { %2058 = vmatpush3.bf16.msk.msra.mxu1 %vm2325_vm8, %v2143_v17 }
  0x1d   : > { %2046 = vmatpush1.bf16.msk.msra.mxu0 %vm2336_vm9, %v2143_v17  ;;  %2075 = vmatprep.subr.bf16.mxu1 %v2140_v1 }
  0x1e   : > { %2060 = vmatprep.subr.msk.bf16.mxu0 %vm2238_vm5, %v2143_v17  ;;  %vm2629_vm5 = vmmov 0  }
  0x1f   : > { %1956 = vmatmul.mubr.msk.f32.vlgmr.msra.gmra.mrb[0].mxu1 %vm365_vm11, %v267_v31 }
  0x20   : > { %1837 = vmatmul.mubr.msk.f32.vlgmr.msra.gmra.mrb[0].mxu0 %vm365_vm11, %v267_v31  ;;  %2077 = vmatpush3.bf16.msk.msra.mxu1 %vm2252_vm10, %v2143_v17  ;;  %vm2630_vm10 = vnez %v2615_v24 }
  0x21   : > { %2062 = vmatpush1.bf16.msk.msra.mxu0 %vm2259_vm13, %v2143_v17  ;;  %2078 = vmatprep.subr.bf16.mxu1 %v2140_v1 }
  0x22   : > { %2064 = vmatprep.subr.msk.bf16.mxu0 %vm2628_vm12, %v2143_v17  ;;  %1974 = vmatprep.mubr.msk.f32.mxu1 %vm2629_vm5, %v2141_v2  ;;  %vm1641_vm12 = vcmask 125952  }
  0x23   : > { %577 = vmatprep.mubr.f32.mxu0 %v2141_v2 }
  0x24   : > { %2080 = vmatpush3.bf16.msk.msra.mxu1 %vm2278_vm4, %v2143_v17  ;;  %vm699_vm4 = vcmask 1043456  }
  0x25   : > { %2066 = vmatpush1.bf16.msk.msra.mxu0 %vm2630_vm10, %v2143_v17  ;;  %2081 = vmatprep.subr.bf16.mxu1 %v2140_v1  ;;  %vm1652_vm10 = vcmask 388352  }
  0x26   : > { %2068 = vmatprep.subr.msk.bf16.mxu0 %vm2293_vm1, %v2143_v17 }
  0x28   : > { %2083 = vmatpush3.bf16.msk.msra.mxu1 %vm2301_vm14, %v2143_v17  ;;  %vm695_vm14 = vcmask 64512  }
  0x29   : > { %2070 = vmatpush1.bf16.msk.msra.mxu0 %vm2308_vm15, %v2143_v17  ;;  %2084 = vmatprep.subr.bf16.mxu1 %v2140_v1  ;;  %vm692_vm15 = vcmask 1039360  }
  0x2a   : > { %2072 = vmatprep.subr.msk.bf16.mxu0 %vm2314_vm0, %v2143_v17 }
  0x2c   : > { %2086 = vmatpush3.bf16.msk.msra.mxu1 %vm2325_vm8, %v2143_v17  ;;  %vm1319_vm8 = vcmask 752640  }
  0x2d   : > { %2074 = vmatpush1.bf16.msk.msra.mxu0 %vm2336_vm9, %v2143_v17  ;;  %1977 = vmatprep.subr.bf16.mxu1 %v2141_v2  ;;  %vm1426_vm9 = vcmask 744448  }
  0x2f   : > { %1975 = vmatmul.mubr.msk.f32.vlgmr.msra.gmra.mrb[2].mxu1 %vm365_vm11, %v269_v33 }
  0x30   : > { %1863 = vmatmul.mubr.msk.f32.vlgmr.msra.gmra.mrb[2].mxu0 %vm365_vm11, %v269_v33  ;;  %1979 = vmatprep.mubr.msk.bf16.mxu1 %vm2629_vm5, %v2141_v2  ;;  %vm1533_vm11 = vcmask 736256  }
  0x31   : > { %741 = vmatprep.mubr.bf16.mxu0 %v2144_v52 }
  0xf2   : > { %v506_v34 = vpop.f32.mrb[0].mxu1 }
  0xf3   : > { %v435_v35 = vpop.f32.mrb[0].mxu0  ;;  %v1957_v36 = vpop.f32.mrb[1].mxu1 }
  0xf4   : > { %v437_v37 = vpop.f32.mrb[1].mxu0 }
 0x102   : > { %v650_v39 = vpop.f32.mrb[2].mxu1 }
 0x103   : > { %v2091_v40 = vtrunc.f32 %v650_v39  ;;  %v579_v42 = vpop.f32.mrb[2].mxu0  ;;  %v1976_v43 = vpop.f32.mrb[3].mxu1 }
 0x104   : > { %v2087_v44 = vtrunc.f32 %v579_v42  ;;  %v581_v46 = vpop.f32.mrb[3].mxu0 }
 0x105   : > { %v2092_v47 = vcvt.f32.s32 %v2091_v40  ;;  %v2089_v48 = vtrunc.f32 %v581_v46 }
 0x106   : > { %v2088_v50 = vcvt.f32.s32 %v2087_v44 }
 0x107   : > { %vm671_vm0 = vcmp.eq.s32.totalorder %v2092_v47, %v668_v41  ;;  %v2090_v51 = vcvt.f32.s32 %v2089_v48 }
 0x108   : > { %v674_v53 = vsel %vm671_vm0, %v506_v34, 0.0  ;;  %vm669_vm13 = vcmp.eq.s32.totalorder %v2088_v50, %v660_v45  ;;  %vm1657_vm0 = vcmask 519552  }
 0x109   : > { %v2414_v55 = vpack.c.bf16 %v674_v53, %v674_v53  ;;  %v672_v56 = vsel %vm669_vm13, %v435_v35, 0.0  ;;  %vm670_vm1 = vcmp.eq.s32.totalorder %v2090_v51, %v664_v49  ;;  %vm1662_vm13 = vcmask 650752  }
 0x10a   : > { %v2416_v57 = vpack.c.bf16 %v672_v56, %v672_v56  ;;  %v673_v58 = vsel %vm670_vm1, %v437_v37, 0.0  ;;  %vm1667_vm1 = vcmask 781952  }
 0x10b   : > { %690 = vrot.lane.b32.xlu1 %v2414_v55, %s2145_s13  ;;  %v2422_v60 = vpack.c.bf16 %v673_v58, %v673_v58  ;;  %v800_v4 = vsel %vm699_vm4, %v2414_v55, 0 }
 0x10c   : > { %686 = vrot.lane.b32.xlu0 %v2416_v57, %s2145_s13  ;;  %v794_v10 = vsel %vm699_vm4, %v2416_v57, 0 }
 0x10f   : > { %681 = vrot.lane.b32.xlu1 %v2419_v59, %s2146_s14 }
 0x110   : > { %688 = vrot.lane.b32.xlu0 %v2422_v60, %s2145_s13  ;;  %s2163_s13 = smov 106  }
 0x113   : > { %887 = vrot.lane.b32.xlu1 %v2422_v60, %s2147_s15 }
 0x114   : > { %885 = vrot.lane.b32.xlu0 %v2416_v57, %s2147_s15 }
 0x117   : > { %883 = vrot.lane.b32.xlu1 %v2419_v59, %s2148_s16 }
 0x118   : > { %889 = vrot.lane.b32.xlu0 %v2414_v55, %s2147_s15 }
 0x11b   : > { %994 = vrot.lane.b32.xlu1 %v2422_v60, %s2149_s17 }
 0x11c   : > { %992 = vrot.lane.b32.xlu0 %v2416_v57, %s2149_s17 }
 0x11f   : > { %990 = vrot.lane.b32.xlu1 %v2419_v59, %s2150_s18 }
 0x120   : > { %996 = vrot.lane.b32.xlu0 %v2414_v55, %s2149_s17 }
 0x123   : > { %1101 = vrot.lane.b32.xlu1 %v2422_v60, %s2151_s19 }
 0x124   : > { %1099 = vrot.lane.b32.xlu0 %v2416_v57, %s2151_s19 }
 0x127   : > { %1097 = vrot.lane.b32.xlu1 %v2419_v59, %s2152_s20  ;;  %s2168_s20 = smov 114  }
 0x128   : > { %1103 = vrot.lane.b32.xlu0 %v2414_v55, %s2151_s19  ;;  %s2164_s19 = smov 118  }
 0x12b   : > { %1208 = vrot.lane.b32.xlu1 %v2422_v60, %s2153_s22 }
 0x12c   : > { %1206 = vrot.lane.b32.xlu0 %v2416_v57, %s2153_s22 }
 0x12f   : > { %1204 = vrot.lane.b32.xlu1 %v2419_v59, %s2154_s23 }
 0x130   : > { %1210 = vrot.lane.b32.xlu0 %v2414_v55, %s2153_s22 }
 0x133   : > { %1315 = vrot.lane.b32.xlu1 %v2422_v60, %s2155_s24 }
 0x134   : > { %1313 = vrot.lane.b32.xlu0 %v2416_v57, %s2155_s24 }
 0x137   : > { %1311 = vrot.lane.b32.xlu1 %v2419_v59, %s2156_s25 }
 0x138   : > { %1317 = vrot.lane.b32.xlu0 %v2414_v55, %s2155_s24 }
 0x13b   : > { %1422 = vrot.lane.b32.xlu1 %v2422_v60, %s2157_s27 }
 0x13c   : > { %1420 = vrot.lane.b32.xlu0 %v2416_v57, %s2157_s27 }
 0x13f   : > { %1418 = vrot.lane.b32.xlu1 %v2419_v59, %s2158_s28 }
 0x140   : > { %1424 = vrot.lane.b32.xlu0 %v2414_v55, %s2157_s27 }
 0x143   : > { %1529 = vrot.lane.b32.xlu1 %v2422_v60, %s2159_s29 }
 0x144   : > { %1527 = vrot.lane.b32.xlu0 %v2416_v57, %s2159_s29 }
 0x147   : > { %1525 = vrot.lane.b32.xlu1 %v2419_v59, %s2160_s30 }
 0x148   : > { %1531 = vrot.lane.b32.xlu0 %v2414_v55, %s2159_s29 }
 0x14c   : > { %1635 = vperm.xlu0 %2131, %v1632_v61  }
 0x17d   : > { %v691_v62 = vpop.permute.xlu1 %690 }
 0x17e   : > { %v707_v63 = vsel %vm699_vm4, %v691_v62, 0  ;;  %v687_v0 = vpop.permute.xlu0 %686 }
 0x17f   : > { %1978 = vmatpush3.bf16.msra.mxu1 %v707_v63 }
 0x180   : > { %1983 = vmatprep.subr.bf16.mxu1 %v2141_v2 }
 0x181   : > { %v682_v1 = vpop.permute.xlu1 %681 }
 0x182   : > { %1980 = vmatmul.mubr.msk.bf16.vlgmr.msra.gmra.mrb[4].mxu1 %vm695_vm14, %v682_v1  ;;  %v689_v3 = vpop.permute.xlu0 %688 }
 0x183   : > { %v693_v5 = vsel %vm692_vm15, %v687_v0, %v689_v3  ;;  %v694_v6 = vsel %vm692_vm15, %v689_v3, %v691_v62  ;;  %1984 = vmatpush3.bf16.msra.mxu1 %v800_v4  ;;  %1985 = vmatprep.mubr.msk.bf16.mxu1 %vm2629_vm5, %v2141_v2  ;;  %vm1682_vm15 = vcmask 1044352  }
 0x184   : > { %v701_v7 = vsel %vm699_vm4, %v693_v5, 0  ;;  %1873 = vmatprep.subr.msk.bf16.mxu0 %vm699_vm4, %v694_v6  ;;  %1989 = vmatprep.subr.bf16.mxu1 %v2141_v2 }
 0x185   : > { %v888_v8 = vpop.permute.xlu1 %887  ;;  %710 = vmatpush1.bf16.msra.mxu0 %v701_v7 }
 0x186   : > { %1876 = vmatprep.subr.msk.bf16.mxu0 %vm699_vm4, %v2422_v60  ;;  %v886_v9 = vpop.permute.xlu0 %885 }
 0x187   : > { %v892_v15 = vsel %vm891_vm2, %v886_v9, %v888_v8 }
 0x188   : > { %1874 = vmatmul.mubr.msk.bf16.vlgmr.msra.gmra.mrb[4].mxu0 %vm695_vm14, %v682_v1  ;;  %v898_v18 = vsel %vm699_vm4, %v892_v15, 0 }
 0x189   : > { %v884_v11 = vpop.permute.xlu1 %883  ;;  %803 = vmatpush1.bf16.msra.mxu0 %v794_v10  ;;  %834 = vmatprep.mubr.bf16.mxu0 %v2144_v52 }
 0x18a   : > { %1986 = vmatmul.mubr.msk.bf16.vlgmr.msra.gmra.mrb[8].mxu1 %vm695_vm14, %v2419_v59  ;;  %v890_v12 = vpop.permute.xlu0 %889 }
 0x18b   : > { %v893_v13 = vsel %vm891_vm2, %v888_v8, %v890_v12  ;;  %v904_v14 = vsel %vm699_vm4, %v890_v12, 0  ;;  %1991 = vmatprep.mubr.msk.bf16.mxu1 %vm2629_vm5, %v2141_v2  ;;  %vm1679_vm2 = vcmask 932864  }
 0x18c   : > { %1879 = vmatprep.subr.msk.bf16.mxu0 %vm699_vm4, %v893_v13  ;;  %1990 = vmatpush3.bf16.msra.mxu1 %v904_v14 }
 0x18d   : > { %v995_v16 = vpop.permute.xlu1 %994  ;;  %1995 = vmatprep.subr.bf16.mxu1 %v2141_v2 }
 0x18e   : > { %v993_v17 = vpop.permute.xlu0 %992 }
 0x18f   : > { %v999_v23 = vsel %vm998_vm3, %v993_v17, %v995_v16 }
 0x190   : > { %1877 = vmatmul.mubr.msk.bf16.vlgmr.msra.gmra.mrb[8].mxu0 %vm695_vm14, %v2419_v59  ;;  %v1005_v26 = vsel %vm699_vm4, %v999_v23, 0 }
 0x191   : > { %907 = vmatpush1.bf16.msra.mxu0 %v898_v18  ;;  %v991_v19 = vpop.permute.xlu1 %990  ;;  %938 = vmatprep.mubr.bf16.mxu0 %v2144_v52 }
 0x192   : > { %1992 = vmatmul.mubr.msk.bf16.vlgmr.msra.gmra.mrb[12].mxu1 %vm695_vm14, %v884_v11  ;;  %v997_v20 = vpop.permute.xlu0 %996 }
 0x193   : > { %v1000_v21 = vsel %vm998_vm3, %v995_v16, %v997_v20  ;;  %v1011_v22 = vsel %vm699_vm4, %v997_v20, 0  ;;  %1997 = vmatprep.mubr.msk.bf16.mxu1 %vm2629_vm5, %v2141_v2 }
 0x194   : > { %1882 = vmatprep.subr.msk.bf16.mxu0 %vm699_vm4, %v1000_v21  ;;  %1996 = vmatpush3.bf16.msra.mxu1 %v1011_v22 }
 0x195   : > { %v1102_v24 = vpop.permute.xlu1 %1101  ;;  %2001 = vmatprep.subr.bf16.mxu1 %v2141_v2 }
 0x196   : > { %v1100_v25 = vpop.permute.xlu0 %1099 }
 0x197   : > { %v1106_v31 = vsel %vm1105_vm6, %v1100_v25, %v1102_v24 }
 0x198   : > { %1880 = vmatmul.mubr.msk.bf16.vlgmr.msra.gmra.mrb[12].mxu0 %vm695_vm14, %v884_v11  ;;  %v1112_v34 = vsel %vm699_vm4, %v1106_v31, 0 }
 0x199   : > { %1014 = vmatpush1.bf16.msra.mxu0 %v1005_v26  ;;  %v1098_v27 = vpop.permute.xlu1 %1097  ;;  %1045 = vmatprep.mubr.bf16.mxu0 %v2144_v52 }
 0x19a   : > { %1998 = vmatmul.mubr.msk.bf16.vlgmr.msra.gmra.mrb[16].mxu1 %vm695_vm14, %v991_v19  ;;  %v1104_v28 = vpop.permute.xlu0 %1103 }
 0x19b   : > { %v1107_v29 = vsel %vm1105_vm6, %v1102_v24, %v1104_v28  ;;  %v1118_v30 = vsel %vm699_vm4, %v1104_v28, 0  ;;  %2003 = vmatprep.mubr.msk.bf16.mxu1 %vm2629_vm5, %v2141_v2 }
 0x19c   : > { %1885 = vmatprep.subr.msk.bf16.mxu0 %vm699_vm4, %v1107_v29  ;;  %2002 = vmatpush3.bf16.msra.mxu1 %v1118_v30 }
 0x19d   : > { %v1209_v32 = vpop.permute.xlu1 %1208  ;;  %2007 = vmatprep.subr.bf16.mxu1 %v2141_v2 }
 0x19e   : > { %v1207_v33 = vpop.permute.xlu0 %1206 }
 0x19f   : > { %v1213_v39 = vsel %vm1212_vm7, %v1207_v33, %v1209_v32 }
 0x1a0   : > { %1883 = vmatmul.mubr.msk.bf16.vlgmr.msra.gmra.mrb[16].mxu0 %vm695_vm14, %v991_v19  ;;  %v1219_v42 = vsel %vm699_vm4, %v1213_v39, 0 }
 0x1a1   : > { %1121 = vmatpush1.bf16.msra.mxu0 %v1112_v34  ;;  %v1205_v35 = vpop.permute.xlu1 %1204  ;;  %1152 = vmatprep.mubr.bf16.mxu0 %v2144_v52 }
 0x1a2   : > { %2004 = vmatmul.mubr.msk.bf16.vlgmr.msra.gmra.mrb[20].mxu1 %vm695_vm14, %v1098_v27  ;;  %v1211_v36 = vpop.permute.xlu0 %1210 }
 0x1a3   : > { %v1214_v37 = vsel %vm1212_vm7, %v1209_v32, %v1211_v36  ;;  %v1225_v38 = vsel %vm699_vm4, %v1211_v36, 0  ;;  %2009 = vmatprep.mubr.msk.bf16.mxu1 %vm2629_vm5, %v2141_v2 }
 0x1a4   : > { %1888 = vmatprep.subr.msk.bf16.mxu0 %vm699_vm4, %v1214_v37  ;;  %2008 = vmatpush3.bf16.msra.mxu1 %v1225_v38 }
 0x1a5   : > { %v1316_v40 = vpop.permute.xlu1 %1315  ;;  %2013 = vmatprep.subr.bf16.mxu1 %v2141_v2 }
 0x1a6   : > { %v1314_v41 = vpop.permute.xlu0 %1313 }
 0x1a7   : > { %v1320_v47 = vsel %vm1319_vm8, %v1314_v41, %v1316_v40 }
 0x1a8   : > { %1886 = vmatmul.mubr.msk.bf16.vlgmr.msra.gmra.mrb[20].mxu0 %vm695_vm14, %v1098_v27  ;;  %v1326_v50 = vsel %vm699_vm4, %v1320_v47, 0 }
 0x1a9   : > { %1228 = vmatpush1.bf16.msra.mxu0 %v1219_v42  ;;  %v1312_v43 = vpop.permute.xlu1 %1311  ;;  %1259 = vmatprep.mubr.bf16.mxu0 %v2144_v52 }
 0x1aa   : > { %2010 = vmatmul.mubr.msk.bf16.vlgmr.msra.gmra.mrb[24].mxu1 %vm695_vm14, %v1205_v35  ;;  %v1318_v44 = vpop.permute.xlu0 %1317 }
 0x1ab   : > { %v1321_v45 = vsel %vm1319_vm8, %v1316_v40, %v1318_v44  ;;  %v1332_v46 = vsel %vm699_vm4, %v1318_v44, 0  ;;  %2015 = vmatprep.mubr.msk.bf16.mxu1 %vm2629_vm5, %v2141_v2 }
 0x1ac   : > { %1891 = vmatprep.subr.msk.bf16.mxu0 %vm699_vm4, %v1321_v45  ;;  %2014 = vmatpush3.bf16.msra.mxu1 %v1332_v46 }
 0x1ad   : > { %2019 = vmatprep.subr.bf16.mxu1 %v2141_v2  ;;  %v1423_v48 = vpop.permute.xlu1 %1422 }
 0x1ae   : > { %v1421_v49 = vpop.permute.xlu0 %1420 }
 0x1af   : > { %v1427_v56 = vsel %vm1426_vm9, %v1421_v49, %v1423_v48 }
 0x1b0   : > { %1889 = vmatmul.mubr.msk.bf16.vlgmr.msra.gmra.mrb[24].mxu0 %vm695_vm14, %v1205_v35  ;;  %v1433_v58 = vsel %vm699_vm4, %v1427_v56, 0 }
 0x1b1   : > { %1335 = vmatpush1.bf16.msra.mxu0 %v1326_v50  ;;  %1366 = vmatprep.mubr.bf16.mxu0 %v2144_v52  ;;  %v1419_v55 = vpop.permute.xlu1 %1418 }
 0x1b2   : > { %2016 = vmatmul.mubr.msk.bf16.vlgmr.msra.gmra.mrb[28].mxu1 %vm695_vm14, %v1312_v43  ;;  %v1425_v51 = vpop.permute.xlu0 %1424 }
 0x1b3   : > { %v1428_v53 = vsel %vm1426_vm9, %v1423_v48, %v1425_v51  ;;  %v1439_v54 = vsel %vm699_vm4, %v1425_v51, 0  ;;  %2021 = vmatprep.mubr.msk.bf16.mxu1 %vm2629_vm5, %v2141_v2 }
 0x1b4   : > { %1894 = vmatprep.subr.msk.bf16.mxu0 %vm699_vm4, %v1428_v53  ;;  %2020 = vmatpush3.bf16.msra.mxu1 %v1439_v54 }
 0x1b5   : > { %2025 = vmatprep.subr.bf16.mxu1 %v2141_v2  ;;  %v1530_v59 = vpop.permute.xlu1 %1529 }
 0x1b6   : > { %v1528_v57 = vpop.permute.xlu0 %1527 }
 0x1b7   : > { %v1534_v63 = vsel %vm1533_vm11, %v1528_v57, %v1530_v59 }
 0x1b8   : > { %1892 = vmatmul.mubr.msk.bf16.vlgmr.msra.gmra.mrb[28].mxu0 %vm695_vm14, %v1312_v43  ;;  %v1540_v1 = vsel %vm699_vm4, %v1534_v63, 0 }
 0x1b9   : > { %1442 = vmatpush1.bf16.msra.mxu0 %v1433_v58  ;;  %1473 = vmatprep.mubr.bf16.mxu0 %v2144_v52  ;;  %v1526_v0 = vpop.permute.xlu1 %1525 }
 0x1ba   : > { %2022 = vmatmul.mubr.msk.bf16.vlgmr.msra.gmra.mrb[32].mxu1 %vm695_vm14, %v1419_v55  ;;  %v1532_v60 = vpop.permute.xlu0 %1531 }
 0x1bb   : > { %v1535_v61 = vsel %vm1533_vm11, %v1530_v59, %v1532_v60  ;;  %v1546_v62 = vsel %vm699_vm4, %v1532_v60, 0  ;;  %2027 = vmatprep.mubr.msk.bf16.mxu1 %vm2629_vm5, %v2141_v2  ;;  %vm1647_vm5 = vcmask 257152  }
 0x1bc   : > { %1897 = vmatprep.subr.msk.bf16.mxu0 %vm699_vm4, %v1535_v61  ;;  %2026 = vmatpush3.bf16.msra.mxu1 %v1546_v62  ;;  %vm1713_vm4 = vcmask 818176  }
 0x1c0   : > { %1895 = vmatmul.mubr.msk.bf16.vlgmr.msra.gmra.mrb[32].mxu0 %vm695_vm14, %v1419_v55 }
 0x1c1   : > { %1549 = vmatpush1.bf16.msra.mxu0 %v1540_v1  ;;  %1580 = vmatprep.mubr.bf16.mxu0 %v2144_v52 }
 0x1c2   : > { %2028 = vmatmul.mubr.msk.bf16.vlgmr.msra.gmra.mrb[36].mxu1 %vm695_vm14, %v1526_v0 }
 0x1c8   : > { %1898 = vmatmul.mubr.msk.bf16.vlgmr.msra.gmra.mrb[36].mxu0 %vm695_vm14, %v1526_v0  ;;  %vm1672_vm14 = vcmask 913152  }
 0x255   : > { %v784_v3 = vpop.f32.mrb[4].mxu1 }
 0x256   : > { %v1981_v4 = vpop.f32.mrb[5].mxu1 }
 0x257   : > { %v787_v5 = vpop.f32.mrb[6].mxu1 }
 0x258   : > { %v1982_v2 = vpop.f32.mrb[7].mxu1 }
 0x25b   : > { %v743_v6 = vpop.f32.mrb[4].mxu0 }
 0x25c   : > { %v745_v7 = vpop.f32.mrb[5].mxu0 }
 0x25d   : > { %v747_v8 = vpop.f32.mrb[6].mxu0  ;;  %v877_v9 = vpop.f32.mrb[8].mxu1 }
 0x25e   : > { %v878_v10 = vadd.f32 %v877_v9, %v784_v3  ;;  %v748_v11 = vpop.f32.mrb[7].mxu0  ;;  %v1987_v12 = vpop.f32.mrb[9].mxu1 }
 0x25f   : > { %v880_v13 = vpop.f32.mrb[10].mxu1 }
 0x260   : > { %v1988_v14 = vpop.f32.mrb[11].mxu1 }
 0x263   : > { %v836_v15 = vpop.f32.mrb[8].mxu0 }
 0x264   : > { %v837_v16 = vadd.f32 %v836_v15, %v743_v6  ;;  %v838_v52 = vpop.f32.mrb[9].mxu0 }
 0x265   : > { %v839_v17 = vadd.f32 %v838_v52, %v745_v7  ;;  %v840_v18 = vpop.f32.mrb[10].mxu0  ;;  %v981_v19 = vpop.f32.mrb[12].mxu1 }
 0x266   : > { %v989_v20 = vadd.f32 %v981_v19, %v878_v10  ;;  %v841_v21 = vpop.f32.mrb[11].mxu0  ;;  %v1993_v22 = vpop.f32.mrb[13].mxu1 }
 0x267   : > { %v984_v23 = vpop.f32.mrb[14].mxu1 }
 0x268   : > { %v1994_v24 = vpop.f32.mrb[15].mxu1 }
 0x26b   : > { %v940_v25 = vpop.f32.mrb[12].mxu0 }
 0x26c   : > { %v987_v26 = vadd.f32 %v940_v25, %v837_v16  ;;  %v942_v27 = vpop.f32.mrb[13].mxu0 }
 0x26d   : > { %v988_v28 = vadd.f32 %v942_v27, %v839_v17  ;;  %v944_v29 = vpop.f32.mrb[14].mxu0  ;;  %v1088_v30 = vpop.f32.mrb[16].mxu1 }
 0x26e   : > { %v1096_v31 = vadd.f32 %v1088_v30, %v989_v20  ;;  %v945_v32 = vpop.f32.mrb[15].mxu0  ;;  %v1999_v33 = vpop.f32.mrb[17].mxu1 }
 0x26f   : > { %v1091_v34 = vpop.f32.mrb[18].mxu1 }
 0x270   : > { %v2000_v35 = vpop.f32.mrb[19].mxu1 }
 0x273   : > { %v1047_v36 = vpop.f32.mrb[16].mxu0 }
 0x274   : > { %v1094_v37 = vadd.f32 %v1047_v36, %v987_v26  ;;  %v1049_v38 = vpop.f32.mrb[17].mxu0 }
 0x275   : > { %v1095_v39 = vadd.f32 %v1049_v38, %v988_v28  ;;  %v1051_v40 = vpop.f32.mrb[18].mxu0  ;;  %v1195_v41 = vpop.f32.mrb[20].mxu1 }
 0x276   : > { %v1203_v42 = vadd.f32 %v1195_v41, %v1096_v31  ;;  %v1052_v43 = vpop.f32.mrb[19].mxu0  ;;  %v2005_v44 = vpop.f32.mrb[21].mxu1 }
 0x277   : > { %v1198_v45 = vpop.f32.mrb[22].mxu1  ;;  %v1636_v28 = vpop.permute.xlu0 %1635 }
 0x278   : > { %v2006_v46 = vpop.f32.mrb[23].mxu1 }
 0x27b   : > { %v1154_v47 = vpop.f32.mrb[20].mxu0 }
 0x27c   : > { %v1201_v48 = vadd.f32 %v1154_v47, %v1094_v37  ;;  %v1156_v49 = vpop.f32.mrb[21].mxu0 }
 0x27d   : > { %v1202_v50 = vadd.f32 %v1156_v49, %v1095_v39  ;;  %v1158_v51 = vpop.f32.mrb[22].mxu0  ;;  %v1302_v53 = vpop.f32.mrb[24].mxu1 }
 0x27e   : > { %v1310_v54 = vadd.f32 %v1302_v53, %v1203_v42  ;;  %v1159_v55 = vpop.f32.mrb[23].mxu0  ;;  %v2011_v56 = vpop.f32.mrb[25].mxu1 }
 0x27f   : > { %v1305_v57 = vpop.f32.mrb[26].mxu1 }
 0x280   : > { %v2012_v58 = vpop.f32.mrb[27].mxu1 }
 0x283   : > { %v1261_v59 = vpop.f32.mrb[24].mxu0 }
 0x284   : > { %v1308_v60 = vadd.f32 %v1261_v59, %v1201_v48  ;;  %v1263_v61 = vpop.f32.mrb[25].mxu0 }
 0x285   : > { %v1309_v62 = vadd.f32 %v1263_v61, %v1202_v50  ;;  %v1265_v63 = vpop.f32.mrb[26].mxu0  ;;  %v1409_v0 = vpop.f32.mrb[28].mxu1 }
 0x286   : > { %v1417_v1 = vadd.f32 %v1409_v0, %v1310_v54  ;;  %v1266_v3 = vpop.f32.mrb[27].mxu0  ;;  %v2017_v4 = vpop.f32.mrb[29].mxu1 }
 0x287   : > { %v1412_v5 = vpop.f32.mrb[30].mxu1 }
 0x288   : > { %v2018_v2 = vpop.f32.mrb[31].mxu1 }
 0x28b   : > { %v1368_v6 = vpop.f32.mrb[28].mxu0 }
 0x28c   : > { %v1415_v7 = vadd.f32 %v1368_v6, %v1308_v60  ;;  %v1370_v8 = vpop.f32.mrb[29].mxu0 }
 0x28d   : > { %v1416_v9 = vadd.f32 %v1370_v8, %v1309_v62  ;;  %v1372_v10 = vpop.f32.mrb[30].mxu0  ;;  %v1516_v11 = vpop.f32.mrb[32].mxu1 }
 0x28e   : > { %v1524_v12 = vadd.f32 %v1516_v11, %v1417_v1  ;;  %v1373_v13 = vpop.f32.mrb[31].mxu0  ;;  %v2023_v14 = vpop.f32.mrb[33].mxu1 }
 0x28f   : > { %v1519_v15 = vpop.f32.mrb[34].mxu1 }
 0x290   : > { %v2024_v16 = vpop.f32.mrb[35].mxu1 }
 0x293   : > { %v1475_v52 = vpop.f32.mrb[32].mxu0 }
 0x294   : > { %v1522_v17 = vadd.f32 %v1475_v52, %v1415_v7  ;;  %v1477_v18 = vpop.f32.mrb[33].mxu0 }
 0x295   : > { %v1523_v19 = vadd.f32 %v1477_v18, %v1416_v9  ;;  %v1479_v20 = vpop.f32.mrb[34].mxu0  ;;  %v1623_v21 = vpop.f32.mrb[36].mxu1 }
 0x296   : > { %v1631_v22 = vadd.f32 %v1623_v21, %v1524_v12  ;;  %v1480_v23 = vpop.f32.mrb[35].mxu0  ;;  %v2029_v24 = vpop.f32.mrb[37].mxu1 }
 0x297   : > { %v1626_v25 = vpop.f32.mrb[38].mxu1 }
 0x298   : > { %v2030_v26 = vpop.f32.mrb[39].mxu1  ;;  %v1640_v35 = vadd.f32 %v1636_v28, %v1631_v22 }
 0x29b   : > { %v1582_v27 = vpop.f32.mrb[36].mxu0 }
 0x29c   : > { %v1629_v29 = vadd.f32 %v1582_v27, %v1522_v17  ;;  %v1584_v30 = vpop.f32.mrb[37].mxu0 }
 0x29d   : > { %v1630_v31 = vadd.f32 %v1584_v30, %v1523_v19  ;;  %v1586_v32 = vpop.f32.mrb[38].mxu0 }
 0x29e   : > { %v1638_v33 = vadd.f32 %v1636_v28, %v1629_v29  ;;  %v1587_v34 = vpop.f32.mrb[39].mxu0 }
 0x29f   : > { %v1639_v36 = vadd.f32 %v1636_v28, %v1630_v31 }
 0x2a0   : > { %1659 = vrot.lane.b32.xlu0 %v1638_v33, %s2146_s14  ;;  %1644 = vrot.lane.b32.xlu1 %v1638_v33, %s2147_s15  ;;  %1642 = vst.msk [vmem:[%s2555_s11] sm:$0xf] %vm1641_vm12, %v1638_v33  ;;  %s2165_s14 = smov 102   ;;  %s2166_s15 = smov 100  }
 0x2a1   : > { %v1709_v37 = vcombine.low %v1639_v36, %v1640_v35  ;;  %v1675_v38 = vcombine.low %v1638_v33, %v1639_v36 }
 0x2a4   : > { %1688 = vrot.lane.b32.xlu0 %v1639_v36, %s2149_s17  ;;  %1649 = vrot.lane.b32.xlu1 %v1638_v33, %s2161_s26  ;;  %s2167_s17 = smov 98  }
 0x2a8   : > { %1692 = vrot.lane.b32.xlu0 %v1639_v36, %s2153_s22  ;;  %1654 = vrot.lane.b32.xlu1 %v1638_v33, %s2162_s12  ;;  %s2169_s22 = smov 116  }
 0x2ac   : > { %1696 = vrot.lane.b32.xlu0 %v1639_v36, %s2163_s13  ;;  %1664 = vrot.lane.b32.xlu1 %v1638_v33, %s2164_s19 }
 0x2b0   : > { %1700 = vrot.lane.b32.xlu0 %v1639_v36, %s2150_s18  ;;  %1684 = vrot.lane.b32.xlu1 %v1639_v36, %s2148_s16 }
 0x2b4   : > { %1704 = vrot.lane.b32.xlu0 %v1639_v36, %s2165_s14  ;;  %1710 = vrot.lane.b32.xlu1 %v1709_v37, %s2166_s15 }
 0x2b8   : > { %1717 = vrot.lane.b32.xlu0 %v1640_v35, %s2167_s17  ;;  %1676 = vrot.lane.b32.xlu1 %v1675_v38, %s2168_s20 }
 0x2bc   : > { %1669 = vrot.lane.b32.xlu1 %v1638_v33, %s2169_s22 }
 0x312   : > { %v1660_v39 = vpop.permute.xlu0 %1659  ;;  %v1645_v40 = vpop.permute.xlu1 %1644 }
 0x313   : > { %1648 = vst.msk [vmem:[%s2555_s11] sm:$0xf] %vm1647_vm5, %v1645_v40 }
 0x316   : > { %v1689_v41 = vpop.permute.xlu0 %1688  ;;  %v1650_v42 = vpop.permute.xlu1 %1649 }
 0x317   : > { %1653 = vst.msk [vmem:[%s2555_s11] sm:$0xf] %vm1652_vm10, %v1650_v42 }
 0x31a   : > { %v1693_v43 = vpop.permute.xlu0 %1692  ;;  %v1655_v44 = vpop.permute.xlu1 %1654 }
 0x31b   : > { %1658 = vst.msk [vmem:[%s2555_s11] sm:$0xf] %vm1657_vm0, %v1655_v44 }
 0x31c   : > { %1663 = vst.msk [vmem:[%s2555_s11] sm:$0xf] %vm1662_vm13, %v1660_v39 }
 0x31e   : > { %v1697_v45 = vpop.permute.xlu0 %1696  ;;  %v1665_v46 = vpop.permute.xlu1 %1664 }
 0x31f   : > { %1668 = vst.msk [vmem:[%s2555_s11] sm:$0xf] %vm1667_vm1, %v1665_v46 }
 0x322   : > { %v1701_v47 = vpop.permute.xlu0 %1700  ;;  %v1685_v48 = vpop.permute.xlu1 %1684 }
 0x323   : > { %1687 = vst.msk [vmem:[%s2555_s11 + $0x4] sm:$0xf] %vm1641_vm12, %v1685_v48 }
 0x324   : > { %1691 = vst.msk [vmem:[%s2555_s11 + $0x4] sm:$0xf] %vm1647_vm5, %v1689_v41 }
 0x325   : > { %1695 = vst.msk [vmem:[%s2555_s11 + $0x4] sm:$0xf] %vm1652_vm10, %v1693_v43 }
 0x326   : > { %1699 = vst.msk [vmem:[%s2555_s11 + $0x4] sm:$0xf] %vm1657_vm0, %v1697_v45  ;;  %v1705_v49 = vpop.permute.xlu0 %1704  ;;  %v1711_v50 = vpop.permute.xlu1 %1710 }
 0x327   : > { %1703 = vst.msk [vmem:[%s2555_s11 + $0x4] sm:$0xf] %vm1662_vm13, %v1701_v47  ;;  %v1712_v51 = vrot.slane %v1711_v50, 4 }
 0x328   : > { %1707 = vst.msk [vmem:[%s2555_s11 + $0x4] sm:$0xf] %vm1667_vm1, %v1705_v49 }
 0x329   : > { %v1714_v53 = vsel %vm1713_vm4, %v1711_v50, %v1712_v51 }
 0x32a   : > { %1716 = vst.msk [vmem:[%s2555_s11 + $0x4] sm:$0xf] %vm1672_vm14, %v1714_v53  ;;  %v1718_v54 = vpop.permute.xlu0 %1717  ;;  %v1677_v55 = vpop.permute.xlu1 %1676 }
 0x32b   : > { %1720 = vst.msk [vmem:[%s2555_s11 + $0x4] sm:$0xf] %vm1682_vm15, %v1718_v54  ;;  %v1678_v56 = vrot.slane %v1677_v55, 4 }
 0x32d   : > { %v1680_v58 = vsel %vm1679_vm2, %v1677_v55, %v1678_v56 }
 0x32e   : > { %v1670_v57 = vpop.permute.xlu1 %1669 }
 0x32f   : > { %1673 = vst.msk [vmem:[%s2555_s11] sm:$0xf] %vm1672_vm14, %v1670_v57 }
 0x330   : > { %1683 = vst.msk [vmem:[%s2555_s11] sm:$0xf] %vm1682_vm15, %v1680_v58 }
 0x331 PF: > { %s16_s21 = sadd.s32 1, %s2138_s21  }
 0x332   : > { %p13_p4 = scmp.ge.s32.totalorder %s16_s21, 4  }
 0x334   :  { %15 = sbr.rel (!%p13_p4) target bundleno = 1 (0x1), region = 77 }

</bundles_post_ra>
